<compile_context>
chip_gen: v7x
topology: tpu7x:2x2x1
jax: 0.10.0
libtpu: 0.0.40
codegen_flags: <defaults>
</compile_context>

<pallas_src>
from functools import partial

import jax
import jax.numpy as jnp
from jax.experimental import pallas as pl
from jax.experimental.pallas import tpu as pltpu

EPS = 1e-5  # PyTorch LayerNorm default

# Row layout of the packed per-layer vector slab `vecs` of shape (L, 15, D).
_SA_BQ, _SA_BK, _SA_BV, _SA_BO = 0, 1, 2, 3
_CA_BQ, _CA_BK, _CA_BV, _CA_BO = 4, 5, 6, 7
_FF_B2 = 8
_N1G, _N1B, _N2G, _N2B, _N3G, _N3B = 9, 10, 11, 12, 13, 14
_NUM_VEC_ROWS = 15

WEIGHT_KEYS = ("sa_wqkv", "wqo", "ca_wkv", "ff_w1", "ff_w2", "fl_w",
               "vecs", "ff_b1", "fin", "fl_b")


# ------------------------------ fused kernel --------------------------------

def _decoder_fwd_kernel(
    x_ref,         # (B*T, D)      f32   target, batch folded into rows
    mem_ref,       # (B*S, D)      bf16  memory, batch folded into rows
    sa_wqkv_ref,   # (L, D, 3D)    bf16  fused self-attn QKV proj (Q pre-scaled)
    wqo_ref,       # (L, 3, D, D)  bf16  [self out-proj, cross q-proj(scaled), cross out-proj]
    ca_wkv_ref,    # (L, D, 2D)    bf16  fused cross-attn KV proj
    ff_w1_ref,     # (L, D, FF)    bf16
    ff_w2_ref,     # (L, FF, D)    bf16
    fl_w_ref,      # (D, n_out)    bf16
    vecs_ref,      # (L, 15, D)    f32   packed biases + LayerNorm params
    ff_b1_ref,     # (L, 1, FF)    f32
    fin_ref,       # (2, D)        f32   final-norm gamma / beta
    fl_b_ref,      # (1, n_out)    f32
    out_ref,       # (B*T, n_out)
    *, num_heads, num_layers, B, T, S, use_final_norm,
):
    f32 = jnp.float32
    bf16 = jnp.bfloat16

    x = x_ref[...].astype(f32)     # (B*T, D)
    mem = mem_ref[...]             # (B*S, D) bf16 (only ever an MXU operand)

    D = x.shape[1]
    H = num_heads
    hd = D // H

    def layer_norm(v, g, b):
        mu = jnp.mean(v, axis=-1, keepdims=True)
        var = jnp.mean((v - mu) ** 2, axis=-1, keepdims=True)
        return (v - mu) * jax.lax.rsqrt(var + EPS) * g + b

    def attention(q, k, v, Lk, wo, bo):
        # q: (B*T, D) f32; k, v: (B*Lk, D) f32.  Heads and batch elements are
        # unrolled statically; the 1/sqrt(hd) scale is already folded into the
        # Q weights/biases.  Returns (B*T, D) f32.
        ctx_rows = []
        for b in range(B):
            qs = q[b * T:(b + 1) * T]            # (T, D)
            ks = k[b * Lk:(b + 1) * Lk]          # (Lk, D)
            vs = v[b * Lk:(b + 1) * Lk]          # (Lk, D)
            heads = []
            for h in range(H):
                lo, hi = h * hd, (h + 1) * hd
                qh = qs[:, lo:hi].astype(bf16)
                kh = ks[:, lo:hi].astype(bf16)
                vh = vs[:, lo:hi].astype(bf16)
                # q @ k^T without an explicit transpose: contract hd vs hd.
                s = jax.lax.dot_general(qh, kh, (((1,), (1,)), ((), ())),
                                        preferred_element_type=f32)   # (T, Lk)
                s = s - jnp.max(s, axis=-1, keepdims=True)
                p = jnp.exp(s)
                inv = pl.reciprocal(jnp.sum(p, axis=-1, keepdims=True),
                                    approx=True)
                # Deferred softmax normalization on the (T, hd) output.
                heads.append(jnp.dot(p.astype(bf16), vh,
                                     preferred_element_type=f32) * inv)
            ctx_rows.append(jnp.concatenate(heads, axis=1))            # (T, D)
        ctx = jnp.concatenate(ctx_rows, axis=0)                        # (B*T, D)
        # One K=D out-projection for all heads / batch elements at once.
        return jnp.dot(ctx.astype(bf16), wo, preferred_element_type=f32) + bo

    for l in range(num_layers):
        vl = vecs_ref[l]                               # (15, D) f32
        row = lambda i: vl[i:i + 1, :]                 # (1, D)

        # --- self-attention block (pre-norm, dropout = identity) ---
        h = layer_norm(x, row(_N1G), row(_N1B))
        qkv = jnp.dot(h.astype(bf16), sa_wqkv_ref[l],
                      preferred_element_type=f32)      # (B*T, 3D)
        q = qkv[:, :D] + row(_SA_BQ)
        k = qkv[:, D:2 * D] + row(_SA_BK)
        v = qkv[:, 2 * D:] + row(_SA_BV)
        x = x + attention(q, k, v, T, wqo_ref[l, 0], row(_SA_BO))

        # --- cross-attention block ---
        h = layer_norm(x, row(_N2G), row(_N2B))
        q = jnp.dot(h.astype(bf16), wqo_ref[l, 1],
                    preferred_element_type=f32) + row(_CA_BQ)           # (B*T, D)
        kv = jnp.dot(mem, ca_wkv_ref[l], preferred_element_type=f32)    # (B*S, 2D)
        k = kv[:, :D] + row(_CA_BK)
        v = kv[:, D:] + row(_CA_BV)
        x = x + attention(q, k, v, S, wqo_ref[l, 2], row(_CA_BO))

        # --- feed-forward block (relu, dropout = identity) ---
        h = layer_norm(x, row(_N3G), row(_N3B))
        h = jnp.maximum(jnp.dot(h.astype(bf16), ff_w1_ref[l],
                                preferred_element_type=f32) + ff_b1_ref[l], 0.0)
        x = x + jnp.dot(h.astype(bf16), ff_w2_ref[l],
                        preferred_element_type=f32) + row(_FF_B2)

    if use_final_norm:
        fin = fin_ref[...]
        x = layer_norm(x, fin[0:1, :], fin[1:2, :])
    out = jnp.dot(x.astype(bf16), fl_w_ref[...],
                  preferred_element_type=f32) + fl_b_ref[...]
    out_ref[...] = out.astype(out_ref.dtype)


# ------------------------------ wrapper --------------------------------------

def transformer_decoder_forward(x, memory, packed, *, num_heads, use_final_norm=True):
    """x: (B, T, D); memory: (B, D, S) -> (B, T, n_out).  One grid-less pallas_call."""
    B, T, D = x.shape
    S = memory.shape[2]
    L = packed["sa_wqkv"].shape[0]
    n_out = packed["fl_w"].shape[1]

    # Fold batch into rows; present memory as a lane-major (B*S, D) slab so the
    # cross-attn KV projection is a plain (rows, D) @ (D, 2D) matmul in-kernel.
    x_flat = x.reshape(B * T, D)
    mem_flat = jnp.transpose(memory, (0, 2, 1)).reshape(B * S, D).astype(jnp.bfloat16)

    args = [x_flat, mem_flat] + [packed[k] for k in WEIGHT_KEYS]

    kernel = partial(
        _decoder_fwd_kernel,
        num_heads=num_heads, num_layers=L, B=B, T=T, S=S,
        use_final_norm=use_final_norm,
    )

    vmem = pl.BlockSpec(memory_space=pltpu.MemorySpace.VMEM)
    out_flat = pl.pallas_call(
        kernel,
        out_shape=jax.ShapeDtypeStruct((B * T, n_out), x.dtype),
        in_specs=[vmem] * len(args),
        out_specs=vmem,
        compiler_params=pltpu.CompilerParams(vmem_limit_bytes=32 * 1024 * 1024),
    )(*args)
    return out_flat.reshape(B, T, n_out)


# ------------------------ param init (PyTorch layout) ------------------------

def init_mha(key, D):
    k1, k2, k3, k4 = jax.random.split(key, 4)
    return {
        "in_proj_w": jax.random.normal(k1, (3 * D, D), jnp.float32) * 0.05,
        "in_proj_b": jax.random.normal(k2, (3 * D,), jnp.float32) * 0.02,
        "out_proj_w": jax.random.normal(k3, (D, D), jnp.float32) * 0.05,
        "out_proj_b": jax.random.normal(k4, (D,), jnp.float32) * 0.02,
    }


def init_layer(key, D, FF):
    ks = jax.random.split(key, 6)
    return {
        "self_attn": init_mha(ks[0], D),
        "cross_attn": init_mha(ks[1], D),
        "lin1_w": jax.random.normal(ks[2], (FF, D), jnp.float32) * 0.05,
        "lin1_b": jax.random.normal(ks[3], (FF,), jnp.float32) * 0.02,
        "lin2_w": jax.random.normal(ks[4], (D, FF), jnp.float32) * 0.05,
        "lin2_b": jax.random.normal(ks[5], (D,), jnp.float32) * 0.02,
        "norm1_g": jnp.ones((D,), jnp.float32), "norm1_b": jnp.zeros((D,), jnp.float32),
        "norm2_g": jnp.ones((D,), jnp.float32), "norm2_b": jnp.zeros((D,), jnp.float32),
        "norm3_g": jnp.ones((D,), jnp.float32), "norm3_b": jnp.zeros((D,), jnp.float32),
    }


def init_decoder(key, num_layers, D, FF, vocab, final_norm=True):
    ks = jax.random.split(key, num_layers + 2)
    return {
        "layers": [init_layer(ks[i], D, FF) for i in range(num_layers)],
        "final_norm_g": jnp.ones((D,), jnp.float32) if final_norm else None,
        "final_norm_b": jnp.zeros((D,), jnp.float32) if final_norm else None,
        "final_lin_w": jax.random.normal(ks[-2], (2 * vocab, D), jnp.float32) * 0.05,
        "final_lin_b": jax.random.normal(ks[-1], (2 * vocab,), jnp.float32) * 0.02,
    }


def pack_params(params, num_heads):
    """One-time param prep (outside the traced forward):
       * weights transposed to (in, out) layout and cast to bf16 (MXU-native),
       * 1/sqrt(head_dim) softmax scale folded into Q weights and biases,
       * cross-attn in_proj split into Wq / Wkv,
       * self out-proj / cross q-proj / cross out-proj stacked into (L,3,D,D),
       * all small per-layer bias + LayerNorm vectors packed into one
         (L, 15, D) slab (plus (L, 1, FF) for the linear1 bias)."""
    layers = params["layers"]
    D = layers[0]["norm1_g"].shape[0]
    hd = D // num_heads
    scale = 1.0 / float(hd) ** 0.5
    bf16 = jnp.bfloat16

    def stack(fn, dtype=jnp.float32):
        return jnp.stack([fn(lp) for lp in layers], axis=0).astype(dtype)

    def q_scaled(w):   # (3D, D) rows [Wq; Wk; Wv] -> pre-scale the Q rows
        return jnp.concatenate([w[:D] * scale, w[D:]], axis=0)

    def layer_vecs(p):
        sab = p["self_attn"]["in_proj_b"]    # (3D,)
        cab = p["cross_attn"]["in_proj_b"]   # (3D,)
        rows = [
            sab[:D] * scale, sab[D:2 * D], sab[2 * D:],     # 0-2 self q/k/v bias
            p["self_attn"]["out_proj_b"],                   # 3
            cab[:D] * scale, cab[D:2 * D], cab[2 * D:],     # 4-6 cross q/k/v bias
            p["cross_attn"]["out_proj_b"],                  # 7
            p["lin2_b"],                                    # 8
            p["norm1_g"], p["norm1_b"],                     # 9, 10
            p["norm2_g"], p["norm2_b"],                     # 11, 12
            p["norm3_g"], p["norm3_b"],                     # 13, 14
        ]
        assert len(rows) == _NUM_VEC_ROWS
        return jnp.stack(rows, axis=0)                      # (15, D)

    packed = {
        "sa_wqkv": stack(lambda p: q_scaled(p["self_attn"]["in_proj_w"]).T, bf16),   # (L, D, 3D)
        "wqo": stack(lambda p: jnp.stack(
            [p["self_attn"]["out_proj_w"].T,
             p["cross_attn"]["in_proj_w"][:D].T * scale,
             p["cross_attn"]["out_proj_w"].T], axis=0), bf16),                       # (L, 3, D, D)
        "ca_wkv": stack(lambda p: p["cross_attn"]["in_proj_w"][D:].T, bf16),         # (L, D, 2D)
        "ff_w1": stack(lambda p: p["lin1_w"].T, bf16),                               # (L, D, FF)
        "ff_w2": stack(lambda p: p["lin2_w"].T, bf16),                               # (L, FF, D)
        "fl_w": params["final_lin_w"].T.astype(bf16),                                # (D, n_out)
        "vecs": stack(layer_vecs),                                                   # (L, 15, D) f32
        "ff_b1": stack(lambda p: p["lin1_b"][None, :]),                              # (L, 1, FF) f32
        "fl_b": params["final_lin_b"][None, :].astype(jnp.float32),                  # (1, n_out) f32
    }
    if params["final_norm_g"] is not None:
        packed["fin"] = jnp.stack([params["final_norm_g"], params["final_norm_b"]], 0)
        use_final_norm = True
    else:
        packed["fin"] = jnp.stack([jnp.ones((D,), jnp.float32),
                                   jnp.zeros((D,), jnp.float32)], 0)
        use_final_norm = False
    return packed, use_final_norm


# --------------------------- pure-JAX reference -------------------------------

def _ref_layernorm(x, g, b):
    mu = x.mean(-1, keepdims=True)
    var = ((x - mu) ** 2).mean(-1, keepdims=True)
    return (x - mu) / jnp.sqrt(var + EPS) * g + b


def _ref_mha(q_in, kv_in, p, H):
    D = q_in.shape[-1]
    hd = D // H
    Wq, Wk, Wv = p["in_proj_w"][:D], p["in_proj_w"][D:2 * D], p["in_proj_w"][2 * D:]
    bq, bk, bv = p["in_proj_b"][:D], p["in_proj_b"][D:2 * D], p["in_proj_b"][2 * D:]
    q = q_in @ Wq.T + bq
    k = kv_in @ Wk.T + bk
    v = kv_in @ Wv.T + bv
    B, Lq, _ = q.shape
    Lk = k.shape[1]
    q = q.reshape(B, Lq, H, hd).transpose(0, 2, 1, 3) / jnp.sqrt(jnp.float32(hd))
    k = k.reshape(B, Lk, H, hd).transpose(0, 2, 1, 3)
    v = v.reshape(B, Lk, H, hd).transpose(0, 2, 1, 3)
    s = q @ jnp.swapaxes(k, -1, -2)
    a = jax.nn.softmax(s, axis=-1)
    o = (a @ v).transpose(0, 2, 1, 3).reshape(B, Lq, D)
    return o @ p["out_proj_w"].T + p["out_proj_b"]


def reference_forward(x, memory, params, H):
    out = x
    mem = jnp.transpose(memory, (0, 2, 1))
    for lp in params["layers"]:
        r = out
        t = _ref_layernorm(out, lp["norm1_g"], lp["norm1_b"])
        out = r + _ref_mha(t, t, lp["self_attn"], H)
        r = out
        t = _ref_layernorm(out, lp["norm2_g"], lp["norm2_b"])
        out = r + _ref_mha(t, mem, lp["cross_attn"], H)
        r = out
        t = _ref_layernorm(out, lp["norm3_g"], lp["norm3_b"])
        h = jnp.maximum(t @ lp["lin1_w"].T + lp["lin1_b"], 0.0)
        out = r + (h @ lp["lin2_w"].T + lp["lin2_b"])
    if params["final_norm_g"] is not None:
        out = _ref_layernorm(out, params["final_norm_g"], params["final_norm_b"])
    return out @ params["final_lin_w"].T + params["final_lin_b"]


# --------------------------------- main --------------------------------------

if __name__ == "__main__":
    # model_definition: d_model=32, num_heads=4, dim_feedforward=64,
    # dropout=0.1 (identity at inference), activation='relu',
    # normalize_before=True, num_layers=2, final_norm=True; len(dictionary)=10
    B, T, S = 2, 8, 12
    D, H, FF, L, V = 32, 4, 64, 2, 10

    root = jax.random.PRNGKey(0)
    kp, kx, km = jax.random.split(root, 3)

    params = init_decoder(kp, L, D, FF, V, final_norm=True)
    packed, use_fn = pack_params(params, num_heads=H)    # one-time param prep (hoisted)

    x = jax.random.normal(kx, (B, T, D), jnp.float32)       # input  (B, T, D)
    memory = jax.random.normal(km, (B, D, S), jnp.float32)  # memory (B, D, S)

    fwd = jax.jit(partial(transformer_decoder_forward, num_heads=H, use_final_norm=use_fn))
    out = fwd(x, memory, packed)
    jax.block_until_ready(out)

    assert out.shape == (B, T, 2 * V), out.shape
    assert bool(jnp.all(jnp.isfinite(out)))

    ref = reference_forward(x, memory, params, H)
    err = float(jnp.max(jnp.abs(out - ref)))
    # bf16 MXU operands + approx reciprocal => not bitwise vs the f32 reference.
    assert err < 5e-2, f"mismatch vs pure-JAX reference: max abs err = {err}"

    print("KERNEL_OK")
</pallas_src>

<mosaic_0001>
module attributes {stable_mosaic.version = 11 : i64} {
  func.func @_decoder_fwd_kernel(%arg0: memref<16x32xf32, #tpu.memory_space<vmem>>, %arg1: memref<24x32xbf16, #tpu.memory_space<vmem>>, %arg2: memref<2x32x96xbf16, #tpu.memory_space<vmem>>, %arg3: memref<2x3x32x32xbf16, #tpu.memory_space<vmem>>, %arg4: memref<2x32x64xbf16, #tpu.memory_space<vmem>>, %arg5: memref<2x32x64xbf16, #tpu.memory_space<vmem>>, %arg6: memref<2x64x32xbf16, #tpu.memory_space<vmem>>, %arg7: memref<32x20xbf16, #tpu.memory_space<vmem>>, %arg8: memref<2x15x32xf32, #tpu.memory_space<vmem>>, %arg9: memref<2x1x64xf32, #tpu.memory_space<vmem>>, %arg10: memref<2x32xf32, #tpu.memory_space<vmem>>, %arg11: memref<1x20xf32, #tpu.memory_space<vmem>>, %arg12: memref<16x20xf32, #tpu.memory_space<vmem>>) attributes {dimension_semantics = [], scalar_prefetch = 0 : i64, scratch_operands = 0 : i64, tpu.core_type = #tpu.core_type<tc>} {
    %c0 = arith.constant 0 : index
    %c0_0 = arith.constant 0 : index
    %0 = vector.load %arg0[%c0, %c0_0] : memref<16x32xf32, #tpu.memory_space<vmem>>, vector<16x32xf32>
    %c0_1 = arith.constant 0 : index
    %c0_2 = arith.constant 0 : index
    %1 = vector.load %arg1[%c0_1, %c0_2] : memref<24x32xbf16, #tpu.memory_space<vmem>>, vector<24x32xbf16>
    %c0_3 = arith.constant 0 : index
    %c0_4 = arith.constant 0 : index
    %c0_5 = arith.constant 0 : index
    %2 = vector.load %arg8[%c0_3, %c0_4, %c0_5] : memref<2x15x32xf32, #tpu.memory_space<vmem>>, vector<1x15x32xf32>
    %3 = vector.shape_cast %2 : vector<1x15x32xf32> to vector<15x32xf32>
    %4 = vector.extract_strided_slice %3 {offsets = [9, 0], sizes = [1, 32], strides = [1, 1]} : vector<15x32xf32> to vector<1x32xf32>
    %5 = vector.extract_strided_slice %3 {offsets = [10, 0], sizes = [1, 32], strides = [1, 1]} : vector<15x32xf32> to vector<1x32xf32>
    %cst = arith.constant dense<0.000000e+00> : vector<16xf32>
    %6 = vector.multi_reduction <add>, %0, %cst [1] : vector<16x32xf32> to vector<16xf32>
    %7 = vector.shape_cast %6 : vector<16xf32> to vector<16x1xf32>
    %cst_6 = arith.constant 3.200000e+01 : f32
    %8 = vector.broadcast %cst_6 : f32 to vector<16x1xf32>
    %9 = arith.divf %7, %8 : vector<16x1xf32>
    %10 = vector.broadcast %9 : vector<16x1xf32> to vector<16x32xf32>
    %11 = arith.subf %0, %10 : vector<16x32xf32>
    %12 = arith.mulf %11, %11 : vector<16x32xf32>
    %cst_7 = arith.constant dense<0.000000e+00> : vector<16xf32>
    %13 = vector.multi_reduction <add>, %12, %cst_7 [1] : vector<16x32xf32> to vector<16xf32>
    %14 = vector.shape_cast %13 : vector<16xf32> to vector<16x1xf32>
    %cst_8 = arith.constant 3.200000e+01 : f32
    %15 = vector.broadcast %cst_8 : f32 to vector<16x1xf32>
    %16 = arith.divf %14, %15 : vector<16x1xf32>
    %17 = vector.broadcast %9 : vector<16x1xf32> to vector<16x32xf32>
    %18 = arith.subf %0, %17 : vector<16x32xf32>
    %cst_9 = arith.constant 9.99999974E-6 : f32
    %19 = vector.broadcast %cst_9 : f32 to vector<16x1xf32>
    %20 = arith.addf %16, %19 : vector<16x1xf32>
    %21 = math.rsqrt %20 : vector<16x1xf32>
    %22 = vector.broadcast %21 : vector<16x1xf32> to vector<16x32xf32>
    %23 = arith.mulf %18, %22 : vector<16x32xf32>
    %24 = vector.broadcast %4 : vector<1x32xf32> to vector<16x32xf32>
    %25 = arith.mulf %23, %24 : vector<16x32xf32>
    %26 = vector.broadcast %5 : vector<1x32xf32> to vector<16x32xf32>
    %27 = arith.addf %25, %26 : vector<16x32xf32>
    %28 = arith.truncf %27 : vector<16x32xf32> to vector<16x32xbf16>
    %c0_10 = arith.constant 0 : index
    %c0_11 = arith.constant 0 : index
    %c0_12 = arith.constant 0 : index
    %29 = vector.load %arg2[%c0_10, %c0_11, %c0_12] : memref<2x32x96xbf16, #tpu.memory_space<vmem>>, vector<1x32x96xbf16>
    %30 = vector.shape_cast %29 : vector<1x32x96xbf16> to vector<32x96xbf16>
    %cst_13 = arith.constant dense<0.000000e+00> : vector<16x96xf32>
    %31 = tpu.matmul %28, %30, %cst_13 {dimension_numbers = #tpu.dot_dimension_numbers<[1], [0], [0], [1], [0, 0, 1, 1], [], []>} : vector<16x32xbf16>, vector<32x96xbf16>, vector<16x96xf32> -> vector<16x96xf32>
    %32 = vector.extract_strided_slice %31 {offsets = [0, 0], sizes = [16, 32], strides = [1, 1]} : vector<16x96xf32> to vector<16x32xf32>
    %33 = vector.extract_strided_slice %3 {offsets = [0, 0], sizes = [1, 32], strides = [1, 1]} : vector<15x32xf32> to vector<1x32xf32>
    %34 = vector.broadcast %33 : vector<1x32xf32> to vector<16x32xf32>
    %35 = arith.addf %32, %34 : vector<16x32xf32>
    %36 = vector.extract_strided_slice %31 {offsets = [0, 32], sizes = [16, 32], strides = [1, 1]} : vector<16x96xf32> to vector<16x32xf32>
    %37 = vector.extract_strided_slice %3 {offsets = [1, 0], sizes = [1, 32], strides = [1, 1]} : vector<15x32xf32> to vector<1x32xf32>
    %38 = vector.broadcast %37 : vector<1x32xf32> to vector<16x32xf32>
    %39 = arith.addf %36, %38 : vector<16x32xf32>
    %40 = vector.extract_strided_slice %31 {offsets = [0, 64], sizes = [16, 32], strides = [1, 1]} : vector<16x96xf32> to vector<16x32xf32>
    %41 = vector.extract_strided_slice %3 {offsets = [2, 0], sizes = [1, 32], strides = [1, 1]} : vector<15x32xf32> to vector<1x32xf32>
    %42 = vector.broadcast %41 : vector<1x32xf32> to vector<16x32xf32>
    %43 = arith.addf %40, %42 : vector<16x32xf32>
    %c0_14 = arith.constant 0 : index
    %c0_15 = arith.constant 0 : index
    %c0_16 = arith.constant 0 : index
    %c0_17 = arith.constant 0 : index
    %44 = vector.load %arg3[%c0_14, %c0_15, %c0_16, %c0_17] : memref<2x3x32x32xbf16, #tpu.memory_space<vmem>>, vector<1x1x32x32xbf16>
    %45 = vector.shape_cast %44 : vector<1x1x32x32xbf16> to vector<32x32xbf16>
    %46 = vector.extract_strided_slice %3 {offsets = [3, 0], sizes = [1, 32], strides = [1, 1]} : vector<15x32xf32> to vector<1x32xf32>
    %47 = vector.extract_strided_slice %35 {offsets = [0, 0], sizes = [8, 32], strides = [1, 1]} : vector<16x32xf32> to vector<8x32xf32>
    %48 = vector.extract_strided_slice %39 {offsets = [0, 0], sizes = [8, 32], strides = [1, 1]} : vector<16x32xf32> to vector<8x32xf32>
    %49 = vector.extract_strided_slice %43 {offsets = [0, 0], sizes = [8, 32], strides = [1, 1]} : vector<16x32xf32> to vector<8x32xf32>
    %50 = vector.extract_strided_slice %47 {offsets = [0, 0], sizes = [8, 8], strides = [1, 1]} : vector<8x32xf32> to vector<8x8xf32>
    %51 = arith.truncf %50 : vector<8x8xf32> to vector<8x8xbf16>
    %52 = vector.extract_strided_slice %48 {offsets = [0, 0], sizes = [8, 8], strides = [1, 1]} : vector<8x32xf32> to vector<8x8xf32>
    %53 = arith.truncf %52 : vector<8x8xf32> to vector<8x8xbf16>
    %54 = vector.extract_strided_slice %49 {offsets = [0, 0], sizes = [8, 8], strides = [1, 1]} : vector<8x32xf32> to vector<8x8xf32>
    %55 = arith.truncf %54 : vector<8x8xf32> to vector<8x8xbf16>
    %cst_18 = arith.constant dense<0.000000e+00> : vector<8x8xf32>
    %56 = tpu.matmul %51, %53, %cst_18 {dimension_numbers = #tpu.dot_dimension_numbers<[1], [1], [0], [0], [0, 0, 1, 0], [], []>} : vector<8x8xbf16>, vector<8x8xbf16>, vector<8x8xf32> -> vector<8x8xf32>
    %cst_19 = arith.constant dense<0xFF800000> : vector<8xf32>
    %57 = vector.multi_reduction <maximumf>, %56, %cst_19 [1] : vector<8x8xf32> to vector<8xf32>
    %58 = vector.shape_cast %57 : vector<8xf32> to vector<8x1xf32>
    %59 = vector.broadcast %58 : vector<8x1xf32> to vector<8x8xf32>
    %60 = arith.subf %56, %59 : vector<8x8xf32>
    %61 = math.exp %60 : vector<8x8xf32>
    %cst_20 = arith.constant dense<0.000000e+00> : vector<8xf32>
    %62 = vector.multi_reduction <add>, %61, %cst_20 [1] : vector<8x8xf32> to vector<8xf32>
    %63 = vector.shape_cast %62 : vector<8xf32> to vector<8x1xf32>
    %64 = tpu.reciprocal %63 {approx = true} : vector<8x1xf32> -> vector<8x1xf32>
    %65 = arith.truncf %61 : vector<8x8xf32> to vector<8x8xbf16>
    %cst_21 = arith.constant dense<0.000000e+00> : vector<8x8xf32>
    %66 = tpu.matmul %65, %55, %cst_21 {dimension_numbers = #tpu.dot_dimension_numbers<[1], [0], [0], [1], [0, 0, 1, 1], [], []>} : vector<8x8xbf16>, vector<8x8xbf16>, vector<8x8xf32> -> vector<8x8xf32>
    %67 = vector.broadcast %64 : vector<8x1xf32> to vector<8x8xf32>
    %68 = arith.mulf %66, %67 : vector<8x8xf32>
    %69 = vector.extract_strided_slice %47 {offsets = [0, 8], sizes = [8, 8], strides = [1, 1]} : vector<8x32xf32> to vector<8x8xf32>
    %70 = arith.truncf %69 : vector<8x8xf32> to vector<8x8xbf16>
    %71 = vector.extract_strided_slice %48 {offsets = [0, 8], sizes = [8, 8], strides = [1, 1]} : vector<8x32xf32> to vector<8x8xf32>
    %72 = arith.truncf %71 : vector<8x8xf32> to vector<8x8xbf16>
    %73 = vector.extract_strided_slice %49 {offsets = [0, 8], sizes = [8, 8], strides = [1, 1]} : vector<8x32xf32> to vector<8x8xf32>
    %74 = arith.truncf %73 : vector<8x8xf32> to vector<8x8xbf16>
    %cst_22 = arith.constant dense<0.000000e+00> : vector<8x8xf32>
    %75 = tpu.matmul %70, %72, %cst_22 {dimension_numbers = #tpu.dot_dimension_numbers<[1], [1], [0], [0], [0, 0, 1, 0], [], []>} : vector<8x8xbf16>, vector<8x8xbf16>, vector<8x8xf32> -> vector<8x8xf32>
    %cst_23 = arith.constant dense<0xFF800000> : vector<8xf32>
    %76 = vector.multi_reduction <maximumf>, %75, %cst_23 [1] : vector<8x8xf32> to vector<8xf32>
    %77 = vector.shape_cast %76 : vector<8xf32> to vector<8x1xf32>
    %78 = vector.broadcast %77 : vector<8x1xf32> to vector<8x8xf32>
    %79 = arith.subf %75, %78 : vector<8x8xf32>
    %80 = math.exp %79 : vector<8x8xf32>
    %cst_24 = arith.constant dense<0.000000e+00> : vector<8xf32>
    %81 = vector.multi_reduction <add>, %80, %cst_24 [1] : vector<8x8xf32> to vector<8xf32>
    %82 = vector.shape_cast %81 : vector<8xf32> to vector<8x1xf32>
    %83 = tpu.reciprocal %82 {approx = true} : vector<8x1xf32> -> vector<8x1xf32>
    %84 = arith.truncf %80 : vector<8x8xf32> to vector<8x8xbf16>
    %cst_25 = arith.constant dense<0.000000e+00> : vector<8x8xf32>
    %85 = tpu.matmul %84, %74, %cst_25 {dimension_numbers = #tpu.dot_dimension_numbers<[1], [0], [0], [1], [0, 0, 1, 1], [], []>} : vector<8x8xbf16>, vector<8x8xbf16>, vector<8x8xf32> -> vector<8x8xf32>
    %86 = vector.broadcast %83 : vector<8x1xf32> to vector<8x8xf32>
    %87 = arith.mulf %85, %86 : vector<8x8xf32>
    %88 = vector.extract_strided_slice %47 {offsets = [0, 16], sizes = [8, 8], strides = [1, 1]} : vector<8x32xf32> to vector<8x8xf32>
    %89 = arith.truncf %88 : vector<8x8xf32> to vector<8x8xbf16>
    %90 = vector.extract_strided_slice %48 {offsets = [0, 16], sizes = [8, 8], strides = [1, 1]} : vector<8x32xf32> to vector<8x8xf32>
    %91 = arith.truncf %90 : vector<8x8xf32> to vector<8x8xbf16>
    %92 = vector.extract_strided_slice %49 {offsets = [0, 16], sizes = [8, 8], strides = [1, 1]} : vector<8x32xf32> to vector<8x8xf32>
    %93 = arith.truncf %92 : vector<8x8xf32> to vector<8x8xbf16>
    %cst_26 = arith.constant dense<0.000000e+00> : vector<8x8xf32>
    %94 = tpu.matmul %89, %91, %cst_26 {dimension_numbers = #tpu.dot_dimension_numbers<[1], [1], [0], [0], [0, 0, 1, 0], [], []>} : vector<8x8xbf16>, vector<8x8xbf16>, vector<8x8xf32> -> vector<8x8xf32>
    %cst_27 = arith.constant dense<0xFF800000> : vector<8xf32>
    %95 = vector.multi_reduction <maximumf>, %94, %cst_27 [1] : vector<8x8xf32> to vector<8xf32>
    %96 = vector.shape_cast %95 : vector<8xf32> to vector<8x1xf32>
    %97 = vector.broadcast %96 : vector<8x1xf32> to vector<8x8xf32>
    %98 = arith.subf %94, %97 : vector<8x8xf32>
    %99 = math.exp %98 : vector<8x8xf32>
    %cst_28 = arith.constant dense<0.000000e+00> : vector<8xf32>
    %100 = vector.multi_reduction <add>, %99, %cst_28 [1] : vector<8x8xf32> to vector<8xf32>
    %101 = vector.shape_cast %100 : vector<8xf32> to vector<8x1xf32>
    %102 = tpu.reciprocal %101 {approx = true} : vector<8x1xf32> -> vector<8x1xf32>
    %103 = arith.truncf %99 : vector<8x8xf32> to vector<8x8xbf16>
    %cst_29 = arith.constant dense<0.000000e+00> : vector<8x8xf32>
    %104 = tpu.matmul %103, %93, %cst_29 {dimension_numbers = #tpu.dot_dimension_numbers<[1], [0], [0], [1], [0, 0, 1, 1], [], []>} : vector<8x8xbf16>, vector<8x8xbf16>, vector<8x8xf32> -> vector<8x8xf32>
    %105 = vector.broadcast %102 : vector<8x1xf32> to vector<8x8xf32>
    %106 = arith.mulf %104, %105 : vector<8x8xf32>
    %107 = vector.extract_strided_slice %47 {offsets = [0, 24], sizes = [8, 8], strides = [1, 1]} : vector<8x32xf32> to vector<8x8xf32>
    %108 = arith.truncf %107 : vector<8x8xf32> to vector<8x8xbf16>
    %109 = vector.extract_strided_slice %48 {offsets = [0, 24], sizes = [8, 8], strides = [1, 1]} : vector<8x32xf32> to vector<8x8xf32>
    %110 = arith.truncf %109 : vector<8x8xf32> to vector<8x8xbf16>
    %111 = vector.extract_strided_slice %49 {offsets = [0, 24], sizes = [8, 8], strides = [1, 1]} : vector<8x32xf32> to vector<8x8xf32>
    %112 = arith.truncf %111 : vector<8x8xf32> to vector<8x8xbf16>
    %cst_30 = arith.constant dense<0.000000e+00> : vector<8x8xf32>
    %113 = tpu.matmul %108, %110, %cst_30 {dimension_numbers = #tpu.dot_dimension_numbers<[1], [1], [0], [0], [0, 0, 1, 0], [], []>} : vector<8x8xbf16>, vector<8x8xbf16>, vector<8x8xf32> -> vector<8x8xf32>
    %cst_31 = arith.constant dense<0xFF800000> : vector<8xf32>
    %114 = vector.multi_reduction <maximumf>, %113, %cst_31 [1] : vector<8x8xf32> to vector<8xf32>
    %115 = vector.shape_cast %114 : vector<8xf32> to vector<8x1xf32>
    %116 = vector.broadcast %115 : vector<8x1xf32> to vector<8x8xf32>
    %117 = arith.subf %113, %116 : vector<8x8xf32>
    %118 = math.exp %117 : vector<8x8xf32>
    %cst_32 = arith.constant dense<0.000000e+00> : vector<8xf32>
    %119 = vector.multi_reduction <add>, %118, %cst_32 [1] : vector<8x8xf32> to vector<8xf32>
    %120 = vector.shape_cast %119 : vector<8xf32> to vector<8x1xf32>
    %121 = tpu.reciprocal %120 {approx = true} : vector<8x1xf32> -> vector<8x1xf32>
    %122 = arith.truncf %118 : vector<8x8xf32> to vector<8x8xbf16>
    %cst_33 = arith.constant dense<0.000000e+00> : vector<8x8xf32>
    %123 = tpu.matmul %122, %112, %cst_33 {dimension_numbers = #tpu.dot_dimension_numbers<[1], [0], [0], [1], [0, 0, 1, 1], [], []>} : vector<8x8xbf16>, vector<8x8xbf16>, vector<8x8xf32> -> vector<8x8xf32>
    %124 = vector.broadcast %121 : vector<8x1xf32> to vector<8x8xf32>
    %125 = arith.mulf %123, %124 : vector<8x8xf32>
    %126 = tpu.concatenate %68, %87, %106, %125 in 1 : vector<8x8xf32>, vector<8x8xf32>, vector<8x8xf32>, vector<8x8xf32> -> vector<8x32xf32>
    %127 = vector.extract_strided_slice %35 {offsets = [8, 0], sizes = [8, 32], strides = [1, 1]} : vector<16x32xf32> to vector<8x32xf32>
    %128 = vector.extract_strided_slice %39 {offsets = [8, 0], sizes = [8, 32], strides = [1, 1]} : vector<16x32xf32> to vector<8x32xf32>
    %129 = vector.extract_strided_slice %43 {offsets = [8, 0], sizes = [8, 32], strides = [1, 1]} : vector<16x32xf32> to vector<8x32xf32>
    %130 = vector.extract_strided_slice %127 {offsets = [0, 0], sizes = [8, 8], strides = [1, 1]} : vector<8x32xf32> to vector<8x8xf32>
    %131 = arith.truncf %130 : vector<8x8xf32> to vector<8x8xbf16>
    %132 = vector.extract_strided_slice %128 {offsets = [0, 0], sizes = [8, 8], strides = [1, 1]} : vector<8x32xf32> to vector<8x8xf32>
    %133 = arith.truncf %132 : vector<8x8xf32> to vector<8x8xbf16>
    %134 = vector.extract_strided_slice %129 {offsets = [0, 0], sizes = [8, 8], strides = [1, 1]} : vector<8x32xf32> to vector<8x8xf32>
    %135 = arith.truncf %134 : vector<8x8xf32> to vector<8x8xbf16>
    %cst_34 = arith.constant dense<0.000000e+00> : vector<8x8xf32>
    %136 = tpu.matmul %131, %133, %cst_34 {dimension_numbers = #tpu.dot_dimension_numbers<[1], [1], [0], [0], [0, 0, 1, 0], [], []>} : vector<8x8xbf16>, vector<8x8xbf16>, vector<8x8xf32> -> vector<8x8xf32>
    %cst_35 = arith.constant dense<0xFF800000> : vector<8xf32>
    %137 = vector.multi_reduction <maximumf>, %136, %cst_35 [1] : vector<8x8xf32> to vector<8xf32>
    %138 = vector.shape_cast %137 : vector<8xf32> to vector<8x1xf32>
    %139 = vector.broadcast %138 : vector<8x1xf32> to vector<8x8xf32>
    %140 = arith.subf %136, %139 : vector<8x8xf32>
    %141 = math.exp %140 : vector<8x8xf32>
    %cst_36 = arith.constant dense<0.000000e+00> : vector<8xf32>
    %142 = vector.multi_reduction <add>, %141, %cst_36 [1] : vector<8x8xf32> to vector<8xf32>
    %143 = vector.shape_cast %142 : vector<8xf32> to vector<8x1xf32>
    %144 = tpu.reciprocal %143 {approx = true} : vector<8x1xf32> -> vector<8x1xf32>
    %145 = arith.truncf %141 : vector<8x8xf32> to vector<8x8xbf16>
    %cst_37 = arith.constant dense<0.000000e+00> : vector<8x8xf32>
    %146 = tpu.matmul %145, %135, %cst_37 {dimension_numbers = #tpu.dot_dimension_numbers<[1], [0], [0], [1], [0, 0, 1, 1], [], []>} : vector<8x8xbf16>, vector<8x8xbf16>, vector<8x8xf32> -> vector<8x8xf32>
    %147 = vector.broadcast %144 : vector<8x1xf32> to vector<8x8xf32>
    %148 = arith.mulf %146, %147 : vector<8x8xf32>
    %149 = vector.extract_strided_slice %127 {offsets = [0, 8], sizes = [8, 8], strides = [1, 1]} : vector<8x32xf32> to vector<8x8xf32>
    %150 = arith.truncf %149 : vector<8x8xf32> to vector<8x8xbf16>
    %151 = vector.extract_strided_slice %128 {offsets = [0, 8], sizes = [8, 8], strides = [1, 1]} : vector<8x32xf32> to vector<8x8xf32>
    %152 = arith.truncf %151 : vector<8x8xf32> to vector<8x8xbf16>
    %153 = vector.extract_strided_slice %129 {offsets = [0, 8], sizes = [8, 8], strides = [1, 1]} : vector<8x32xf32> to vector<8x8xf32>
    %154 = arith.truncf %153 : vector<8x8xf32> to vector<8x8xbf16>
    %cst_38 = arith.constant dense<0.000000e+00> : vector<8x8xf32>
    %155 = tpu.matmul %150, %152, %cst_38 {dimension_numbers = #tpu.dot_dimension_numbers<[1], [1], [0], [0], [0, 0, 1, 0], [], []>} : vector<8x8xbf16>, vector<8x8xbf16>, vector<8x8xf32> -> vector<8x8xf32>
    %cst_39 = arith.constant dense<0xFF800000> : vector<8xf32>
    %156 = vector.multi_reduction <maximumf>, %155, %cst_39 [1] : vector<8x8xf32> to vector<8xf32>
    %157 = vector.shape_cast %156 : vector<8xf32> to vector<8x1xf32>
    %158 = vector.broadcast %157 : vector<8x1xf32> to vector<8x8xf32>
    %159 = arith.subf %155, %158 : vector<8x8xf32>
    %160 = math.exp %159 : vector<8x8xf32>
    %cst_40 = arith.constant dense<0.000000e+00> : vector<8xf32>
    %161 = vector.multi_reduction <add>, %160, %cst_40 [1] : vector<8x8xf32> to vector<8xf32>
    %162 = vector.shape_cast %161 : vector<8xf32> to vector<8x1xf32>
    %163 = tpu.reciprocal %162 {approx = true} : vector<8x1xf32> -> vector<8x1xf32>
    %164 = arith.truncf %160 : vector<8x8xf32> to vector<8x8xbf16>
    %cst_41 = arith.constant dense<0.000000e+00> : vector<8x8xf32>
    %165 = tpu.matmul %164, %154, %cst_41 {dimension_numbers = #tpu.dot_dimension_numbers<[1], [0], [0], [1], [0, 0, 1, 1], [], []>} : vector<8x8xbf16>, vector<8x8xbf16>, vector<8x8xf32> -> vector<8x8xf32>
    %166 = vector.broadcast %163 : vector<8x1xf32> to vector<8x8xf32>
    %167 = arith.mulf %165, %166 : vector<8x8xf32>
    %168 = vector.extract_strided_slice %127 {offsets = [0, 16], sizes = [8, 8], strides = [1, 1]} : vector<8x32xf32> to vector<8x8xf32>
    %169 = arith.truncf %168 : vector<8x8xf32> to vector<8x8xbf16>
    %170 = vector.extract_strided_slice %128 {offsets = [0, 16], sizes = [8, 8], strides = [1, 1]} : vector<8x32xf32> to vector<8x8xf32>
    %171 = arith.truncf %170 : vector<8x8xf32> to vector<8x8xbf16>
    %172 = vector.extract_strided_slice %129 {offsets = [0, 16], sizes = [8, 8], strides = [1, 1]} : vector<8x32xf32> to vector<8x8xf32>
    %173 = arith.truncf %172 : vector<8x8xf32> to vector<8x8xbf16>
    %cst_42 = arith.constant dense<0.000000e+00> : vector<8x8xf32>
    %174 = tpu.matmul %169, %171, %cst_42 {dimension_numbers = #tpu.dot_dimension_numbers<[1], [1], [0], [0], [0, 0, 1, 0], [], []>} : vector<8x8xbf16>, vector<8x8xbf16>, vector<8x8xf32> -> vector<8x8xf32>
    %cst_43 = arith.constant dense<0xFF800000> : vector<8xf32>
    %175 = vector.multi_reduction <maximumf>, %174, %cst_43 [1] : vector<8x8xf32> to vector<8xf32>
    %176 = vector.shape_cast %175 : vector<8xf32> to vector<8x1xf32>
    %177 = vector.broadcast %176 : vector<8x1xf32> to vector<8x8xf32>
    %178 = arith.subf %174, %177 : vector<8x8xf32>
    %179 = math.exp %178 : vector<8x8xf32>
    %cst_44 = arith.constant dense<0.000000e+00> : vector<8xf32>
    %180 = vector.multi_reduction <add>, %179, %cst_44 [1] : vector<8x8xf32> to vector<8xf32>
    %181 = vector.shape_cast %180 : vector<8xf32> to vector<8x1xf32>
    %182 = tpu.reciprocal %181 {approx = true} : vector<8x1xf32> -> vector<8x1xf32>
    %183 = arith.truncf %179 : vector<8x8xf32> to vector<8x8xbf16>
    %cst_45 = arith.constant dense<0.000000e+00> : vector<8x8xf32>
    %184 = tpu.matmul %183, %173, %cst_45 {dimension_numbers = #tpu.dot_dimension_numbers<[1], [0], [0], [1], [0, 0, 1, 1], [], []>} : vector<8x8xbf16>, vector<8x8xbf16>, vector<8x8xf32> -> vector<8x8xf32>
    %185 = vector.broadcast %182 : vector<8x1xf32> to vector<8x8xf32>
    %186 = arith.mulf %184, %185 : vector<8x8xf32>
    %187 = vector.extract_strided_slice %127 {offsets = [0, 24], sizes = [8, 8], strides = [1, 1]} : vector<8x32xf32> to vector<8x8xf32>
    %188 = arith.truncf %187 : vector<8x8xf32> to vector<8x8xbf16>
    %189 = vector.extract_strided_slice %128 {offsets = [0, 24], sizes = [8, 8], strides = [1, 1]} : vector<8x32xf32> to vector<8x8xf32>
    %190 = arith.truncf %189 : vector<8x8xf32> to vector<8x8xbf16>
    %191 = vector.extract_strided_slice %129 {offsets = [0, 24], sizes = [8, 8], strides = [1, 1]} : vector<8x32xf32> to vector<8x8xf32>
    %192 = arith.truncf %191 : vector<8x8xf32> to vector<8x8xbf16>
    %cst_46 = arith.constant dense<0.000000e+00> : vector<8x8xf32>
    %193 = tpu.matmul %188, %190, %cst_46 {dimension_numbers = #tpu.dot_dimension_numbers<[1], [1], [0], [0], [0, 0, 1, 0], [], []>} : vector<8x8xbf16>, vector<8x8xbf16>, vector<8x8xf32> -> vector<8x8xf32>
    %cst_47 = arith.constant dense<0xFF800000> : vector<8xf32>
    %194 = vector.multi_reduction <maximumf>, %193, %cst_47 [1] : vector<8x8xf32> to vector<8xf32>
    %195 = vector.shape_cast %194 : vector<8xf32> to vector<8x1xf32>
    %196 = vector.broadcast %195 : vector<8x1xf32> to vector<8x8xf32>
    %197 = arith.subf %193, %196 : vector<8x8xf32>
    %198 = math.exp %197 : vector<8x8xf32>
    %cst_48 = arith.constant dense<0.000000e+00> : vector<8xf32>
    %199 = vector.multi_reduction <add>, %198, %cst_48 [1] : vector<8x8xf32> to vector<8xf32>
    %200 = vector.shape_cast %199 : vector<8xf32> to vector<8x1xf32>
    %201 = tpu.reciprocal %200 {approx = true} : vector<8x1xf32> -> vector<8x1xf32>
    %202 = arith.truncf %198 : vector<8x8xf32> to vector<8x8xbf16>
    %cst_49 = arith.constant dense<0.000000e+00> : vector<8x8xf32>
    %203 = tpu.matmul %202, %192, %cst_49 {dimension_numbers = #tpu.dot_dimension_numbers<[1], [0], [0], [1], [0, 0, 1, 1], [], []>} : vector<8x8xbf16>, vector<8x8xbf16>, vector<8x8xf32> -> vector<8x8xf32>
    %204 = vector.broadcast %201 : vector<8x1xf32> to vector<8x8xf32>
    %205 = arith.mulf %203, %204 : vector<8x8xf32>
    %206 = tpu.concatenate %148, %167, %186, %205 in 1 : vector<8x8xf32>, vector<8x8xf32>, vector<8x8xf32>, vector<8x8xf32> -> vector<8x32xf32>
    %207 = tpu.concatenate %126, %206 in 0 : vector<8x32xf32>, vector<8x32xf32> -> vector<16x32xf32>
    %208 = arith.truncf %207 : vector<16x32xf32> to vector<16x32xbf16>
    %cst_50 = arith.constant dense<0.000000e+00> : vector<16x32xf32>
    %209 = tpu.matmul %208, %45, %cst_50 {dimension_numbers = #tpu.dot_dimension_numbers<[1], [0], [0], [1], [0, 0, 1, 1], [], []>} : vector<16x32xbf16>, vector<32x32xbf16>, vector<16x32xf32> -> vector<16x32xf32>
    %210 = vector.broadcast %46 : vector<1x32xf32> to vector<16x32xf32>
    %211 = arith.addf %209, %210 : vector<16x32xf32>
    %212 = arith.addf %0, %211 : vector<16x32xf32>
    %213 = vector.extract_strided_slice %3 {offsets = [11, 0], sizes = [1, 32], strides = [1, 1]} : vector<15x32xf32> to vector<1x32xf32>
    %214 = vector.extract_strided_slice %3 {offsets = [12, 0], sizes = [1, 32], strides = [1, 1]} : vector<15x32xf32> to vector<1x32xf32>
    %cst_51 = arith.constant dense<0.000000e+00> : vector<16xf32>
    %215 = vector.multi_reduction <add>, %212, %cst_51 [1] : vector<16x32xf32> to vector<16xf32>
    %216 = vector.shape_cast %215 : vector<16xf32> to vector<16x1xf32>
    %cst_52 = arith.constant 3.200000e+01 : f32
    %217 = vector.broadcast %cst_52 : f32 to vector<16x1xf32>
    %218 = arith.divf %216, %217 : vector<16x1xf32>
    %219 = vector.broadcast %218 : vector<16x1xf32> to vector<16x32xf32>
    %220 = arith.subf %212, %219 : vector<16x32xf32>
    %221 = arith.mulf %220, %220 : vector<16x32xf32>
    %cst_53 = arith.constant dense<0.000000e+00> : vector<16xf32>
    %222 = vector.multi_reduction <add>, %221, %cst_53 [1] : vector<16x32xf32> to vector<16xf32>
    %223 = vector.shape_cast %222 : vector<16xf32> to vector<16x1xf32>
    %cst_54 = arith.constant 3.200000e+01 : f32
    %224 = vector.broadcast %cst_54 : f32 to vector<16x1xf32>
    %225 = arith.divf %223, %224 : vector<16x1xf32>
    %226 = vector.broadcast %218 : vector<16x1xf32> to vector<16x32xf32>
    %227 = arith.subf %212, %226 : vector<16x32xf32>
    %cst_55 = arith.constant 9.99999974E-6 : f32
    %228 = vector.broadcast %cst_55 : f32 to vector<16x1xf32>
    %229 = arith.addf %225, %228 : vector<16x1xf32>
    %230 = math.rsqrt %229 : vector<16x1xf32>
    %231 = vector.broadcast %230 : vector<16x1xf32> to vector<16x32xf32>
    %232 = arith.mulf %227, %231 : vector<16x32xf32>
    %233 = vector.broadcast %213 : vector<1x32xf32> to vector<16x32xf32>
    %234 = arith.mulf %232, %233 : vector<16x32xf32>
    %235 = vector.broadcast %214 : vector<1x32xf32> to vector<16x32xf32>
    %236 = arith.addf %234, %235 : vector<16x32xf32>
    %237 = arith.truncf %236 : vector<16x32xf32> to vector<16x32xbf16>
    %c0_56 = arith.constant 0 : index
    %c1 = arith.constant 1 : index
    %c0_57 = arith.constant 0 : index
    %c0_58 = arith.constant 0 : index
    %238 = vector.load %arg3[%c0_56, %c1, %c0_57, %c0_58] : memref<2x3x32x32xbf16, #tpu.memory_space<vmem>>, vector<1x1x32x32xbf16>
    %239 = vector.shape_cast %238 : vector<1x1x32x32xbf16> to vector<32x32xbf16>
    %cst_59 = arith.constant dense<0.000000e+00> : vector<16x32xf32>
    %240 = tpu.matmul %237, %239, %cst_59 {dimension_numbers = #tpu.dot_dimension_numbers<[1], [0], [0], [1], [0, 0, 1, 1], [], []>} : vector<16x32xbf16>, vector<32x32xbf16>, vector<16x32xf32> -> vector<16x32xf32>
    %241 = vector.extract_strided_slice %3 {offsets = [4, 0], sizes = [1, 32], strides = [1, 1]} : vector<15x32xf32> to vector<1x32xf32>
    %242 = vector.broadcast %241 : vector<1x32xf32> to vector<16x32xf32>
    %243 = arith.addf %240, %242 : vector<16x32xf32>
    %c0_60 = arith.constant 0 : index
    %c0_61 = arith.constant 0 : index
    %c0_62 = arith.constant 0 : index
    %244 = vector.load %arg4[%c0_60, %c0_61, %c0_62] : memref<2x32x64xbf16, #tpu.memory_space<vmem>>, vector<1x32x64xbf16>
    %245 = vector.shape_cast %244 : vector<1x32x64xbf16> to vector<32x64xbf16>
    %cst_63 = arith.constant dense<0.000000e+00> : vector<24x64xf32>
    %246 = tpu.matmul %1, %245, %cst_63 {dimension_numbers = #tpu.dot_dimension_numbers<[1], [0], [0], [1], [0, 0, 1, 1], [], []>} : vector<24x32xbf16>, vector<32x64xbf16>, vector<24x64xf32> -> vector<24x64xf32>
    %247 = vector.extract_strided_slice %246 {offsets = [0, 0], sizes = [24, 32], strides = [1, 1]} : vector<24x64xf32> to vector<24x32xf32>
    %248 = vector.extract_strided_slice %3 {offsets = [5, 0], sizes = [1, 32], strides = [1, 1]} : vector<15x32xf32> to vector<1x32xf32>
    %249 = vector.broadcast %248 : vector<1x32xf32> to vector<24x32xf32>
    %250 = arith.addf %247, %249 : vector<24x32xf32>
    %251 = vector.extract_strided_slice %246 {offsets = [0, 32], sizes = [24, 32], strides = [1, 1]} : vector<24x64xf32> to vector<24x32xf32>
    %252 = vector.extract_strided_slice %3 {offsets = [6, 0], sizes = [1, 32], strides = [1, 1]} : vector<15x32xf32> to vector<1x32xf32>
    %253 = vector.broadcast %252 : vector<1x32xf32> to vector<24x32xf32>
    %254 = arith.addf %251, %253 : vector<24x32xf32>
    %c0_64 = arith.constant 0 : index
    %c2 = arith.constant 2 : index
    %c0_65 = arith.constant 0 : index
    %c0_66 = arith.constant 0 : index
    %255 = vector.load %arg3[%c0_64, %c2, %c0_65, %c0_66] : memref<2x3x32x32xbf16, #tpu.memory_space<vmem>>, vector<1x1x32x32xbf16>
    %256 = vector.shape_cast %255 : vector<1x1x32x32xbf16> to vector<32x32xbf16>
    %257 = vector.extract_strided_slice %3 {offsets = [7, 0], sizes = [1, 32], strides = [1, 1]} : vector<15x32xf32> to vector<1x32xf32>
    %258 = vector.extract_strided_slice %243 {offsets = [0, 0], sizes = [8, 32], strides = [1, 1]} : vector<16x32xf32> to vector<8x32xf32>
    %259 = vector.extract_strided_slice %250 {offsets = [0, 0], sizes = [12, 32], strides = [1, 1]} : vector<24x32xf32> to vector<12x32xf32>
    %260 = vector.extract_strided_slice %254 {offsets = [0, 0], sizes = [12, 32], strides = [1, 1]} : vector<24x32xf32> to vector<12x32xf32>
    %261 = vector.extract_strided_slice %258 {offsets = [0, 0], sizes = [8, 8], strides = [1, 1]} : vector<8x32xf32> to vector<8x8xf32>
    %262 = arith.truncf %261 : vector<8x8xf32> to vector<8x8xbf16>
    %263 = vector.extract_strided_slice %259 {offsets = [0, 0], sizes = [12, 8], strides = [1, 1]} : vector<12x32xf32> to vector<12x8xf32>
    %264 = arith.truncf %263 : vector<12x8xf32> to vector<12x8xbf16>
    %265 = vector.extract_strided_slice %260 {offsets = [0, 0], sizes = [12, 8], strides = [1, 1]} : vector<12x32xf32> to vector<12x8xf32>
    %266 = arith.truncf %265 : vector<12x8xf32> to vector<12x8xbf16>
    %cst_67 = arith.constant dense<0.000000e+00> : vector<8x12xf32>
    %267 = tpu.matmul %262, %264, %cst_67 {dimension_numbers = #tpu.dot_dimension_numbers<[1], [1], [0], [0], [0, 0, 1, 0], [], []>} : vector<8x8xbf16>, vector<12x8xbf16>, vector<8x12xf32> -> vector<8x12xf32>
    %cst_68 = arith.constant dense<0xFF800000> : vector<8xf32>
    %268 = vector.multi_reduction <maximumf>, %267, %cst_68 [1] : vector<8x12xf32> to vector<8xf32>
    %269 = vector.shape_cast %268 : vector<8xf32> to vector<8x1xf32>
    %270 = vector.broadcast %269 : vector<8x1xf32> to vector<8x12xf32>
    %271 = arith.subf %267, %270 : vector<8x12xf32>
    %272 = math.exp %271 : vector<8x12xf32>
    %cst_69 = arith.constant dense<0.000000e+00> : vector<8xf32>
    %273 = vector.multi_reduction <add>, %272, %cst_69 [1] : vector<8x12xf32> to vector<8xf32>
    %274 = vector.shape_cast %273 : vector<8xf32> to vector<8x1xf32>
    %275 = tpu.reciprocal %274 {approx = true} : vector<8x1xf32> -> vector<8x1xf32>
    %276 = arith.truncf %272 : vector<8x12xf32> to vector<8x12xbf16>
    %cst_70 = arith.constant dense<0.000000e+00> : vector<8x8xf32>
    %277 = tpu.matmul %276, %266, %cst_70 {dimension_numbers = #tpu.dot_dimension_numbers<[1], [0], [0], [1], [0, 0, 1, 1], [], []>} : vector<8x12xbf16>, vector<12x8xbf16>, vector<8x8xf32> -> vector<8x8xf32>
    %278 = vector.broadcast %275 : vector<8x1xf32> to vector<8x8xf32>
    %279 = arith.mulf %277, %278 : vector<8x8xf32>
    %280 = vector.extract_strided_slice %258 {offsets = [0, 8], sizes = [8, 8], strides = [1, 1]} : vector<8x32xf32> to vector<8x8xf32>
    %281 = arith.truncf %280 : vector<8x8xf32> to vector<8x8xbf16>
    %282 = vector.extract_strided_slice %259 {offsets = [0, 8], sizes = [12, 8], strides = [1, 1]} : vector<12x32xf32> to vector<12x8xf32>
    %283 = arith.truncf %282 : vector<12x8xf32> to vector<12x8xbf16>
    %284 = vector.extract_strided_slice %260 {offsets = [0, 8], sizes = [12, 8], strides = [1, 1]} : vector<12x32xf32> to vector<12x8xf32>
    %285 = arith.truncf %284 : vector<12x8xf32> to vector<12x8xbf16>
    %cst_71 = arith.constant dense<0.000000e+00> : vector<8x12xf32>
    %286 = tpu.matmul %281, %283, %cst_71 {dimension_numbers = #tpu.dot_dimension_numbers<[1], [1], [0], [0], [0, 0, 1, 0], [], []>} : vector<8x8xbf16>, vector<12x8xbf16>, vector<8x12xf32> -> vector<8x12xf32>
    %cst_72 = arith.constant dense<0xFF800000> : vector<8xf32>
    %287 = vector.multi_reduction <maximumf>, %286, %cst_72 [1] : vector<8x12xf32> to vector<8xf32>
    %288 = vector.shape_cast %287 : vector<8xf32> to vector<8x1xf32>
    %289 = vector.broadcast %288 : vector<8x1xf32> to vector<8x12xf32>
    %290 = arith.subf %286, %289 : vector<8x12xf32>
    %291 = math.exp %290 : vector<8x12xf32>
    %cst_73 = arith.constant dense<0.000000e+00> : vector<8xf32>
    %292 = vector.multi_reduction <add>, %291, %cst_73 [1] : vector<8x12xf32> to vector<8xf32>
    %293 = vector.shape_cast %292 : vector<8xf32> to vector<8x1xf32>
    %294 = tpu.reciprocal %293 {approx = true} : vector<8x1xf32> -> vector<8x1xf32>
    %295 = arith.truncf %291 : vector<8x12xf32> to vector<8x12xbf16>
    %cst_74 = arith.constant dense<0.000000e+00> : vector<8x8xf32>
    %296 = tpu.matmul %295, %285, %cst_74 {dimension_numbers = #tpu.dot_dimension_numbers<[1], [0], [0], [1], [0, 0, 1, 1], [], []>} : vector<8x12xbf16>, vector<12x8xbf16>, vector<8x8xf32> -> vector<8x8xf32>
    %297 = vector.broadcast %294 : vector<8x1xf32> to vector<8x8xf32>
    %298 = arith.mulf %296, %297 : vector<8x8xf32>
    %299 = vector.extract_strided_slice %258 {offsets = [0, 16], sizes = [8, 8], strides = [1, 1]} : vector<8x32xf32> to vector<8x8xf32>
    %300 = arith.truncf %299 : vector<8x8xf32> to vector<8x8xbf16>
    %301 = vector.extract_strided_slice %259 {offsets = [0, 16], sizes = [12, 8], strides = [1, 1]} : vector<12x32xf32> to vector<12x8xf32>
    %302 = arith.truncf %301 : vector<12x8xf32> to vector<12x8xbf16>
    %303 = vector.extract_strided_slice %260 {offsets = [0, 16], sizes = [12, 8], strides = [1, 1]} : vector<12x32xf32> to vector<12x8xf32>
    %304 = arith.truncf %303 : vector<12x8xf32> to vector<12x8xbf16>
    %cst_75 = arith.constant dense<0.000000e+00> : vector<8x12xf32>
    %305 = tpu.matmul %300, %302, %cst_75 {dimension_numbers = #tpu.dot_dimension_numbers<[1], [1], [0], [0], [0, 0, 1, 0], [], []>} : vector<8x8xbf16>, vector<12x8xbf16>, vector<8x12xf32> -> vector<8x12xf32>
    %cst_76 = arith.constant dense<0xFF800000> : vector<8xf32>
    %306 = vector.multi_reduction <maximumf>, %305, %cst_76 [1] : vector<8x12xf32> to vector<8xf32>
    %307 = vector.shape_cast %306 : vector<8xf32> to vector<8x1xf32>
    %308 = vector.broadcast %307 : vector<8x1xf32> to vector<8x12xf32>
    %309 = arith.subf %305, %308 : vector<8x12xf32>
    %310 = math.exp %309 : vector<8x12xf32>
    %cst_77 = arith.constant dense<0.000000e+00> : vector<8xf32>
    %311 = vector.multi_reduction <add>, %310, %cst_77 [1] : vector<8x12xf32> to vector<8xf32>
    %312 = vector.shape_cast %311 : vector<8xf32> to vector<8x1xf32>
    %313 = tpu.reciprocal %312 {approx = true} : vector<8x1xf32> -> vector<8x1xf32>
    %314 = arith.truncf %310 : vector<8x12xf32> to vector<8x12xbf16>
    %cst_78 = arith.constant dense<0.000000e+00> : vector<8x8xf32>
    %315 = tpu.matmul %314, %304, %cst_78 {dimension_numbers = #tpu.dot_dimension_numbers<[1], [0], [0], [1], [0, 0, 1, 1], [], []>} : vector<8x12xbf16>, vector<12x8xbf16>, vector<8x8xf32> -> vector<8x8xf32>
    %316 = vector.broadcast %313 : vector<8x1xf32> to vector<8x8xf32>
    %317 = arith.mulf %315, %316 : vector<8x8xf32>
    %318 = vector.extract_strided_slice %258 {offsets = [0, 24], sizes = [8, 8], strides = [1, 1]} : vector<8x32xf32> to vector<8x8xf32>
    %319 = arith.truncf %318 : vector<8x8xf32> to vector<8x8xbf16>
    %320 = vector.extract_strided_slice %259 {offsets = [0, 24], sizes = [12, 8], strides = [1, 1]} : vector<12x32xf32> to vector<12x8xf32>
    %321 = arith.truncf %320 : vector<12x8xf32> to vector<12x8xbf16>
    %322 = vector.extract_strided_slice %260 {offsets = [0, 24], sizes = [12, 8], strides = [1, 1]} : vector<12x32xf32> to vector<12x8xf32>
    %323 = arith.truncf %322 : vector<12x8xf32> to vector<12x8xbf16>
    %cst_79 = arith.constant dense<0.000000e+00> : vector<8x12xf32>
    %324 = tpu.matmul %319, %321, %cst_79 {dimension_numbers = #tpu.dot_dimension_numbers<[1], [1], [0], [0], [0, 0, 1, 0], [], []>} : vector<8x8xbf16>, vector<12x8xbf16>, vector<8x12xf32> -> vector<8x12xf32>
    %cst_80 = arith.constant dense<0xFF800000> : vector<8xf32>
    %325 = vector.multi_reduction <maximumf>, %324, %cst_80 [1] : vector<8x12xf32> to vector<8xf32>
    %326 = vector.shape_cast %325 : vector<8xf32> to vector<8x1xf32>
    %327 = vector.broadcast %326 : vector<8x1xf32> to vector<8x12xf32>
    %328 = arith.subf %324, %327 : vector<8x12xf32>
    %329 = math.exp %328 : vector<8x12xf32>
    %cst_81 = arith.constant dense<0.000000e+00> : vector<8xf32>
    %330 = vector.multi_reduction <add>, %329, %cst_81 [1] : vector<8x12xf32> to vector<8xf32>
    %331 = vector.shape_cast %330 : vector<8xf32> to vector<8x1xf32>
    %332 = tpu.reciprocal %331 {approx = true} : vector<8x1xf32> -> vector<8x1xf32>
    %333 = arith.truncf %329 : vector<8x12xf32> to vector<8x12xbf16>
    %cst_82 = arith.constant dense<0.000000e+00> : vector<8x8xf32>
    %334 = tpu.matmul %333, %323, %cst_82 {dimension_numbers = #tpu.dot_dimension_numbers<[1], [0], [0], [1], [0, 0, 1, 1], [], []>} : vector<8x12xbf16>, vector<12x8xbf16>, vector<8x8xf32> -> vector<8x8xf32>
    %335 = vector.broadcast %332 : vector<8x1xf32> to vector<8x8xf32>
    %336 = arith.mulf %334, %335 : vector<8x8xf32>
    %337 = tpu.concatenate %279, %298, %317, %336 in 1 : vector<8x8xf32>, vector<8x8xf32>, vector<8x8xf32>, vector<8x8xf32> -> vector<8x32xf32>
    %338 = vector.extract_strided_slice %243 {offsets = [8, 0], sizes = [8, 32], strides = [1, 1]} : vector<16x32xf32> to vector<8x32xf32>
    %339 = vector.extract_strided_slice %250 {offsets = [12, 0], sizes = [12, 32], strides = [1, 1]} : vector<24x32xf32> to vector<12x32xf32>
    %340 = vector.extract_strided_slice %254 {offsets = [12, 0], sizes = [12, 32], strides = [1, 1]} : vector<24x32xf32> to vector<12x32xf32>
    %341 = vector.extract_strided_slice %338 {offsets = [0, 0], sizes = [8, 8], strides = [1, 1]} : vector<8x32xf32> to vector<8x8xf32>
    %342 = arith.truncf %341 : vector<8x8xf32> to vector<8x8xbf16>
    %343 = vector.extract_strided_slice %339 {offsets = [0, 0], sizes = [12, 8], strides = [1, 1]} : vector<12x32xf32> to vector<12x8xf32>
    %344 = arith.truncf %343 : vector<12x8xf32> to vector<12x8xbf16>
    %345 = vector.extract_strided_slice %340 {offsets = [0, 0], sizes = [12, 8], strides = [1, 1]} : vector<12x32xf32> to vector<12x8xf32>
    %346 = arith.truncf %345 : vector<12x8xf32> to vector<12x8xbf16>
    %cst_83 = arith.constant dense<0.000000e+00> : vector<8x12xf32>
    %347 = tpu.matmul %342, %344, %cst_83 {dimension_numbers = #tpu.dot_dimension_numbers<[1], [1], [0], [0], [0, 0, 1, 0], [], []>} : vector<8x8xbf16>, vector<12x8xbf16>, vector<8x12xf32> -> vector<8x12xf32>
    %cst_84 = arith.constant dense<0xFF800000> : vector<8xf32>
    %348 = vector.multi_reduction <maximumf>, %347, %cst_84 [1] : vector<8x12xf32> to vector<8xf32>
    %349 = vector.shape_cast %348 : vector<8xf32> to vector<8x1xf32>
    %350 = vector.broadcast %349 : vector<8x1xf32> to vector<8x12xf32>
    %351 = arith.subf %347, %350 : vector<8x12xf32>
    %352 = math.exp %351 : vector<8x12xf32>
    %cst_85 = arith.constant dense<0.000000e+00> : vector<8xf32>
    %353 = vector.multi_reduction <add>, %352, %cst_85 [1] : vector<8x12xf32> to vector<8xf32>
    %354 = vector.shape_cast %353 : vector<8xf32> to vector<8x1xf32>
    %355 = tpu.reciprocal %354 {approx = true} : vector<8x1xf32> -> vector<8x1xf32>
    %356 = arith.truncf %352 : vector<8x12xf32> to vector<8x12xbf16>
    %cst_86 = arith.constant dense<0.000000e+00> : vector<8x8xf32>
    %357 = tpu.matmul %356, %346, %cst_86 {dimension_numbers = #tpu.dot_dimension_numbers<[1], [0], [0], [1], [0, 0, 1, 1], [], []>} : vector<8x12xbf16>, vector<12x8xbf16>, vector<8x8xf32> -> vector<8x8xf32>
    %358 = vector.broadcast %355 : vector<8x1xf32> to vector<8x8xf32>
    %359 = arith.mulf %357, %358 : vector<8x8xf32>
    %360 = vector.extract_strided_slice %338 {offsets = [0, 8], sizes = [8, 8], strides = [1, 1]} : vector<8x32xf32> to vector<8x8xf32>
    %361 = arith.truncf %360 : vector<8x8xf32> to vector<8x8xbf16>
    %362 = vector.extract_strided_slice %339 {offsets = [0, 8], sizes = [12, 8], strides = [1, 1]} : vector<12x32xf32> to vector<12x8xf32>
    %363 = arith.truncf %362 : vector<12x8xf32> to vector<12x8xbf16>
    %364 = vector.extract_strided_slice %340 {offsets = [0, 8], sizes = [12, 8], strides = [1, 1]} : vector<12x32xf32> to vector<12x8xf32>
    %365 = arith.truncf %364 : vector<12x8xf32> to vector<12x8xbf16>
    %cst_87 = arith.constant dense<0.000000e+00> : vector<8x12xf32>
    %366 = tpu.matmul %361, %363, %cst_87 {dimension_numbers = #tpu.dot_dimension_numbers<[1], [1], [0], [0], [0, 0, 1, 0], [], []>} : vector<8x8xbf16>, vector<12x8xbf16>, vector<8x12xf32> -> vector<8x12xf32>
    %cst_88 = arith.constant dense<0xFF800000> : vector<8xf32>
    %367 = vector.multi_reduction <maximumf>, %366, %cst_88 [1] : vector<8x12xf32> to vector<8xf32>
    %368 = vector.shape_cast %367 : vector<8xf32> to vector<8x1xf32>
    %369 = vector.broadcast %368 : vector<8x1xf32> to vector<8x12xf32>
    %370 = arith.subf %366, %369 : vector<8x12xf32>
    %371 = math.exp %370 : vector<8x12xf32>
    %cst_89 = arith.constant dense<0.000000e+00> : vector<8xf32>
    %372 = vector.multi_reduction <add>, %371, %cst_89 [1] : vector<8x12xf32> to vector<8xf32>
    %373 = vector.shape_cast %372 : vector<8xf32> to vector<8x1xf32>
    %374 = tpu.reciprocal %373 {approx = true} : vector<8x1xf32> -> vector<8x1xf32>
    %375 = arith.truncf %371 : vector<8x12xf32> to vector<8x12xbf16>
    %cst_90 = arith.constant dense<0.000000e+00> : vector<8x8xf32>
    %376 = tpu.matmul %375, %365, %cst_90 {dimension_numbers = #tpu.dot_dimension_numbers<[1], [0], [0], [1], [0, 0, 1, 1], [], []>} : vector<8x12xbf16>, vector<12x8xbf16>, vector<8x8xf32> -> vector<8x8xf32>
    %377 = vector.broadcast %374 : vector<8x1xf32> to vector<8x8xf32>
    %378 = arith.mulf %376, %377 : vector<8x8xf32>
    %379 = vector.extract_strided_slice %338 {offsets = [0, 16], sizes = [8, 8], strides = [1, 1]} : vector<8x32xf32> to vector<8x8xf32>
    %380 = arith.truncf %379 : vector<8x8xf32> to vector<8x8xbf16>
    %381 = vector.extract_strided_slice %339 {offsets = [0, 16], sizes = [12, 8], strides = [1, 1]} : vector<12x32xf32> to vector<12x8xf32>
    %382 = arith.truncf %381 : vector<12x8xf32> to vector<12x8xbf16>
    %383 = vector.extract_strided_slice %340 {offsets = [0, 16], sizes = [12, 8], strides = [1, 1]} : vector<12x32xf32> to vector<12x8xf32>
    %384 = arith.truncf %383 : vector<12x8xf32> to vector<12x8xbf16>
    %cst_91 = arith.constant dense<0.000000e+00> : vector<8x12xf32>
    %385 = tpu.matmul %380, %382, %cst_91 {dimension_numbers = #tpu.dot_dimension_numbers<[1], [1], [0], [0], [0, 0, 1, 0], [], []>} : vector<8x8xbf16>, vector<12x8xbf16>, vector<8x12xf32> -> vector<8x12xf32>
    %cst_92 = arith.constant dense<0xFF800000> : vector<8xf32>
    %386 = vector.multi_reduction <maximumf>, %385, %cst_92 [1] : vector<8x12xf32> to vector<8xf32>
    %387 = vector.shape_cast %386 : vector<8xf32> to vector<8x1xf32>
    %388 = vector.broadcast %387 : vector<8x1xf32> to vector<8x12xf32>
    %389 = arith.subf %385, %388 : vector<8x12xf32>
    %390 = math.exp %389 : vector<8x12xf32>
    %cst_93 = arith.constant dense<0.000000e+00> : vector<8xf32>
    %391 = vector.multi_reduction <add>, %390, %cst_93 [1] : vector<8x12xf32> to vector<8xf32>
    %392 = vector.shape_cast %391 : vector<8xf32> to vector<8x1xf32>
    %393 = tpu.reciprocal %392 {approx = true} : vector<8x1xf32> -> vector<8x1xf32>
    %394 = arith.truncf %390 : vector<8x12xf32> to vector<8x12xbf16>
    %cst_94 = arith.constant dense<0.000000e+00> : vector<8x8xf32>
    %395 = tpu.matmul %394, %384, %cst_94 {dimension_numbers = #tpu.dot_dimension_numbers<[1], [0], [0], [1], [0, 0, 1, 1], [], []>} : vector<8x12xbf16>, vector<12x8xbf16>, vector<8x8xf32> -> vector<8x8xf32>
    %396 = vector.broadcast %393 : vector<8x1xf32> to vector<8x8xf32>
    %397 = arith.mulf %395, %396 : vector<8x8xf32>
    %398 = vector.extract_strided_slice %338 {offsets = [0, 24], sizes = [8, 8], strides = [1, 1]} : vector<8x32xf32> to vector<8x8xf32>
    %399 = arith.truncf %398 : vector<8x8xf32> to vector<8x8xbf16>
    %400 = vector.extract_strided_slice %339 {offsets = [0, 24], sizes = [12, 8], strides = [1, 1]} : vector<12x32xf32> to vector<12x8xf32>
    %401 = arith.truncf %400 : vector<12x8xf32> to vector<12x8xbf16>
    %402 = vector.extract_strided_slice %340 {offsets = [0, 24], sizes = [12, 8], strides = [1, 1]} : vector<12x32xf32> to vector<12x8xf32>
    %403 = arith.truncf %402 : vector<12x8xf32> to vector<12x8xbf16>
    %cst_95 = arith.constant dense<0.000000e+00> : vector<8x12xf32>
    %404 = tpu.matmul %399, %401, %cst_95 {dimension_numbers = #tpu.dot_dimension_numbers<[1], [1], [0], [0], [0, 0, 1, 0], [], []>} : vector<8x8xbf16>, vector<12x8xbf16>, vector<8x12xf32> -> vector<8x12xf32>
    %cst_96 = arith.constant dense<0xFF800000> : vector<8xf32>
    %405 = vector.multi_reduction <maximumf>, %404, %cst_96 [1] : vector<8x12xf32> to vector<8xf32>
    %406 = vector.shape_cast %405 : vector<8xf32> to vector<8x1xf32>
    %407 = vector.broadcast %406 : vector<8x1xf32> to vector<8x12xf32>
    %408 = arith.subf %404, %407 : vector<8x12xf32>
    %409 = math.exp %408 : vector<8x12xf32>
    %cst_97 = arith.constant dense<0.000000e+00> : vector<8xf32>
    %410 = vector.multi_reduction <add>, %409, %cst_97 [1] : vector<8x12xf32> to vector<8xf32>
    %411 = vector.shape_cast %410 : vector<8xf32> to vector<8x1xf32>
    %412 = tpu.reciprocal %411 {approx = true} : vector<8x1xf32> -> vector<8x1xf32>
    %413 = arith.truncf %409 : vector<8x12xf32> to vector<8x12xbf16>
    %cst_98 = arith.constant dense<0.000000e+00> : vector<8x8xf32>
    %414 = tpu.matmul %413, %403, %cst_98 {dimension_numbers = #tpu.dot_dimension_numbers<[1], [0], [0], [1], [0, 0, 1, 1], [], []>} : vector<8x12xbf16>, vector<12x8xbf16>, vector<8x8xf32> -> vector<8x8xf32>
    %415 = vector.broadcast %412 : vector<8x1xf32> to vector<8x8xf32>
    %416 = arith.mulf %414, %415 : vector<8x8xf32>
    %417 = tpu.concatenate %359, %378, %397, %416 in 1 : vector<8x8xf32>, vector<8x8xf32>, vector<8x8xf32>, vector<8x8xf32> -> vector<8x32xf32>
    %418 = tpu.concatenate %337, %417 in 0 : vector<8x32xf32>, vector<8x32xf32> -> vector<16x32xf32>
    %419 = arith.truncf %418 : vector<16x32xf32> to vector<16x32xbf16>
    %cst_99 = arith.constant dense<0.000000e+00> : vector<16x32xf32>
    %420 = tpu.matmul %419, %256, %cst_99 {dimension_numbers = #tpu.dot_dimension_numbers<[1], [0], [0], [1], [0, 0, 1, 1], [], []>} : vector<16x32xbf16>, vector<32x32xbf16>, vector<16x32xf32> -> vector<16x32xf32>
    %421 = vector.broadcast %257 : vector<1x32xf32> to vector<16x32xf32>
    %422 = arith.addf %420, %421 : vector<16x32xf32>
    %423 = arith.addf %212, %422 : vector<16x32xf32>
    %424 = vector.extract_strided_slice %3 {offsets = [13, 0], sizes = [1, 32], strides = [1, 1]} : vector<15x32xf32> to vector<1x32xf32>
    %425 = vector.extract_strided_slice %3 {offsets = [14, 0], sizes = [1, 32], strides = [1, 1]} : vector<15x32xf32> to vector<1x32xf32>
    %cst_100 = arith.constant dense<0.000000e+00> : vector<16xf32>
    %426 = vector.multi_reduction <add>, %423, %cst_100 [1] : vector<16x32xf32> to vector<16xf32>
    %427 = vector.shape_cast %426 : vector<16xf32> to vector<16x1xf32>
    %cst_101 = arith.constant 3.200000e+01 : f32
    %428 = vector.broadcast %cst_101 : f32 to vector<16x1xf32>
    %429 = arith.divf %427, %428 : vector<16x1xf32>
    %430 = vector.broadcast %429 : vector<16x1xf32> to vector<16x32xf32>
    %431 = arith.subf %423, %430 : vector<16x32xf32>
    %432 = arith.mulf %431, %431 : vector<16x32xf32>
    %cst_102 = arith.constant dense<0.000000e+00> : vector<16xf32>
    %433 = vector.multi_reduction <add>, %432, %cst_102 [1] : vector<16x32xf32> to vector<16xf32>
    %434 = vector.shape_cast %433 : vector<16xf32> to vector<16x1xf32>
    %cst_103 = arith.constant 3.200000e+01 : f32
    %435 = vector.broadcast %cst_103 : f32 to vector<16x1xf32>
    %436 = arith.divf %434, %435 : vector<16x1xf32>
    %437 = vector.broadcast %429 : vector<16x1xf32> to vector<16x32xf32>
    %438 = arith.subf %423, %437 : vector<16x32xf32>
    %cst_104 = arith.constant 9.99999974E-6 : f32
    %439 = vector.broadcast %cst_104 : f32 to vector<16x1xf32>
    %440 = arith.addf %436, %439 : vector<16x1xf32>
    %441 = math.rsqrt %440 : vector<16x1xf32>
    %442 = vector.broadcast %441 : vector<16x1xf32> to vector<16x32xf32>
    %443 = arith.mulf %438, %442 : vector<16x32xf32>
    %444 = vector.broadcast %424 : vector<1x32xf32> to vector<16x32xf32>
    %445 = arith.mulf %443, %444 : vector<16x32xf32>
    %446 = vector.broadcast %425 : vector<1x32xf32> to vector<16x32xf32>
    %447 = arith.addf %445, %446 : vector<16x32xf32>
    %448 = arith.truncf %447 : vector<16x32xf32> to vector<16x32xbf16>
    %c0_105 = arith.constant 0 : index
    %c0_106 = arith.constant 0 : index
    %c0_107 = arith.constant 0 : index
    %449 = vector.load %arg5[%c0_105, %c0_106, %c0_107] : memref<2x32x64xbf16, #tpu.memory_space<vmem>>, vector<1x32x64xbf16>
    %450 = vector.shape_cast %449 : vector<1x32x64xbf16> to vector<32x64xbf16>
    %cst_108 = arith.constant dense<0.000000e+00> : vector<16x64xf32>
    %451 = tpu.matmul %448, %450, %cst_108 {dimension_numbers = #tpu.dot_dimension_numbers<[1], [0], [0], [1], [0, 0, 1, 1], [], []>} : vector<16x32xbf16>, vector<32x64xbf16>, vector<16x64xf32> -> vector<16x64xf32>
    %c0_109 = arith.constant 0 : index
    %c0_110 = arith.constant 0 : index
    %c0_111 = arith.constant 0 : index
    %452 = vector.load %arg9[%c0_109, %c0_110, %c0_111] : memref<2x1x64xf32, #tpu.memory_space<vmem>>, vector<1x1x64xf32>
    %453 = vector.shape_cast %452 : vector<1x1x64xf32> to vector<1x64xf32>
    %454 = vector.broadcast %453 : vector<1x64xf32> to vector<16x64xf32>
    %455 = arith.addf %451, %454 : vector<16x64xf32>
    %cst_112 = arith.constant 0.000000e+00 : f32
    %456 = vector.broadcast %cst_112 : f32 to vector<16x64xf32>
    %457 = arith.maximumf %455, %456 : vector<16x64xf32>
    %458 = arith.truncf %457 : vector<16x64xf32> to vector<16x64xbf16>
    %c0_113 = arith.constant 0 : index
    %c0_114 = arith.constant 0 : index
    %c0_115 = arith.constant 0 : index
    %459 = vector.load %arg6[%c0_113, %c0_114, %c0_115] : memref<2x64x32xbf16, #tpu.memory_space<vmem>>, vector<1x64x32xbf16>
    %460 = vector.shape_cast %459 : vector<1x64x32xbf16> to vector<64x32xbf16>
    %cst_116 = arith.constant dense<0.000000e+00> : vector<16x32xf32>
    %461 = tpu.matmul %458, %460, %cst_116 {dimension_numbers = #tpu.dot_dimension_numbers<[1], [0], [0], [1], [0, 0, 1, 1], [], []>} : vector<16x64xbf16>, vector<64x32xbf16>, vector<16x32xf32> -> vector<16x32xf32>
    %462 = arith.addf %423, %461 : vector<16x32xf32>
    %463 = vector.extract_strided_slice %3 {offsets = [8, 0], sizes = [1, 32], strides = [1, 1]} : vector<15x32xf32> to vector<1x32xf32>
    %464 = vector.broadcast %463 : vector<1x32xf32> to vector<16x32xf32>
    %465 = arith.addf %462, %464 : vector<16x32xf32>
    %c1_117 = arith.constant 1 : index
    %c0_118 = arith.constant 0 : index
    %c0_119 = arith.constant 0 : index
    %466 = vector.load %arg8[%c1_117, %c0_118, %c0_119] : memref<2x15x32xf32, #tpu.memory_space<vmem>>, vector<1x15x32xf32>
    %467 = vector.shape_cast %466 : vector<1x15x32xf32> to vector<15x32xf32>
    %468 = vector.extract_strided_slice %467 {offsets = [9, 0], sizes = [1, 32], strides = [1, 1]} : vector<15x32xf32> to vector<1x32xf32>
    %469 = vector.extract_strided_slice %467 {offsets = [10, 0], sizes = [1, 32], strides = [1, 1]} : vector<15x32xf32> to vector<1x32xf32>
    %cst_120 = arith.constant dense<0.000000e+00> : vector<16xf32>
    %470 = vector.multi_reduction <add>, %465, %cst_120 [1] : vector<16x32xf32> to vector<16xf32>
    %471 = vector.shape_cast %470 : vector<16xf32> to vector<16x1xf32>
    %cst_121 = arith.constant 3.200000e+01 : f32
    %472 = vector.broadcast %cst_121 : f32 to vector<16x1xf32>
    %473 = arith.divf %471, %472 : vector<16x1xf32>
    %474 = vector.broadcast %473 : vector<16x1xf32> to vector<16x32xf32>
    %475 = arith.subf %465, %474 : vector<16x32xf32>
    %476 = arith.mulf %475, %475 : vector<16x32xf32>
    %cst_122 = arith.constant dense<0.000000e+00> : vector<16xf32>
    %477 = vector.multi_reduction <add>, %476, %cst_122 [1] : vector<16x32xf32> to vector<16xf32>
    %478 = vector.shape_cast %477 : vector<16xf32> to vector<16x1xf32>
    %cst_123 = arith.constant 3.200000e+01 : f32
    %479 = vector.broadcast %cst_123 : f32 to vector<16x1xf32>
    %480 = arith.divf %478, %479 : vector<16x1xf32>
    %481 = vector.broadcast %473 : vector<16x1xf32> to vector<16x32xf32>
    %482 = arith.subf %465, %481 : vector<16x32xf32>
    %cst_124 = arith.constant 9.99999974E-6 : f32
    %483 = vector.broadcast %cst_124 : f32 to vector<16x1xf32>
    %484 = arith.addf %480, %483 : vector<16x1xf32>
    %485 = math.rsqrt %484 : vector<16x1xf32>
    %486 = vector.broadcast %485 : vector<16x1xf32> to vector<16x32xf32>
    %487 = arith.mulf %482, %486 : vector<16x32xf32>
    %488 = vector.broadcast %468 : vector<1x32xf32> to vector<16x32xf32>
    %489 = arith.mulf %487, %488 : vector<16x32xf32>
    %490 = vector.broadcast %469 : vector<1x32xf32> to vector<16x32xf32>
    %491 = arith.addf %489, %490 : vector<16x32xf32>
    %492 = arith.truncf %491 : vector<16x32xf32> to vector<16x32xbf16>
    %c1_125 = arith.constant 1 : index
    %c0_126 = arith.constant 0 : index
    %c0_127 = arith.constant 0 : index
    %493 = vector.load %arg2[%c1_125, %c0_126, %c0_127] : memref<2x32x96xbf16, #tpu.memory_space<vmem>>, vector<1x32x96xbf16>
    %494 = vector.shape_cast %493 : vector<1x32x96xbf16> to vector<32x96xbf16>
    %cst_128 = arith.constant dense<0.000000e+00> : vector<16x96xf32>
    %495 = tpu.matmul %492, %494, %cst_128 {dimension_numbers = #tpu.dot_dimension_numbers<[1], [0], [0], [1], [0, 0, 1, 1], [], []>} : vector<16x32xbf16>, vector<32x96xbf16>, vector<16x96xf32> -> vector<16x96xf32>
    %496 = vector.extract_strided_slice %495 {offsets = [0, 0], sizes = [16, 32], strides = [1, 1]} : vector<16x96xf32> to vector<16x32xf32>
    %497 = vector.extract_strided_slice %467 {offsets = [0, 0], sizes = [1, 32], strides = [1, 1]} : vector<15x32xf32> to vector<1x32xf32>
    %498 = vector.broadcast %497 : vector<1x32xf32> to vector<16x32xf32>
    %499 = arith.addf %496, %498 : vector<16x32xf32>
    %500 = vector.extract_strided_slice %495 {offsets = [0, 32], sizes = [16, 32], strides = [1, 1]} : vector<16x96xf32> to vector<16x32xf32>
    %501 = vector.extract_strided_slice %467 {offsets = [1, 0], sizes = [1, 32], strides = [1, 1]} : vector<15x32xf32> to vector<1x32xf32>
    %502 = vector.broadcast %501 : vector<1x32xf32> to vector<16x32xf32>
    %503 = arith.addf %500, %502 : vector<16x32xf32>
    %504 = vector.extract_strided_slice %495 {offsets = [0, 64], sizes = [16, 32], strides = [1, 1]} : vector<16x96xf32> to vector<16x32xf32>
    %505 = vector.extract_strided_slice %467 {offsets = [2, 0], sizes = [1, 32], strides = [1, 1]} : vector<15x32xf32> to vector<1x32xf32>
    %506 = vector.broadcast %505 : vector<1x32xf32> to vector<16x32xf32>
    %507 = arith.addf %504, %506 : vector<16x32xf32>
    %c1_129 = arith.constant 1 : index
    %c0_130 = arith.constant 0 : index
    %c0_131 = arith.constant 0 : index
    %c0_132 = arith.constant 0 : index
    %508 = vector.load %arg3[%c1_129, %c0_130, %c0_131, %c0_132] : memref<2x3x32x32xbf16, #tpu.memory_space<vmem>>, vector<1x1x32x32xbf16>
    %509 = vector.shape_cast %508 : vector<1x1x32x32xbf16> to vector<32x32xbf16>
    %510 = vector.extract_strided_slice %467 {offsets = [3, 0], sizes = [1, 32], strides = [1, 1]} : vector<15x32xf32> to vector<1x32xf32>
    %511 = vector.extract_strided_slice %499 {offsets = [0, 0], sizes = [8, 32], strides = [1, 1]} : vector<16x32xf32> to vector<8x32xf32>
    %512 = vector.extract_strided_slice %503 {offsets = [0, 0], sizes = [8, 32], strides = [1, 1]} : vector<16x32xf32> to vector<8x32xf32>
    %513 = vector.extract_strided_slice %507 {offsets = [0, 0], sizes = [8, 32], strides = [1, 1]} : vector<16x32xf32> to vector<8x32xf32>
    %514 = vector.extract_strided_slice %511 {offsets = [0, 0], sizes = [8, 8], strides = [1, 1]} : vector<8x32xf32> to vector<8x8xf32>
    %515 = arith.truncf %514 : vector<8x8xf32> to vector<8x8xbf16>
    %516 = vector.extract_strided_slice %512 {offsets = [0, 0], sizes = [8, 8], strides = [1, 1]} : vector<8x32xf32> to vector<8x8xf32>
    %517 = arith.truncf %516 : vector<8x8xf32> to vector<8x8xbf16>
    %518 = vector.extract_strided_slice %513 {offsets = [0, 0], sizes = [8, 8], strides = [1, 1]} : vector<8x32xf32> to vector<8x8xf32>
    %519 = arith.truncf %518 : vector<8x8xf32> to vector<8x8xbf16>
    %cst_133 = arith.constant dense<0.000000e+00> : vector<8x8xf32>
    %520 = tpu.matmul %515, %517, %cst_133 {dimension_numbers = #tpu.dot_dimension_numbers<[1], [1], [0], [0], [0, 0, 1, 0], [], []>} : vector<8x8xbf16>, vector<8x8xbf16>, vector<8x8xf32> -> vector<8x8xf32>
    %cst_134 = arith.constant dense<0xFF800000> : vector<8xf32>
    %521 = vector.multi_reduction <maximumf>, %520, %cst_134 [1] : vector<8x8xf32> to vector<8xf32>
    %522 = vector.shape_cast %521 : vector<8xf32> to vector<8x1xf32>
    %523 = vector.broadcast %522 : vector<8x1xf32> to vector<8x8xf32>
    %524 = arith.subf %520, %523 : vector<8x8xf32>
    %525 = math.exp %524 : vector<8x8xf32>
    %cst_135 = arith.constant dense<0.000000e+00> : vector<8xf32>
    %526 = vector.multi_reduction <add>, %525, %cst_135 [1] : vector<8x8xf32> to vector<8xf32>
    %527 = vector.shape_cast %526 : vector<8xf32> to vector<8x1xf32>
    %528 = tpu.reciprocal %527 {approx = true} : vector<8x1xf32> -> vector<8x1xf32>
    %529 = arith.truncf %525 : vector<8x8xf32> to vector<8x8xbf16>
    %cst_136 = arith.constant dense<0.000000e+00> : vector<8x8xf32>
    %530 = tpu.matmul %529, %519, %cst_136 {dimension_numbers = #tpu.dot_dimension_numbers<[1], [0], [0], [1], [0, 0, 1, 1], [], []>} : vector<8x8xbf16>, vector<8x8xbf16>, vector<8x8xf32> -> vector<8x8xf32>
    %531 = vector.broadcast %528 : vector<8x1xf32> to vector<8x8xf32>
    %532 = arith.mulf %530, %531 : vector<8x8xf32>
    %533 = vector.extract_strided_slice %511 {offsets = [0, 8], sizes = [8, 8], strides = [1, 1]} : vector<8x32xf32> to vector<8x8xf32>
    %534 = arith.truncf %533 : vector<8x8xf32> to vector<8x8xbf16>
    %535 = vector.extract_strided_slice %512 {offsets = [0, 8], sizes = [8, 8], strides = [1, 1]} : vector<8x32xf32> to vector<8x8xf32>
    %536 = arith.truncf %535 : vector<8x8xf32> to vector<8x8xbf16>
    %537 = vector.extract_strided_slice %513 {offsets = [0, 8], sizes = [8, 8], strides = [1, 1]} : vector<8x32xf32> to vector<8x8xf32>
    %538 = arith.truncf %537 : vector<8x8xf32> to vector<8x8xbf16>
    %cst_137 = arith.constant dense<0.000000e+00> : vector<8x8xf32>
    %539 = tpu.matmul %534, %536, %cst_137 {dimension_numbers = #tpu.dot_dimension_numbers<[1], [1], [0], [0], [0, 0, 1, 0], [], []>} : vector<8x8xbf16>, vector<8x8xbf16>, vector<8x8xf32> -> vector<8x8xf32>
    %cst_138 = arith.constant dense<0xFF800000> : vector<8xf32>
    %540 = vector.multi_reduction <maximumf>, %539, %cst_138 [1] : vector<8x8xf32> to vector<8xf32>
    %541 = vector.shape_cast %540 : vector<8xf32> to vector<8x1xf32>
    %542 = vector.broadcast %541 : vector<8x1xf32> to vector<8x8xf32>
    %543 = arith.subf %539, %542 : vector<8x8xf32>
    %544 = math.exp %543 : vector<8x8xf32>
    %cst_139 = arith.constant dense<0.000000e+00> : vector<8xf32>
    %545 = vector.multi_reduction <add>, %544, %cst_139 [1] : vector<8x8xf32> to vector<8xf32>
    %546 = vector.shape_cast %545 : vector<8xf32> to vector<8x1xf32>
    %547 = tpu.reciprocal %546 {approx = true} : vector<8x1xf32> -> vector<8x1xf32>
    %548 = arith.truncf %544 : vector<8x8xf32> to vector<8x8xbf16>
    %cst_140 = arith.constant dense<0.000000e+00> : vector<8x8xf32>
    %549 = tpu.matmul %548, %538, %cst_140 {dimension_numbers = #tpu.dot_dimension_numbers<[1], [0], [0], [1], [0, 0, 1, 1], [], []>} : vector<8x8xbf16>, vector<8x8xbf16>, vector<8x8xf32> -> vector<8x8xf32>
    %550 = vector.broadcast %547 : vector<8x1xf32> to vector<8x8xf32>
    %551 = arith.mulf %549, %550 : vector<8x8xf32>
    %552 = vector.extract_strided_slice %511 {offsets = [0, 16], sizes = [8, 8], strides = [1, 1]} : vector<8x32xf32> to vector<8x8xf32>
    %553 = arith.truncf %552 : vector<8x8xf32> to vector<8x8xbf16>
    %554 = vector.extract_strided_slice %512 {offsets = [0, 16], sizes = [8, 8], strides = [1, 1]} : vector<8x32xf32> to vector<8x8xf32>
    %555 = arith.truncf %554 : vector<8x8xf32> to vector<8x8xbf16>
    %556 = vector.extract_strided_slice %513 {offsets = [0, 16], sizes = [8, 8], strides = [1, 1]} : vector<8x32xf32> to vector<8x8xf32>
    %557 = arith.truncf %556 : vector<8x8xf32> to vector<8x8xbf16>
    %cst_141 = arith.constant dense<0.000000e+00> : vector<8x8xf32>
    %558 = tpu.matmul %553, %555, %cst_141 {dimension_numbers = #tpu.dot_dimension_numbers<[1], [1], [0], [0], [0, 0, 1, 0], [], []>} : vector<8x8xbf16>, vector<8x8xbf16>, vector<8x8xf32> -> vector<8x8xf32>
    %cst_142 = arith.constant dense<0xFF800000> : vector<8xf32>
    %559 = vector.multi_reduction <maximumf>, %558, %cst_142 [1] : vector<8x8xf32> to vector<8xf32>
    %560 = vector.shape_cast %559 : vector<8xf32> to vector<8x1xf32>
    %561 = vector.broadcast %560 : vector<8x1xf32> to vector<8x8xf32>
    %562 = arith.subf %558, %561 : vector<8x8xf32>
    %563 = math.exp %562 : vector<8x8xf32>
    %cst_143 = arith.constant dense<0.000000e+00> : vector<8xf32>
    %564 = vector.multi_reduction <add>, %563, %cst_143 [1] : vector<8x8xf32> to vector<8xf32>
    %565 = vector.shape_cast %564 : vector<8xf32> to vector<8x1xf32>
    %566 = tpu.reciprocal %565 {approx = true} : vector<8x1xf32> -> vector<8x1xf32>
    %567 = arith.truncf %563 : vector<8x8xf32> to vector<8x8xbf16>
    %cst_144 = arith.constant dense<0.000000e+00> : vector<8x8xf32>
    %568 = tpu.matmul %567, %557, %cst_144 {dimension_numbers = #tpu.dot_dimension_numbers<[1], [0], [0], [1], [0, 0, 1, 1], [], []>} : vector<8x8xbf16>, vector<8x8xbf16>, vector<8x8xf32> -> vector<8x8xf32>
    %569 = vector.broadcast %566 : vector<8x1xf32> to vector<8x8xf32>
    %570 = arith.mulf %568, %569 : vector<8x8xf32>
    %571 = vector.extract_strided_slice %511 {offsets = [0, 24], sizes = [8, 8], strides = [1, 1]} : vector<8x32xf32> to vector<8x8xf32>
    %572 = arith.truncf %571 : vector<8x8xf32> to vector<8x8xbf16>
    %573 = vector.extract_strided_slice %512 {offsets = [0, 24], sizes = [8, 8], strides = [1, 1]} : vector<8x32xf32> to vector<8x8xf32>
    %574 = arith.truncf %573 : vector<8x8xf32> to vector<8x8xbf16>
    %575 = vector.extract_strided_slice %513 {offsets = [0, 24], sizes = [8, 8], strides = [1, 1]} : vector<8x32xf32> to vector<8x8xf32>
    %576 = arith.truncf %575 : vector<8x8xf32> to vector<8x8xbf16>
    %cst_145 = arith.constant dense<0.000000e+00> : vector<8x8xf32>
    %577 = tpu.matmul %572, %574, %cst_145 {dimension_numbers = #tpu.dot_dimension_numbers<[1], [1], [0], [0], [0, 0, 1, 0], [], []>} : vector<8x8xbf16>, vector<8x8xbf16>, vector<8x8xf32> -> vector<8x8xf32>
    %cst_146 = arith.constant dense<0xFF800000> : vector<8xf32>
    %578 = vector.multi_reduction <maximumf>, %577, %cst_146 [1] : vector<8x8xf32> to vector<8xf32>
    %579 = vector.shape_cast %578 : vector<8xf32> to vector<8x1xf32>
    %580 = vector.broadcast %579 : vector<8x1xf32> to vector<8x8xf32>
    %581 = arith.subf %577, %580 : vector<8x8xf32>
    %582 = math.exp %581 : vector<8x8xf32>
    %cst_147 = arith.constant dense<0.000000e+00> : vector<8xf32>
    %583 = vector.multi_reduction <add>, %582, %cst_147 [1] : vector<8x8xf32> to vector<8xf32>
    %584 = vector.shape_cast %583 : vector<8xf32> to vector<8x1xf32>
    %585 = tpu.reciprocal %584 {approx = true} : vector<8x1xf32> -> vector<8x1xf32>
    %586 = arith.truncf %582 : vector<8x8xf32> to vector<8x8xbf16>
    %cst_148 = arith.constant dense<0.000000e+00> : vector<8x8xf32>
    %587 = tpu.matmul %586, %576, %cst_148 {dimension_numbers = #tpu.dot_dimension_numbers<[1], [0], [0], [1], [0, 0, 1, 1], [], []>} : vector<8x8xbf16>, vector<8x8xbf16>, vector<8x8xf32> -> vector<8x8xf32>
    %588 = vector.broadcast %585 : vector<8x1xf32> to vector<8x8xf32>
    %589 = arith.mulf %587, %588 : vector<8x8xf32>
    %590 = tpu.concatenate %532, %551, %570, %589 in 1 : vector<8x8xf32>, vector<8x8xf32>, vector<8x8xf32>, vector<8x8xf32> -> vector<8x32xf32>
    %591 = vector.extract_strided_slice %499 {offsets = [8, 0], sizes = [8, 32], strides = [1, 1]} : vector<16x32xf32> to vector<8x32xf32>
    %592 = vector.extract_strided_slice %503 {offsets = [8, 0], sizes = [8, 32], strides = [1, 1]} : vector<16x32xf32> to vector<8x32xf32>
    %593 = vector.extract_strided_slice %507 {offsets = [8, 0], sizes = [8, 32], strides = [1, 1]} : vector<16x32xf32> to vector<8x32xf32>
    %594 = vector.extract_strided_slice %591 {offsets = [0, 0], sizes = [8, 8], strides = [1, 1]} : vector<8x32xf32> to vector<8x8xf32>
    %595 = arith.truncf %594 : vector<8x8xf32> to vector<8x8xbf16>
    %596 = vector.extract_strided_slice %592 {offsets = [0, 0], sizes = [8, 8], strides = [1, 1]} : vector<8x32xf32> to vector<8x8xf32>
    %597 = arith.truncf %596 : vector<8x8xf32> to vector<8x8xbf16>
    %598 = vector.extract_strided_slice %593 {offsets = [0, 0], sizes = [8, 8], strides = [1, 1]} : vector<8x32xf32> to vector<8x8xf32>
    %599 = arith.truncf %598 : vector<8x8xf32> to vector<8x8xbf16>
    %cst_149 = arith.constant dense<0.000000e+00> : vector<8x8xf32>
    %600 = tpu.matmul %595, %597, %cst_149 {dimension_numbers = #tpu.dot_dimension_numbers<[1], [1], [0], [0], [0, 0, 1, 0], [], []>} : vector<8x8xbf16>, vector<8x8xbf16>, vector<8x8xf32> -> vector<8x8xf32>
    %cst_150 = arith.constant dense<0xFF800000> : vector<8xf32>
    %601 = vector.multi_reduction <maximumf>, %600, %cst_150 [1] : vector<8x8xf32> to vector<8xf32>
    %602 = vector.shape_cast %601 : vector<8xf32> to vector<8x1xf32>
    %603 = vector.broadcast %602 : vector<8x1xf32> to vector<8x8xf32>
    %604 = arith.subf %600, %603 : vector<8x8xf32>
    %605 = math.exp %604 : vector<8x8xf32>
    %cst_151 = arith.constant dense<0.000000e+00> : vector<8xf32>
    %606 = vector.multi_reduction <add>, %605, %cst_151 [1] : vector<8x8xf32> to vector<8xf32>
    %607 = vector.shape_cast %606 : vector<8xf32> to vector<8x1xf32>
    %608 = tpu.reciprocal %607 {approx = true} : vector<8x1xf32> -> vector<8x1xf32>
    %609 = arith.truncf %605 : vector<8x8xf32> to vector<8x8xbf16>
    %cst_152 = arith.constant dense<0.000000e+00> : vector<8x8xf32>
    %610 = tpu.matmul %609, %599, %cst_152 {dimension_numbers = #tpu.dot_dimension_numbers<[1], [0], [0], [1], [0, 0, 1, 1], [], []>} : vector<8x8xbf16>, vector<8x8xbf16>, vector<8x8xf32> -> vector<8x8xf32>
    %611 = vector.broadcast %608 : vector<8x1xf32> to vector<8x8xf32>
    %612 = arith.mulf %610, %611 : vector<8x8xf32>
    %613 = vector.extract_strided_slice %591 {offsets = [0, 8], sizes = [8, 8], strides = [1, 1]} : vector<8x32xf32> to vector<8x8xf32>
    %614 = arith.truncf %613 : vector<8x8xf32> to vector<8x8xbf16>
    %615 = vector.extract_strided_slice %592 {offsets = [0, 8], sizes = [8, 8], strides = [1, 1]} : vector<8x32xf32> to vector<8x8xf32>
    %616 = arith.truncf %615 : vector<8x8xf32> to vector<8x8xbf16>
    %617 = vector.extract_strided_slice %593 {offsets = [0, 8], sizes = [8, 8], strides = [1, 1]} : vector<8x32xf32> to vector<8x8xf32>
    %618 = arith.truncf %617 : vector<8x8xf32> to vector<8x8xbf16>
    %cst_153 = arith.constant dense<0.000000e+00> : vector<8x8xf32>
    %619 = tpu.matmul %614, %616, %cst_153 {dimension_numbers = #tpu.dot_dimension_numbers<[1], [1], [0], [0], [0, 0, 1, 0], [], []>} : vector<8x8xbf16>, vector<8x8xbf16>, vector<8x8xf32> -> vector<8x8xf32>
    %cst_154 = arith.constant dense<0xFF800000> : vector<8xf32>
    %620 = vector.multi_reduction <maximumf>, %619, %cst_154 [1] : vector<8x8xf32> to vector<8xf32>
    %621 = vector.shape_cast %620 : vector<8xf32> to vector<8x1xf32>
    %622 = vector.broadcast %621 : vector<8x1xf32> to vector<8x8xf32>
    %623 = arith.subf %619, %622 : vector<8x8xf32>
    %624 = math.exp %623 : vector<8x8xf32>
    %cst_155 = arith.constant dense<0.000000e+00> : vector<8xf32>
    %625 = vector.multi_reduction <add>, %624, %cst_155 [1] : vector<8x8xf32> to vector<8xf32>
    %626 = vector.shape_cast %625 : vector<8xf32> to vector<8x1xf32>
    %627 = tpu.reciprocal %626 {approx = true} : vector<8x1xf32> -> vector<8x1xf32>
    %628 = arith.truncf %624 : vector<8x8xf32> to vector<8x8xbf16>
    %cst_156 = arith.constant dense<0.000000e+00> : vector<8x8xf32>
    %629 = tpu.matmul %628, %618, %cst_156 {dimension_numbers = #tpu.dot_dimension_numbers<[1], [0], [0], [1], [0, 0, 1, 1], [], []>} : vector<8x8xbf16>, vector<8x8xbf16>, vector<8x8xf32> -> vector<8x8xf32>
    %630 = vector.broadcast %627 : vector<8x1xf32> to vector<8x8xf32>
    %631 = arith.mulf %629, %630 : vector<8x8xf32>
    %632 = vector.extract_strided_slice %591 {offsets = [0, 16], sizes = [8, 8], strides = [1, 1]} : vector<8x32xf32> to vector<8x8xf32>
    %633 = arith.truncf %632 : vector<8x8xf32> to vector<8x8xbf16>
    %634 = vector.extract_strided_slice %592 {offsets = [0, 16], sizes = [8, 8], strides = [1, 1]} : vector<8x32xf32> to vector<8x8xf32>
    %635 = arith.truncf %634 : vector<8x8xf32> to vector<8x8xbf16>
    %636 = vector.extract_strided_slice %593 {offsets = [0, 16], sizes = [8, 8], strides = [1, 1]} : vector<8x32xf32> to vector<8x8xf32>
    %637 = arith.truncf %636 : vector<8x8xf32> to vector<8x8xbf16>
    %cst_157 = arith.constant dense<0.000000e+00> : vector<8x8xf32>
    %638 = tpu.matmul %633, %635, %cst_157 {dimension_numbers = #tpu.dot_dimension_numbers<[1], [1], [0], [0], [0, 0, 1, 0], [], []>} : vector<8x8xbf16>, vector<8x8xbf16>, vector<8x8xf32> -> vector<8x8xf32>
    %cst_158 = arith.constant dense<0xFF800000> : vector<8xf32>
    %639 = vector.multi_reduction <maximumf>, %638, %cst_158 [1] : vector<8x8xf32> to vector<8xf32>
    %640 = vector.shape_cast %639 : vector<8xf32> to vector<8x1xf32>
    %641 = vector.broadcast %640 : vector<8x1xf32> to vector<8x8xf32>
    %642 = arith.subf %638, %641 : vector<8x8xf32>
    %643 = math.exp %642 : vector<8x8xf32>
    %cst_159 = arith.constant dense<0.000000e+00> : vector<8xf32>
    %644 = vector.multi_reduction <add>, %643, %cst_159 [1] : vector<8x8xf32> to vector<8xf32>
    %645 = vector.shape_cast %644 : vector<8xf32> to vector<8x1xf32>
    %646 = tpu.reciprocal %645 {approx = true} : vector<8x1xf32> -> vector<8x1xf32>
    %647 = arith.truncf %643 : vector<8x8xf32> to vector<8x8xbf16>
    %cst_160 = arith.constant dense<0.000000e+00> : vector<8x8xf32>
    %648 = tpu.matmul %647, %637, %cst_160 {dimension_numbers = #tpu.dot_dimension_numbers<[1], [0], [0], [1], [0, 0, 1, 1], [], []>} : vector<8x8xbf16>, vector<8x8xbf16>, vector<8x8xf32> -> vector<8x8xf32>
    %649 = vector.broadcast %646 : vector<8x1xf32> to vector<8x8xf32>
    %650 = arith.mulf %648, %649 : vector<8x8xf32>
    %651 = vector.extract_strided_slice %591 {offsets = [0, 24], sizes = [8, 8], strides = [1, 1]} : vector<8x32xf32> to vector<8x8xf32>
    %652 = arith.truncf %651 : vector<8x8xf32> to vector<8x8xbf16>
    %653 = vector.extract_strided_slice %592 {offsets = [0, 24], sizes = [8, 8], strides = [1, 1]} : vector<8x32xf32> to vector<8x8xf32>
    %654 = arith.truncf %653 : vector<8x8xf32> to vector<8x8xbf16>
    %655 = vector.extract_strided_slice %593 {offsets = [0, 24], sizes = [8, 8], strides = [1, 1]} : vector<8x32xf32> to vector<8x8xf32>
    %656 = arith.truncf %655 : vector<8x8xf32> to vector<8x8xbf16>
    %cst_161 = arith.constant dense<0.000000e+00> : vector<8x8xf32>
    %657 = tpu.matmul %652, %654, %cst_161 {dimension_numbers = #tpu.dot_dimension_numbers<[1], [1], [0], [0], [0, 0, 1, 0], [], []>} : vector<8x8xbf16>, vector<8x8xbf16>, vector<8x8xf32> -> vector<8x8xf32>
    %cst_162 = arith.constant dense<0xFF800000> : vector<8xf32>
    %658 = vector.multi_reduction <maximumf>, %657, %cst_162 [1] : vector<8x8xf32> to vector<8xf32>
    %659 = vector.shape_cast %658 : vector<8xf32> to vector<8x1xf32>
    %660 = vector.broadcast %659 : vector<8x1xf32> to vector<8x8xf32>
    %661 = arith.subf %657, %660 : vector<8x8xf32>
    %662 = math.exp %661 : vector<8x8xf32>
    %cst_163 = arith.constant dense<0.000000e+00> : vector<8xf32>
    %663 = vector.multi_reduction <add>, %662, %cst_163 [1] : vector<8x8xf32> to vector<8xf32>
    %664 = vector.shape_cast %663 : vector<8xf32> to vector<8x1xf32>
    %665 = tpu.reciprocal %664 {approx = true} : vector<8x1xf32> -> vector<8x1xf32>
    %666 = arith.truncf %662 : vector<8x8xf32> to vector<8x8xbf16>
    %cst_164 = arith.constant dense<0.000000e+00> : vector<8x8xf32>
    %667 = tpu.matmul %666, %656, %cst_164 {dimension_numbers = #tpu.dot_dimension_numbers<[1], [0], [0], [1], [0, 0, 1, 1], [], []>} : vector<8x8xbf16>, vector<8x8xbf16>, vector<8x8xf32> -> vector<8x8xf32>
    %668 = vector.broadcast %665 : vector<8x1xf32> to vector<8x8xf32>
    %669 = arith.mulf %667, %668 : vector<8x8xf32>
    %670 = tpu.concatenate %612, %631, %650, %669 in 1 : vector<8x8xf32>, vector<8x8xf32>, vector<8x8xf32>, vector<8x8xf32> -> vector<8x32xf32>
    %671 = tpu.concatenate %590, %670 in 0 : vector<8x32xf32>, vector<8x32xf32> -> vector<16x32xf32>
    %672 = arith.truncf %671 : vector<16x32xf32> to vector<16x32xbf16>
    %cst_165 = arith.constant dense<0.000000e+00> : vector<16x32xf32>
    %673 = tpu.matmul %672, %509, %cst_165 {dimension_numbers = #tpu.dot_dimension_numbers<[1], [0], [0], [1], [0, 0, 1, 1], [], []>} : vector<16x32xbf16>, vector<32x32xbf16>, vector<16x32xf32> -> vector<16x32xf32>
    %674 = vector.broadcast %510 : vector<1x32xf32> to vector<16x32xf32>
    %675 = arith.addf %673, %674 : vector<16x32xf32>
    %676 = arith.addf %465, %675 : vector<16x32xf32>
    %677 = vector.extract_strided_slice %467 {offsets = [11, 0], sizes = [1, 32], strides = [1, 1]} : vector<15x32xf32> to vector<1x32xf32>
    %678 = vector.extract_strided_slice %467 {offsets = [12, 0], sizes = [1, 32], strides = [1, 1]} : vector<15x32xf32> to vector<1x32xf32>
    %cst_166 = arith.constant dense<0.000000e+00> : vector<16xf32>
    %679 = vector.multi_reduction <add>, %676, %cst_166 [1] : vector<16x32xf32> to vector<16xf32>
    %680 = vector.shape_cast %679 : vector<16xf32> to vector<16x1xf32>
    %cst_167 = arith.constant 3.200000e+01 : f32
    %681 = vector.broadcast %cst_167 : f32 to vector<16x1xf32>
    %682 = arith.divf %680, %681 : vector<16x1xf32>
    %683 = vector.broadcast %682 : vector<16x1xf32> to vector<16x32xf32>
    %684 = arith.subf %676, %683 : vector<16x32xf32>
    %685 = arith.mulf %684, %684 : vector<16x32xf32>
    %cst_168 = arith.constant dense<0.000000e+00> : vector<16xf32>
    %686 = vector.multi_reduction <add>, %685, %cst_168 [1] : vector<16x32xf32> to vector<16xf32>
    %687 = vector.shape_cast %686 : vector<16xf32> to vector<16x1xf32>
    %cst_169 = arith.constant 3.200000e+01 : f32
    %688 = vector.broadcast %cst_169 : f32 to vector<16x1xf32>
    %689 = arith.divf %687, %688 : vector<16x1xf32>
    %690 = vector.broadcast %682 : vector<16x1xf32> to vector<16x32xf32>
    %691 = arith.subf %676, %690 : vector<16x32xf32>
    %cst_170 = arith.constant 9.99999974E-6 : f32
    %692 = vector.broadcast %cst_170 : f32 to vector<16x1xf32>
    %693 = arith.addf %689, %692 : vector<16x1xf32>
    %694 = math.rsqrt %693 : vector<16x1xf32>
    %695 = vector.broadcast %694 : vector<16x1xf32> to vector<16x32xf32>
    %696 = arith.mulf %691, %695 : vector<16x32xf32>
    %697 = vector.broadcast %677 : vector<1x32xf32> to vector<16x32xf32>
    %698 = arith.mulf %696, %697 : vector<16x32xf32>
    %699 = vector.broadcast %678 : vector<1x32xf32> to vector<16x32xf32>
    %700 = arith.addf %698, %699 : vector<16x32xf32>
    %701 = arith.truncf %700 : vector<16x32xf32> to vector<16x32xbf16>
    %c1_171 = arith.constant 1 : index
    %c1_172 = arith.constant 1 : index
    %c0_173 = arith.constant 0 : index
    %c0_174 = arith.constant 0 : index
    %702 = vector.load %arg3[%c1_171, %c1_172, %c0_173, %c0_174] : memref<2x3x32x32xbf16, #tpu.memory_space<vmem>>, vector<1x1x32x32xbf16>
    %703 = vector.shape_cast %702 : vector<1x1x32x32xbf16> to vector<32x32xbf16>
    %cst_175 = arith.constant dense<0.000000e+00> : vector<16x32xf32>
    %704 = tpu.matmul %701, %703, %cst_175 {dimension_numbers = #tpu.dot_dimension_numbers<[1], [0], [0], [1], [0, 0, 1, 1], [], []>} : vector<16x32xbf16>, vector<32x32xbf16>, vector<16x32xf32> -> vector<16x32xf32>
    %705 = vector.extract_strided_slice %467 {offsets = [4, 0], sizes = [1, 32], strides = [1, 1]} : vector<15x32xf32> to vector<1x32xf32>
    %706 = vector.broadcast %705 : vector<1x32xf32> to vector<16x32xf32>
    %707 = arith.addf %704, %706 : vector<16x32xf32>
    %c1_176 = arith.constant 1 : index
    %c0_177 = arith.constant 0 : index
    %c0_178 = arith.constant 0 : index
    %708 = vector.load %arg4[%c1_176, %c0_177, %c0_178] : memref<2x32x64xbf16, #tpu.memory_space<vmem>>, vector<1x32x64xbf16>
    %709 = vector.shape_cast %708 : vector<1x32x64xbf16> to vector<32x64xbf16>
    %cst_179 = arith.constant dense<0.000000e+00> : vector<24x64xf32>
    %710 = tpu.matmul %1, %709, %cst_179 {dimension_numbers = #tpu.dot_dimension_numbers<[1], [0], [0], [1], [0, 0, 1, 1], [], []>} : vector<24x32xbf16>, vector<32x64xbf16>, vector<24x64xf32> -> vector<24x64xf32>
    %711 = vector.extract_strided_slice %710 {offsets = [0, 0], sizes = [24, 32], strides = [1, 1]} : vector<24x64xf32> to vector<24x32xf32>
    %712 = vector.extract_strided_slice %467 {offsets = [5, 0], sizes = [1, 32], strides = [1, 1]} : vector<15x32xf32> to vector<1x32xf32>
    %713 = vector.broadcast %712 : vector<1x32xf32> to vector<24x32xf32>
    %714 = arith.addf %711, %713 : vector<24x32xf32>
    %715 = vector.extract_strided_slice %710 {offsets = [0, 32], sizes = [24, 32], strides = [1, 1]} : vector<24x64xf32> to vector<24x32xf32>
    %716 = vector.extract_strided_slice %467 {offsets = [6, 0], sizes = [1, 32], strides = [1, 1]} : vector<15x32xf32> to vector<1x32xf32>
    %717 = vector.broadcast %716 : vector<1x32xf32> to vector<24x32xf32>
    %718 = arith.addf %715, %717 : vector<24x32xf32>
    %c1_180 = arith.constant 1 : index
    %c2_181 = arith.constant 2 : index
    %c0_182 = arith.constant 0 : index
    %c0_183 = arith.constant 0 : index
    %719 = vector.load %arg3[%c1_180, %c2_181, %c0_182, %c0_183] : memref<2x3x32x32xbf16, #tpu.memory_space<vmem>>, vector<1x1x32x32xbf16>
    %720 = vector.shape_cast %719 : vector<1x1x32x32xbf16> to vector<32x32xbf16>
    %721 = vector.extract_strided_slice %467 {offsets = [7, 0], sizes = [1, 32], strides = [1, 1]} : vector<15x32xf32> to vector<1x32xf32>
    %722 = vector.extract_strided_slice %707 {offsets = [0, 0], sizes = [8, 32], strides = [1, 1]} : vector<16x32xf32> to vector<8x32xf32>
    %723 = vector.extract_strided_slice %714 {offsets = [0, 0], sizes = [12, 32], strides = [1, 1]} : vector<24x32xf32> to vector<12x32xf32>
    %724 = vector.extract_strided_slice %718 {offsets = [0, 0], sizes = [12, 32], strides = [1, 1]} : vector<24x32xf32> to vector<12x32xf32>
    %725 = vector.extract_strided_slice %722 {offsets = [0, 0], sizes = [8, 8], strides = [1, 1]} : vector<8x32xf32> to vector<8x8xf32>
    %726 = arith.truncf %725 : vector<8x8xf32> to vector<8x8xbf16>
    %727 = vector.extract_strided_slice %723 {offsets = [0, 0], sizes = [12, 8], strides = [1, 1]} : vector<12x32xf32> to vector<12x8xf32>
    %728 = arith.truncf %727 : vector<12x8xf32> to vector<12x8xbf16>
    %729 = vector.extract_strided_slice %724 {offsets = [0, 0], sizes = [12, 8], strides = [1, 1]} : vector<12x32xf32> to vector<12x8xf32>
    %730 = arith.truncf %729 : vector<12x8xf32> to vector<12x8xbf16>
    %cst_184 = arith.constant dense<0.000000e+00> : vector<8x12xf32>
    %731 = tpu.matmul %726, %728, %cst_184 {dimension_numbers = #tpu.dot_dimension_numbers<[1], [1], [0], [0], [0, 0, 1, 0], [], []>} : vector<8x8xbf16>, vector<12x8xbf16>, vector<8x12xf32> -> vector<8x12xf32>
    %cst_185 = arith.constant dense<0xFF800000> : vector<8xf32>
    %732 = vector.multi_reduction <maximumf>, %731, %cst_185 [1] : vector<8x12xf32> to vector<8xf32>
    %733 = vector.shape_cast %732 : vector<8xf32> to vector<8x1xf32>
    %734 = vector.broadcast %733 : vector<8x1xf32> to vector<8x12xf32>
    %735 = arith.subf %731, %734 : vector<8x12xf32>
    %736 = math.exp %735 : vector<8x12xf32>
    %cst_186 = arith.constant dense<0.000000e+00> : vector<8xf32>
    %737 = vector.multi_reduction <add>, %736, %cst_186 [1] : vector<8x12xf32> to vector<8xf32>
    %738 = vector.shape_cast %737 : vector<8xf32> to vector<8x1xf32>
    %739 = tpu.reciprocal %738 {approx = true} : vector<8x1xf32> -> vector<8x1xf32>
    %740 = arith.truncf %736 : vector<8x12xf32> to vector<8x12xbf16>
    %cst_187 = arith.constant dense<0.000000e+00> : vector<8x8xf32>
    %741 = tpu.matmul %740, %730, %cst_187 {dimension_numbers = #tpu.dot_dimension_numbers<[1], [0], [0], [1], [0, 0, 1, 1], [], []>} : vector<8x12xbf16>, vector<12x8xbf16>, vector<8x8xf32> -> vector<8x8xf32>
    %742 = vector.broadcast %739 : vector<8x1xf32> to vector<8x8xf32>
    %743 = arith.mulf %741, %742 : vector<8x8xf32>
    %744 = vector.extract_strided_slice %722 {offsets = [0, 8], sizes = [8, 8], strides = [1, 1]} : vector<8x32xf32> to vector<8x8xf32>
    %745 = arith.truncf %744 : vector<8x8xf32> to vector<8x8xbf16>
    %746 = vector.extract_strided_slice %723 {offsets = [0, 8], sizes = [12, 8], strides = [1, 1]} : vector<12x32xf32> to vector<12x8xf32>
    %747 = arith.truncf %746 : vector<12x8xf32> to vector<12x8xbf16>
    %748 = vector.extract_strided_slice %724 {offsets = [0, 8], sizes = [12, 8], strides = [1, 1]} : vector<12x32xf32> to vector<12x8xf32>
    %749 = arith.truncf %748 : vector<12x8xf32> to vector<12x8xbf16>
    %cst_188 = arith.constant dense<0.000000e+00> : vector<8x12xf32>
    %750 = tpu.matmul %745, %747, %cst_188 {dimension_numbers = #tpu.dot_dimension_numbers<[1], [1], [0], [0], [0, 0, 1, 0], [], []>} : vector<8x8xbf16>, vector<12x8xbf16>, vector<8x12xf32> -> vector<8x12xf32>
    %cst_189 = arith.constant dense<0xFF800000> : vector<8xf32>
    %751 = vector.multi_reduction <maximumf>, %750, %cst_189 [1] : vector<8x12xf32> to vector<8xf32>
    %752 = vector.shape_cast %751 : vector<8xf32> to vector<8x1xf32>
    %753 = vector.broadcast %752 : vector<8x1xf32> to vector<8x12xf32>
    %754 = arith.subf %750, %753 : vector<8x12xf32>
    %755 = math.exp %754 : vector<8x12xf32>
    %cst_190 = arith.constant dense<0.000000e+00> : vector<8xf32>
    %756 = vector.multi_reduction <add>, %755, %cst_190 [1] : vector<8x12xf32> to vector<8xf32>
    %757 = vector.shape_cast %756 : vector<8xf32> to vector<8x1xf32>
    %758 = tpu.reciprocal %757 {approx = true} : vector<8x1xf32> -> vector<8x1xf32>
    %759 = arith.truncf %755 : vector<8x12xf32> to vector<8x12xbf16>
    %cst_191 = arith.constant dense<0.000000e+00> : vector<8x8xf32>
    %760 = tpu.matmul %759, %749, %cst_191 {dimension_numbers = #tpu.dot_dimension_numbers<[1], [0], [0], [1], [0, 0, 1, 1], [], []>} : vector<8x12xbf16>, vector<12x8xbf16>, vector<8x8xf32> -> vector<8x8xf32>
    %761 = vector.broadcast %758 : vector<8x1xf32> to vector<8x8xf32>
    %762 = arith.mulf %760, %761 : vector<8x8xf32>
    %763 = vector.extract_strided_slice %722 {offsets = [0, 16], sizes = [8, 8], strides = [1, 1]} : vector<8x32xf32> to vector<8x8xf32>
    %764 = arith.truncf %763 : vector<8x8xf32> to vector<8x8xbf16>
    %765 = vector.extract_strided_slice %723 {offsets = [0, 16], sizes = [12, 8], strides = [1, 1]} : vector<12x32xf32> to vector<12x8xf32>
    %766 = arith.truncf %765 : vector<12x8xf32> to vector<12x8xbf16>
    %767 = vector.extract_strided_slice %724 {offsets = [0, 16], sizes = [12, 8], strides = [1, 1]} : vector<12x32xf32> to vector<12x8xf32>
    %768 = arith.truncf %767 : vector<12x8xf32> to vector<12x8xbf16>
    %cst_192 = arith.constant dense<0.000000e+00> : vector<8x12xf32>
    %769 = tpu.matmul %764, %766, %cst_192 {dimension_numbers = #tpu.dot_dimension_numbers<[1], [1], [0], [0], [0, 0, 1, 0], [], []>} : vector<8x8xbf16>, vector<12x8xbf16>, vector<8x12xf32> -> vector<8x12xf32>
    %cst_193 = arith.constant dense<0xFF800000> : vector<8xf32>
    %770 = vector.multi_reduction <maximumf>, %769, %cst_193 [1] : vector<8x12xf32> to vector<8xf32>
    %771 = vector.shape_cast %770 : vector<8xf32> to vector<8x1xf32>
    %772 = vector.broadcast %771 : vector<8x1xf32> to vector<8x12xf32>
    %773 = arith.subf %769, %772 : vector<8x12xf32>
    %774 = math.exp %773 : vector<8x12xf32>
    %cst_194 = arith.constant dense<0.000000e+00> : vector<8xf32>
    %775 = vector.multi_reduction <add>, %774, %cst_194 [1] : vector<8x12xf32> to vector<8xf32>
    %776 = vector.shape_cast %775 : vector<8xf32> to vector<8x1xf32>
    %777 = tpu.reciprocal %776 {approx = true} : vector<8x1xf32> -> vector<8x1xf32>
    %778 = arith.truncf %774 : vector<8x12xf32> to vector<8x12xbf16>
    %cst_195 = arith.constant dense<0.000000e+00> : vector<8x8xf32>
    %779 = tpu.matmul %778, %768, %cst_195 {dimension_numbers = #tpu.dot_dimension_numbers<[1], [0], [0], [1], [0, 0, 1, 1], [], []>} : vector<8x12xbf16>, vector<12x8xbf16>, vector<8x8xf32> -> vector<8x8xf32>
    %780 = vector.broadcast %777 : vector<8x1xf32> to vector<8x8xf32>
    %781 = arith.mulf %779, %780 : vector<8x8xf32>
    %782 = vector.extract_strided_slice %722 {offsets = [0, 24], sizes = [8, 8], strides = [1, 1]} : vector<8x32xf32> to vector<8x8xf32>
    %783 = arith.truncf %782 : vector<8x8xf32> to vector<8x8xbf16>
    %784 = vector.extract_strided_slice %723 {offsets = [0, 24], sizes = [12, 8], strides = [1, 1]} : vector<12x32xf32> to vector<12x8xf32>
    %785 = arith.truncf %784 : vector<12x8xf32> to vector<12x8xbf16>
    %786 = vector.extract_strided_slice %724 {offsets = [0, 24], sizes = [12, 8], strides = [1, 1]} : vector<12x32xf32> to vector<12x8xf32>
    %787 = arith.truncf %786 : vector<12x8xf32> to vector<12x8xbf16>
    %cst_196 = arith.constant dense<0.000000e+00> : vector<8x12xf32>
    %788 = tpu.matmul %783, %785, %cst_196 {dimension_numbers = #tpu.dot_dimension_numbers<[1], [1], [0], [0], [0, 0, 1, 0], [], []>} : vector<8x8xbf16>, vector<12x8xbf16>, vector<8x12xf32> -> vector<8x12xf32>
    %cst_197 = arith.constant dense<0xFF800000> : vector<8xf32>
    %789 = vector.multi_reduction <maximumf>, %788, %cst_197 [1] : vector<8x12xf32> to vector<8xf32>
    %790 = vector.shape_cast %789 : vector<8xf32> to vector<8x1xf32>
    %791 = vector.broadcast %790 : vector<8x1xf32> to vector<8x12xf32>
    %792 = arith.subf %788, %791 : vector<8x12xf32>
    %793 = math.exp %792 : vector<8x12xf32>
    %cst_198 = arith.constant dense<0.000000e+00> : vector<8xf32>
    %794 = vector.multi_reduction <add>, %793, %cst_198 [1] : vector<8x12xf32> to vector<8xf32>
    %795 = vector.shape_cast %794 : vector<8xf32> to vector<8x1xf32>
    %796 = tpu.reciprocal %795 {approx = true} : vector<8x1xf32> -> vector<8x1xf32>
    %797 = arith.truncf %793 : vector<8x12xf32> to vector<8x12xbf16>
    %cst_199 = arith.constant dense<0.000000e+00> : vector<8x8xf32>
    %798 = tpu.matmul %797, %787, %cst_199 {dimension_numbers = #tpu.dot_dimension_numbers<[1], [0], [0], [1], [0, 0, 1, 1], [], []>} : vector<8x12xbf16>, vector<12x8xbf16>, vector<8x8xf32> -> vector<8x8xf32>
    %799 = vector.broadcast %796 : vector<8x1xf32> to vector<8x8xf32>
    %800 = arith.mulf %798, %799 : vector<8x8xf32>
    %801 = tpu.concatenate %743, %762, %781, %800 in 1 : vector<8x8xf32>, vector<8x8xf32>, vector<8x8xf32>, vector<8x8xf32> -> vector<8x32xf32>
    %802 = vector.extract_strided_slice %707 {offsets = [8, 0], sizes = [8, 32], strides = [1, 1]} : vector<16x32xf32> to vector<8x32xf32>
    %803 = vector.extract_strided_slice %714 {offsets = [12, 0], sizes = [12, 32], strides = [1, 1]} : vector<24x32xf32> to vector<12x32xf32>
    %804 = vector.extract_strided_slice %718 {offsets = [12, 0], sizes = [12, 32], strides = [1, 1]} : vector<24x32xf32> to vector<12x32xf32>
    %805 = vector.extract_strided_slice %802 {offsets = [0, 0], sizes = [8, 8], strides = [1, 1]} : vector<8x32xf32> to vector<8x8xf32>
    %806 = arith.truncf %805 : vector<8x8xf32> to vector<8x8xbf16>
    %807 = vector.extract_strided_slice %803 {offsets = [0, 0], sizes = [12, 8], strides = [1, 1]} : vector<12x32xf32> to vector<12x8xf32>
    %808 = arith.truncf %807 : vector<12x8xf32> to vector<12x8xbf16>
    %809 = vector.extract_strided_slice %804 {offsets = [0, 0], sizes = [12, 8], strides = [1, 1]} : vector<12x32xf32> to vector<12x8xf32>
    %810 = arith.truncf %809 : vector<12x8xf32> to vector<12x8xbf16>
    %cst_200 = arith.constant dense<0.000000e+00> : vector<8x12xf32>
    %811 = tpu.matmul %806, %808, %cst_200 {dimension_numbers = #tpu.dot_dimension_numbers<[1], [1], [0], [0], [0, 0, 1, 0], [], []>} : vector<8x8xbf16>, vector<12x8xbf16>, vector<8x12xf32> -> vector<8x12xf32>
    %cst_201 = arith.constant dense<0xFF800000> : vector<8xf32>
    %812 = vector.multi_reduction <maximumf>, %811, %cst_201 [1] : vector<8x12xf32> to vector<8xf32>
    %813 = vector.shape_cast %812 : vector<8xf32> to vector<8x1xf32>
    %814 = vector.broadcast %813 : vector<8x1xf32> to vector<8x12xf32>
    %815 = arith.subf %811, %814 : vector<8x12xf32>
    %816 = math.exp %815 : vector<8x12xf32>
    %cst_202 = arith.constant dense<0.000000e+00> : vector<8xf32>
    %817 = vector.multi_reduction <add>, %816, %cst_202 [1] : vector<8x12xf32> to vector<8xf32>
    %818 = vector.shape_cast %817 : vector<8xf32> to vector<8x1xf32>
    %819 = tpu.reciprocal %818 {approx = true} : vector<8x1xf32> -> vector<8x1xf32>
    %820 = arith.truncf %816 : vector<8x12xf32> to vector<8x12xbf16>
    %cst_203 = arith.constant dense<0.000000e+00> : vector<8x8xf32>
    %821 = tpu.matmul %820, %810, %cst_203 {dimension_numbers = #tpu.dot_dimension_numbers<[1], [0], [0], [1], [0, 0, 1, 1], [], []>} : vector<8x12xbf16>, vector<12x8xbf16>, vector<8x8xf32> -> vector<8x8xf32>
    %822 = vector.broadcast %819 : vector<8x1xf32> to vector<8x8xf32>
    %823 = arith.mulf %821, %822 : vector<8x8xf32>
    %824 = vector.extract_strided_slice %802 {offsets = [0, 8], sizes = [8, 8], strides = [1, 1]} : vector<8x32xf32> to vector<8x8xf32>
    %825 = arith.truncf %824 : vector<8x8xf32> to vector<8x8xbf16>
    %826 = vector.extract_strided_slice %803 {offsets = [0, 8], sizes = [12, 8], strides = [1, 1]} : vector<12x32xf32> to vector<12x8xf32>
    %827 = arith.truncf %826 : vector<12x8xf32> to vector<12x8xbf16>
    %828 = vector.extract_strided_slice %804 {offsets = [0, 8], sizes = [12, 8], strides = [1, 1]} : vector<12x32xf32> to vector<12x8xf32>
    %829 = arith.truncf %828 : vector<12x8xf32> to vector<12x8xbf16>
    %cst_204 = arith.constant dense<0.000000e+00> : vector<8x12xf32>
    %830 = tpu.matmul %825, %827, %cst_204 {dimension_numbers = #tpu.dot_dimension_numbers<[1], [1], [0], [0], [0, 0, 1, 0], [], []>} : vector<8x8xbf16>, vector<12x8xbf16>, vector<8x12xf32> -> vector<8x12xf32>
    %cst_205 = arith.constant dense<0xFF800000> : vector<8xf32>
    %831 = vector.multi_reduction <maximumf>, %830, %cst_205 [1] : vector<8x12xf32> to vector<8xf32>
    %832 = vector.shape_cast %831 : vector<8xf32> to vector<8x1xf32>
    %833 = vector.broadcast %832 : vector<8x1xf32> to vector<8x12xf32>
    %834 = arith.subf %830, %833 : vector<8x12xf32>
    %835 = math.exp %834 : vector<8x12xf32>
    %cst_206 = arith.constant dense<0.000000e+00> : vector<8xf32>
    %836 = vector.multi_reduction <add>, %835, %cst_206 [1] : vector<8x12xf32> to vector<8xf32>
    %837 = vector.shape_cast %836 : vector<8xf32> to vector<8x1xf32>
    %838 = tpu.reciprocal %837 {approx = true} : vector<8x1xf32> -> vector<8x1xf32>
    %839 = arith.truncf %835 : vector<8x12xf32> to vector<8x12xbf16>
    %cst_207 = arith.constant dense<0.000000e+00> : vector<8x8xf32>
    %840 = tpu.matmul %839, %829, %cst_207 {dimension_numbers = #tpu.dot_dimension_numbers<[1], [0], [0], [1], [0, 0, 1, 1], [], []>} : vector<8x12xbf16>, vector<12x8xbf16>, vector<8x8xf32> -> vector<8x8xf32>
    %841 = vector.broadcast %838 : vector<8x1xf32> to vector<8x8xf32>
    %842 = arith.mulf %840, %841 : vector<8x8xf32>
    %843 = vector.extract_strided_slice %802 {offsets = [0, 16], sizes = [8, 8], strides = [1, 1]} : vector<8x32xf32> to vector<8x8xf32>
    %844 = arith.truncf %843 : vector<8x8xf32> to vector<8x8xbf16>
    %845 = vector.extract_strided_slice %803 {offsets = [0, 16], sizes = [12, 8], strides = [1, 1]} : vector<12x32xf32> to vector<12x8xf32>
    %846 = arith.truncf %845 : vector<12x8xf32> to vector<12x8xbf16>
    %847 = vector.extract_strided_slice %804 {offsets = [0, 16], sizes = [12, 8], strides = [1, 1]} : vector<12x32xf32> to vector<12x8xf32>
    %848 = arith.truncf %847 : vector<12x8xf32> to vector<12x8xbf16>
    %cst_208 = arith.constant dense<0.000000e+00> : vector<8x12xf32>
    %849 = tpu.matmul %844, %846, %cst_208 {dimension_numbers = #tpu.dot_dimension_numbers<[1], [1], [0], [0], [0, 0, 1, 0], [], []>} : vector<8x8xbf16>, vector<12x8xbf16>, vector<8x12xf32> -> vector<8x12xf32>
    %cst_209 = arith.constant dense<0xFF800000> : vector<8xf32>
    %850 = vector.multi_reduction <maximumf>, %849, %cst_209 [1] : vector<8x12xf32> to vector<8xf32>
    %851 = vector.shape_cast %850 : vector<8xf32> to vector<8x1xf32>
    %852 = vector.broadcast %851 : vector<8x1xf32> to vector<8x12xf32>
    %853 = arith.subf %849, %852 : vector<8x12xf32>
    %854 = math.exp %853 : vector<8x12xf32>
    %cst_210 = arith.constant dense<0.000000e+00> : vector<8xf32>
    %855 = vector.multi_reduction <add>, %854, %cst_210 [1] : vector<8x12xf32> to vector<8xf32>
    %856 = vector.shape_cast %855 : vector<8xf32> to vector<8x1xf32>
    %857 = tpu.reciprocal %856 {approx = true} : vector<8x1xf32> -> vector<8x1xf32>
    %858 = arith.truncf %854 : vector<8x12xf32> to vector<8x12xbf16>
    %cst_211 = arith.constant dense<0.000000e+00> : vector<8x8xf32>
    %859 = tpu.matmul %858, %848, %cst_211 {dimension_numbers = #tpu.dot_dimension_numbers<[1], [0], [0], [1], [0, 0, 1, 1], [], []>} : vector<8x12xbf16>, vector<12x8xbf16>, vector<8x8xf32> -> vector<8x8xf32>
    %860 = vector.broadcast %857 : vector<8x1xf32> to vector<8x8xf32>
    %861 = arith.mulf %859, %860 : vector<8x8xf32>
    %862 = vector.extract_strided_slice %802 {offsets = [0, 24], sizes = [8, 8], strides = [1, 1]} : vector<8x32xf32> to vector<8x8xf32>
    %863 = arith.truncf %862 : vector<8x8xf32> to vector<8x8xbf16>
    %864 = vector.extract_strided_slice %803 {offsets = [0, 24], sizes = [12, 8], strides = [1, 1]} : vector<12x32xf32> to vector<12x8xf32>
    %865 = arith.truncf %864 : vector<12x8xf32> to vector<12x8xbf16>
    %866 = vector.extract_strided_slice %804 {offsets = [0, 24], sizes = [12, 8], strides = [1, 1]} : vector<12x32xf32> to vector<12x8xf32>
    %867 = arith.truncf %866 : vector<12x8xf32> to vector<12x8xbf16>
    %cst_212 = arith.constant dense<0.000000e+00> : vector<8x12xf32>
    %868 = tpu.matmul %863, %865, %cst_212 {dimension_numbers = #tpu.dot_dimension_numbers<[1], [1], [0], [0], [0, 0, 1, 0], [], []>} : vector<8x8xbf16>, vector<12x8xbf16>, vector<8x12xf32> -> vector<8x12xf32>
    %cst_213 = arith.constant dense<0xFF800000> : vector<8xf32>
    %869 = vector.multi_reduction <maximumf>, %868, %cst_213 [1] : vector<8x12xf32> to vector<8xf32>
    %870 = vector.shape_cast %869 : vector<8xf32> to vector<8x1xf32>
    %871 = vector.broadcast %870 : vector<8x1xf32> to vector<8x12xf32>
    %872 = arith.subf %868, %871 : vector<8x12xf32>
    %873 = math.exp %872 : vector<8x12xf32>
    %cst_214 = arith.constant dense<0.000000e+00> : vector<8xf32>
    %874 = vector.multi_reduction <add>, %873, %cst_214 [1] : vector<8x12xf32> to vector<8xf32>
    %875 = vector.shape_cast %874 : vector<8xf32> to vector<8x1xf32>
    %876 = tpu.reciprocal %875 {approx = true} : vector<8x1xf32> -> vector<8x1xf32>
    %877 = arith.truncf %873 : vector<8x12xf32> to vector<8x12xbf16>
    %cst_215 = arith.constant dense<0.000000e+00> : vector<8x8xf32>
    %878 = tpu.matmul %877, %867, %cst_215 {dimension_numbers = #tpu.dot_dimension_numbers<[1], [0], [0], [1], [0, 0, 1, 1], [], []>} : vector<8x12xbf16>, vector<12x8xbf16>, vector<8x8xf32> -> vector<8x8xf32>
    %879 = vector.broadcast %876 : vector<8x1xf32> to vector<8x8xf32>
    %880 = arith.mulf %878, %879 : vector<8x8xf32>
    %881 = tpu.concatenate %823, %842, %861, %880 in 1 : vector<8x8xf32>, vector<8x8xf32>, vector<8x8xf32>, vector<8x8xf32> -> vector<8x32xf32>
    %882 = tpu.concatenate %801, %881 in 0 : vector<8x32xf32>, vector<8x32xf32> -> vector<16x32xf32>
    %883 = arith.truncf %882 : vector<16x32xf32> to vector<16x32xbf16>
    %cst_216 = arith.constant dense<0.000000e+00> : vector<16x32xf32>
    %884 = tpu.matmul %883, %720, %cst_216 {dimension_numbers = #tpu.dot_dimension_numbers<[1], [0], [0], [1], [0, 0, 1, 1], [], []>} : vector<16x32xbf16>, vector<32x32xbf16>, vector<16x32xf32> -> vector<16x32xf32>
    %885 = vector.broadcast %721 : vector<1x32xf32> to vector<16x32xf32>
    %886 = arith.addf %884, %885 : vector<16x32xf32>
    %887 = arith.addf %676, %886 : vector<16x32xf32>
    %888 = vector.extract_strided_slice %467 {offsets = [13, 0], sizes = [1, 32], strides = [1, 1]} : vector<15x32xf32> to vector<1x32xf32>
    %889 = vector.extract_strided_slice %467 {offsets = [14, 0], sizes = [1, 32], strides = [1, 1]} : vector<15x32xf32> to vector<1x32xf32>
    %cst_217 = arith.constant dense<0.000000e+00> : vector<16xf32>
    %890 = vector.multi_reduction <add>, %887, %cst_217 [1] : vector<16x32xf32> to vector<16xf32>
    %891 = vector.shape_cast %890 : vector<16xf32> to vector<16x1xf32>
    %cst_218 = arith.constant 3.200000e+01 : f32
    %892 = vector.broadcast %cst_218 : f32 to vector<16x1xf32>
    %893 = arith.divf %891, %892 : vector<16x1xf32>
    %894 = vector.broadcast %893 : vector<16x1xf32> to vector<16x32xf32>
    %895 = arith.subf %887, %894 : vector<16x32xf32>
    %896 = arith.mulf %895, %895 : vector<16x32xf32>
    %cst_219 = arith.constant dense<0.000000e+00> : vector<16xf32>
    %897 = vector.multi_reduction <add>, %896, %cst_219 [1] : vector<16x32xf32> to vector<16xf32>
    %898 = vector.shape_cast %897 : vector<16xf32> to vector<16x1xf32>
    %cst_220 = arith.constant 3.200000e+01 : f32
    %899 = vector.broadcast %cst_220 : f32 to vector<16x1xf32>
    %900 = arith.divf %898, %899 : vector<16x1xf32>
    %901 = vector.broadcast %893 : vector<16x1xf32> to vector<16x32xf32>
    %902 = arith.subf %887, %901 : vector<16x32xf32>
    %cst_221 = arith.constant 9.99999974E-6 : f32
    %903 = vector.broadcast %cst_221 : f32 to vector<16x1xf32>
    %904 = arith.addf %900, %903 : vector<16x1xf32>
    %905 = math.rsqrt %904 : vector<16x1xf32>
    %906 = vector.broadcast %905 : vector<16x1xf32> to vector<16x32xf32>
    %907 = arith.mulf %902, %906 : vector<16x32xf32>
    %908 = vector.broadcast %888 : vector<1x32xf32> to vector<16x32xf32>
    %909 = arith.mulf %907, %908 : vector<16x32xf32>
    %910 = vector.broadcast %889 : vector<1x32xf32> to vector<16x32xf32>
    %911 = arith.addf %909, %910 : vector<16x32xf32>
    %912 = arith.truncf %911 : vector<16x32xf32> to vector<16x32xbf16>
    %c1_222 = arith.constant 1 : index
    %c0_223 = arith.constant 0 : index
    %c0_224 = arith.constant 0 : index
    %913 = vector.load %arg5[%c1_222, %c0_223, %c0_224] : memref<2x32x64xbf16, #tpu.memory_space<vmem>>, vector<1x32x64xbf16>
    %914 = vector.shape_cast %913 : vector<1x32x64xbf16> to vector<32x64xbf16>
    %cst_225 = arith.constant dense<0.000000e+00> : vector<16x64xf32>
    %915 = tpu.matmul %912, %914, %cst_225 {dimension_numbers = #tpu.dot_dimension_numbers<[1], [0], [0], [1], [0, 0, 1, 1], [], []>} : vector<16x32xbf16>, vector<32x64xbf16>, vector<16x64xf32> -> vector<16x64xf32>
    %c1_226 = arith.constant 1 : index
    %c0_227 = arith.constant 0 : index
    %c0_228 = arith.constant 0 : index
    %916 = vector.load %arg9[%c1_226, %c0_227, %c0_228] : memref<2x1x64xf32, #tpu.memory_space<vmem>>, vector<1x1x64xf32>
    %917 = vector.shape_cast %916 : vector<1x1x64xf32> to vector<1x64xf32>
    %918 = vector.broadcast %917 : vector<1x64xf32> to vector<16x64xf32>
    %919 = arith.addf %915, %918 : vector<16x64xf32>
    %cst_229 = arith.constant 0.000000e+00 : f32
    %920 = vector.broadcast %cst_229 : f32 to vector<16x64xf32>
    %921 = arith.maximumf %919, %920 : vector<16x64xf32>
    %922 = arith.truncf %921 : vector<16x64xf32> to vector<16x64xbf16>
    %c1_230 = arith.constant 1 : index
    %c0_231 = arith.constant 0 : index
    %c0_232 = arith.constant 0 : index
    %923 = vector.load %arg6[%c1_230, %c0_231, %c0_232] : memref<2x64x32xbf16, #tpu.memory_space<vmem>>, vector<1x64x32xbf16>
    %924 = vector.shape_cast %923 : vector<1x64x32xbf16> to vector<64x32xbf16>
    %cst_233 = arith.constant dense<0.000000e+00> : vector<16x32xf32>
    %925 = tpu.matmul %922, %924, %cst_233 {dimension_numbers = #tpu.dot_dimension_numbers<[1], [0], [0], [1], [0, 0, 1, 1], [], []>} : vector<16x64xbf16>, vector<64x32xbf16>, vector<16x32xf32> -> vector<16x32xf32>
    %926 = arith.addf %887, %925 : vector<16x32xf32>
    %927 = vector.extract_strided_slice %467 {offsets = [8, 0], sizes = [1, 32], strides = [1, 1]} : vector<15x32xf32> to vector<1x32xf32>
    %928 = vector.broadcast %927 : vector<1x32xf32> to vector<16x32xf32>
    %929 = arith.addf %926, %928 : vector<16x32xf32>
    %c0_234 = arith.constant 0 : index
    %c0_235 = arith.constant 0 : index
    %930 = vector.load %arg10[%c0_234, %c0_235] : memref<2x32xf32, #tpu.memory_space<vmem>>, vector<2x32xf32>
    %931 = vector.extract_strided_slice %930 {offsets = [0, 0], sizes = [1, 32], strides = [1, 1]} : vector<2x32xf32> to vector<1x32xf32>
    %932 = vector.extract_strided_slice %930 {offsets = [1, 0], sizes = [1, 32], strides = [1, 1]} : vector<2x32xf32> to vector<1x32xf32>
    %cst_236 = arith.constant dense<0.000000e+00> : vector<16xf32>
    %933 = vector.multi_reduction <add>, %929, %cst_236 [1] : vector<16x32xf32> to vector<16xf32>
    %934 = vector.shape_cast %933 : vector<16xf32> to vector<16x1xf32>
    %cst_237 = arith.constant 3.200000e+01 : f32
    %935 = vector.broadcast %cst_237 : f32 to vector<16x1xf32>
    %936 = arith.divf %934, %935 : vector<16x1xf32>
    %937 = vector.broadcast %936 : vector<16x1xf32> to vector<16x32xf32>
    %938 = arith.subf %929, %937 : vector<16x32xf32>
    %939 = arith.mulf %938, %938 : vector<16x32xf32>
    %cst_238 = arith.constant dense<0.000000e+00> : vector<16xf32>
    %940 = vector.multi_reduction <add>, %939, %cst_238 [1] : vector<16x32xf32> to vector<16xf32>
    %941 = vector.shape_cast %940 : vector<16xf32> to vector<16x1xf32>
    %cst_239 = arith.constant 3.200000e+01 : f32
    %942 = vector.broadcast %cst_239 : f32 to vector<16x1xf32>
    %943 = arith.divf %941, %942 : vector<16x1xf32>
    %944 = vector.broadcast %936 : vector<16x1xf32> to vector<16x32xf32>
    %945 = arith.subf %929, %944 : vector<16x32xf32>
    %cst_240 = arith.constant 9.99999974E-6 : f32
    %946 = vector.broadcast %cst_240 : f32 to vector<16x1xf32>
    %947 = arith.addf %943, %946 : vector<16x1xf32>
    %948 = math.rsqrt %947 : vector<16x1xf32>
    %949 = vector.broadcast %948 : vector<16x1xf32> to vector<16x32xf32>
    %950 = arith.mulf %945, %949 : vector<16x32xf32>
    %951 = vector.broadcast %931 : vector<1x32xf32> to vector<16x32xf32>
    %952 = arith.mulf %950, %951 : vector<16x32xf32>
    %953 = vector.broadcast %932 : vector<1x32xf32> to vector<16x32xf32>
    %954 = arith.addf %952, %953 : vector<16x32xf32>
    %955 = arith.truncf %954 : vector<16x32xf32> to vector<16x32xbf16>
    %c0_241 = arith.constant 0 : index
    %c0_242 = arith.constant 0 : index
    %956 = vector.load %arg7[%c0_241, %c0_242] : memref<32x20xbf16, #tpu.memory_space<vmem>>, vector<32x20xbf16>
    %cst_243 = arith.constant dense<0.000000e+00> : vector<16x20xf32>
    %957 = tpu.matmul %955, %956, %cst_243 {dimension_numbers = #tpu.dot_dimension_numbers<[1], [0], [0], [1], [0, 0, 1, 1], [], []>} : vector<16x32xbf16>, vector<32x20xbf16>, vector<16x20xf32> -> vector<16x20xf32>
    %c0_244 = arith.constant 0 : index
    %c0_245 = arith.constant 0 : index
    %958 = vector.load %arg11[%c0_244, %c0_245] : memref<1x20xf32, #tpu.memory_space<vmem>>, vector<1x20xf32>
    %959 = vector.broadcast %958 : vector<1x20xf32> to vector<16x20xf32>
    %960 = arith.addf %957, %959 : vector<16x20xf32>
    %c0_246 = arith.constant 0 : index
    %c0_247 = arith.constant 0 : index
    %961 = vector.load %arg12[%c0_246, %c0_247] : memref<16x20xf32, #tpu.memory_space<vmem>>, vector<16x20xf32>
    tpu.vector_store %arg12[%c0_246, %c0_247], %960 {strides = array<i32>} : memref<16x20xf32, #tpu.memory_space<vmem>>, vector<16x20xf32>,
    return
  }
}

</mosaic_0001>

<bundles_post_ra>
// kernel: transformer_decoder_forward.1
= control target key start
LH: loop header
LB: loop body
LE: loop exit
PB: predicated region body
PF: predicated region fallthrough
CT: control target
= control target key end

     0   :  { %vm50_vm0 = vcmask 261120   ;;  %s7503_s0 = inlined_call_operand.vmem [shape: f32[16,32], index: 0, kind: input, shape index: {}]   ;;  %s7504_s1 = inlined_call_operand.vmem [shape: bf16[24,32], index: 1, kind: input, shape index: {}]   ;;  %s7505_s2 = inlined_call_operand.vmem [shape: bf16[2,32,96], index: 2, kind: input, shape index: {}]   ;;  %s7506_s3 = inlined_call_operand.vmem [shape: bf16[2,3,32,32], index: 3, kind: input, shape index: {}]   ;;  %s7507_s4 = inlined_call_operand.vmem [shape: bf16[2,32,64], index: 4, kind: input, shape index: {}]   ;;  %s7508_s5 = inlined_call_operand.vmem [shape: bf16[2,32,64], index: 5, kind: input, shape index: {}]   ;;  %s7509_s6 = inlined_call_operand.vmem [shape: bf16[2,64,32], index: 6, kind: input, shape index: {}]   ;;  %s7510_s7 = inlined_call_operand.vmem [shape: bf16[32,20], index: 7, kind: input, shape index: {}]   ;;  %s7511_s8 = inlined_call_operand.vmem [shape: f32[2,15,32], index: 8, kind: input, shape index: {}]   ;;  %s7512_s9 = inlined_call_operand.vmem [shape: f32[2,1,64], index: 9, kind: input, shape index: {}]   ;;  %s7513_s10 = inlined_call_operand.vmem [shape: f32[2,32], index: 10, kind: input, shape index: {}]   ;;  %s7514_s11 = inlined_call_operand.vmem [shape: f32[1,20], index: 11, kind: input, shape index: {}]   ;;  %s7515_s12 = inlined_call_operand.hbm [shape: f32[16,20], index: 12, kind: output, shape index: {}]  }
   0x1   :  { %v6396_v0 = vld [vmem:[%s7503_s0] sm:$0xff]  ;;  %v6401_v1 = vld [vmem:[%s7503_s0 + $0x8] sm:$0xff] }
   0x2   :  { %v51_v2 = vsel %vm50_vm0, %v6396_v0, 0.0  ;;  %v54_v3 = vsel %vm50_vm0, %v6401_v1, 0.0 }
   0x3   :  { %52 = vadd.xlane.f32.xlu0 %v51_v2 }
   0x7   :  { %55 = vadd.xlane.f32.xlu0 %v54_v3 }
   0x8   :  { %17 = vsyncpa [#allocation3], 0  ;;  %v6087_v14 = vld [vmem:[%s7505_s2] sm:$0xff]   ;;  %v6309_v15 = vmov 0.0   ;;  %vm6310_vm1 = vmmov 0   ;;  %v6088_v16 = vld [vmem:[%s7505_s2 + $0x8] sm:$0xff]   ;;  %v78_v17 = vlaneseq }
   0x9   :  { %5496 = vmatprep.subr.bf16.mxu0 %v6309_v15  ;;  %5500 = vmatprep.mubr.msk.bf16.mxu0 %vm6310_vm1, %v6309_v15  ;;  %v6433_v20 = vld [vmem:[%s7511_s8] sm:$0xff]  ;;  %s6311_s30 = smov 32   ;;  %v6441_v28 = vld [vmem:[%s7511_s8 + $0x8] sm:$0x7f]  ;;  %s6312_s15 = smov 80   ;;  %vm187_vm2 = vcmask 64512  }
   0xa   :  { %5497 = vmatpush3.bf16.msra.mxu0 %v6087_v14  ;;  %5504 = vmatprep.subr.bf16.mxu1 %v6309_v15  ;;  %v6425_v18 = vshrl.u32 %v78_v17, 7  ;;  %s6313_s16 = smov 96   ;;  %s6314_s17 = smov 72   ;;  %vm251_vm3 = vcmask 1043456   ;;  %vm640_vm4 = vcmask 130048   ;;  %vm642_vm5 = vcmask 195584  }
   0xb   :  { %5498 = vmatprep.subr.bf16.mxu0 %v6309_v15  ;;  %5506 = vmatprep.mubr.msk.bf16.mxu1 %vm6310_vm1, %v6309_v15  ;;  %s6315_s18 = smov 88   ;;  %s6316_s19 = smov 120   ;;  %vm1420_vm6 = vcmask 97280   ;;  %vm1438_vm7 = vcmask 1045504   ;;  %vm2493_vm8 = vcmask 523264   ;;  %vm5135_vm9 = vcmask 162816  }
   0xc   :  { %v6428_v19 = vsub.s32 1, %v6425_v18  ;;  %v6446_v32 = vsub.s32 2, %v6425_v18  ;;  %v6454_v42 = vsub.s32 0, %v6425_v18  ;;  %s6317_s20 = smov 112   ;;  %s6318_s21 = smov 104  }
   0xd   :  { %s7522_s22 = smov 64   ;;  %s7520_s23 = smov 56  }
   0xe   :  { %5499 = vmatpush3.bf16.msra.mxu0 %v6088_v16  ;;  %v160_v21 = vrot.slane %v6433_v20, %v6428_v19  ;;  %v81_v31 = vrot.slane %v6441_v28, %v6428_v19  ;;  %v87_v36 = vrot.slane %v6441_v28, %v6446_v32  ;;  %v154_v47 = vrot.slane %v6433_v20, %v6454_v42  ;;  %s7518_s24 = smov 48   ;;  %s7516_s0 = smov 40  }
   0xf   :  { %5510 = vmatprep.subr.bf16.mxu0 %v6309_v15  ;;  %v170_v56 = vrot.slane %v6433_v20, %v6446_v32  ;;  %s6323_s27 = smov 8   ;;  %s6324_s28 = smov 16  }
  0x10   :  { %s6325_s14 = smov 24   ;;  %s7524_s26 = smov 64  }
  0x1d   :  { %162 = vrot.lane.b32.xlu0 %v160_v21, %s6311_s30 }
  0x90   :  { %v53_v4 = vpop.xlane.xlu0 %52 }
  0x91   :  { %v58_v5 = vmul.f32 0.03125, %v53_v4 }
  0x93   :  { %v60_v6 = vsub.f32 %v6396_v0, %v58_v5 }
  0x94   :  { %v56_v7 = vpop.xlane.xlu0 %55 }
  0x95   :  { %v59_v8 = vmul.f32 0.03125, %v56_v7  ;;  %v62_v9 = vmul.f32 %v60_v6, %v60_v6 }
  0x97   :  { %v61_v10 = vsub.f32 %v6401_v1, %v59_v8  ;;  %v64_v11 = vsel %vm50_vm0, %v62_v9, 0.0 }
  0x98   :  { %65 = vadd.xlane.f32.xlu1 %v64_v11  ;;  %v163_v41 = vpop.permute.xlu0 %162 }
  0x99   :  { %v63_v12 = vmul.f32 %v61_v10, %v61_v10 }
  0x9b   :  { %v67_v13 = vsel %vm50_vm0, %v63_v12, 0.0 }
  0x9c   :  { %68 = vadd.xlane.f32.xlu1 %v67_v13 }
 0x125   :  { %v66_v22 = vpop.xlane.xlu1 %65 }
 0x126   :  { %v70_v23 = vmul.f32 0.03125, %v66_v22 }
 0x128   :  { %v72_v24 = vadd.f32 1e-05, %v70_v23 }
 0x129   :  { %v69_v25 = vpop.xlane.xlu1 %68 }
 0x12a   :  { %6123 = vrsqrt.f32 %v72_v24  ;;  %v71_v26 = vmul.f32 0.03125, %v69_v25 }
 0x12c   :  { %v73_v27 = vadd.f32 1e-05, %v71_v26 }
 0x12e   :  { %6125 = vrsqrt.f32 %v73_v27 }
 0x134   :  { %v6124_v29 = vpop.eup %6123 }
 0x135   :  { %v76_v30 = vmul.f32 %v6124_v29, %v60_v6 }
 0x137   :  { %v82_v35 = vmul.f32 %v81_v31, %v76_v30 }
 0x138   :  { %v6126_v33 = vpop.eup %6125 }
 0x139   :  { %v77_v34 = vmul.f32 %v6126_v33, %v61_v10  ;;  %v88_v38 = vadd.f32 %v87_v36, %v82_v35 }
 0x13b   :  { %v83_v37 = vmul.f32 %v81_v31, %v77_v34 }
 0x13d   :  { %v89_v39 = vadd.f32 %v87_v36, %v83_v37 }
 0x13f   :  { %v90_v40 = vpack.c.bf16 %v89_v39, %v88_v38 }
 0x141   :  { %5501 = vmatmul.mubr.msk.bf16.vlgmr.msra.gmra.mrb[0].mxu0 %vm50_vm0, %v90_v40 }
 0x142   :  { %5512 = vmatprep.mubr.msk.bf16.mxu0 %vm6310_vm1, %v6309_v15 }
 0x214   :  { %v6456_v43 = vpop.f32.mrb[0].mxu0 }
 0x215   :  { %v165_v44 = vadd.f32 %v163_v41, %v6456_v43  ;;  %v5502_v45 = vpop.f32.mrb[1].mxu0  ;;  %v155_v50 = vadd.f32 %v154_v47, %v6456_v43 }
 0x216   :  { %v6459_v46 = vpop.f32.mrb[2].mxu0 }
 0x217   :  { %v182_v48 = vpack.c.bf16 %v165_v44, %v165_v44  ;;  %v5503_v49 = vpop.f32.mrb[3].mxu0  ;;  %v166_v51 = vadd.f32 %v163_v41, %v6459_v46  ;;  %v181_v52 = vpack.c.bf16 %v155_v50, %v155_v50  ;;  %v156_v53 = vadd.f32 %v154_v47, %v6459_v46 }
 0x219   :  { %409 = vrot.lane.b32.xlu0 %v182_v48, %s6312_s15  ;;  %185 = vrot.lane.b32.xlu1 %v182_v48, %s6313_s16  ;;  %v645_v54 = vpack.c.bf16 %v166_v51, %v166_v51  ;;  %v644_v55 = vpack.c.bf16 %v156_v53, %v156_v53 }
 0x21d   :  { %519 = vrot.lane.b32.xlu0 %v182_v48, %s6314_s17  ;;  %299 = vrot.lane.b32.xlu1 %v182_v48, %s6315_s18 }
 0x221   :  { %648 = vrot.lane.b32.xlu0 %v645_v54, %s6313_s16  ;;  %297 = vrot.lane.b32.xlu1 %v181_v52, %s6316_s19 }
 0x225   :  { %758 = vrot.lane.b32.xlu0 %v644_v55, %s6316_s19  ;;  %407 = vrot.lane.b32.xlu1 %v181_v52, %s6317_s20 }
 0x229   :  { %868 = vrot.lane.b32.xlu0 %v644_v55, %s6317_s20  ;;  %517 = vrot.lane.b32.xlu1 %v181_v52, %s6318_s21 }
 0x22d   :  { %978 = vrot.lane.b32.xlu0 %v644_v55, %s6318_s21  ;;  %760 = vrot.lane.b32.xlu1 %v645_v54, %s6315_s18 }
 0x231   :  { %870 = vrot.lane.b32.xlu1 %v645_v54, %s6312_s15 }
 0x235   :  { %980 = vrot.lane.b32.xlu1 %v645_v54, %s6314_s17 }
 0x239   :  { %172 = vrot.lane.b32.xlu1 %v170_v56, %s7522_s22 }
 0x28b   :  { %v186_v57 = vpop.permute.xlu1 %185  ;;  %v410_v63 = vpop.permute.xlu0 %409 }
 0x28c   :  { %v192_v58 = vsel %vm187_vm2, %v186_v57, 0  ;;  %v415_v3 = vsel %vm187_vm2, %v410_v63, 0 }
 0x28d   :  { %5505 = vmatpush3.bf16.xpose.msra.mxu1 %v192_v58 }
 0x28e   :  { %5516 = vmatprep.subr.bf16.mxu1 %v6309_v15 }
 0x28f   :  { %v300_v59 = vpop.permute.xlu1 %299  ;;  %v520_v5 = vpop.permute.xlu0 %519 }
 0x290   :  { %v305_v61 = vsel %vm187_vm2, %v300_v59, 0  ;;  %v525_v7 = vsel %vm187_vm2, %v520_v5, 0 }
 0x293   :  { %v298_v60 = vpop.permute.xlu1 %297  ;;  %v649_v9 = vpop.permute.xlu0 %648 }
 0x294   :  { %5507 = vmatmul.mubr.msk.bf16.vlgmr.msra.gmra.mrb[0].mxu1 %vm187_vm2, %v181_v52  ;;  %v654_v11 = vsel %vm187_vm2, %v649_v9, 0 }
 0x295   :  { %5517 = vmatpush3.bf16.xpose.msra.mxu1 %v305_v61  ;;  %5518 = vmatprep.mubr.msk.bf16.mxu1 %vm6310_vm1, %v6309_v15 }
 0x296   :  { %5528 = vmatprep.subr.bf16.mxu1 %v6309_v15 }
 0x297   :  { %v408_v62 = vpop.permute.xlu1 %407  ;;  %v759_v16 = vpop.permute.xlu0 %758 }
 0x29b   :  { %v518_v2 = vpop.permute.xlu1 %517  ;;  %v869_v21 = vpop.permute.xlu0 %868 }
 0x29c   :  { %5519 = vmatmul.mubr.msk.bf16.vlgmr.msra.gmra.mrb[4].mxu1 %vm187_vm2, %v298_v60 }
 0x29d   :  { %5529 = vmatpush3.bf16.xpose.msra.mxu1 %v415_v3  ;;  %5530 = vmatprep.mubr.msk.bf16.mxu1 %vm6310_vm1, %v6309_v15 }
 0x29e   :  { %5540 = vmatprep.subr.bf16.mxu1 %v6309_v15 }
 0x29f   :  { %v761_v4 = vpop.permute.xlu1 %760  ;;  %v979_v23 = vpop.permute.xlu0 %978 }
 0x2a0   :  { %v766_v14 = vsel %vm187_vm2, %v761_v4, 0 }
 0x2a3   :  { %v871_v6 = vpop.permute.xlu1 %870 }
 0x2a4   :  { %5531 = vmatmul.mubr.msk.bf16.vlgmr.msra.gmra.mrb[8].mxu1 %vm187_vm2, %v408_v62  ;;  %v876_v17 = vsel %vm187_vm2, %v871_v6, 0 }
 0x2a5   :  { %5541 = vmatpush3.bf16.xpose.msra.mxu1 %v525_v7  ;;  %5542 = vmatprep.mubr.msk.bf16.mxu1 %vm6310_vm1, %v6309_v15 }
 0x2a6   :  { %5552 = vmatprep.subr.bf16.mxu1 %v6309_v15 }
 0x2a7   :  { %v981_v8 = vpop.permute.xlu1 %980 }
 0x2a8   :  { %v986_v22 = vsel %vm187_vm2, %v981_v8, 0 }
 0x2ab   :  { %v173_v10 = vpop.permute.xlu1 %172 }
 0x2ac   :  { %v175_v12 = vadd.f32 %v173_v10, %v6456_v43  ;;  %5543 = vmatmul.mubr.msk.bf16.vlgmr.msra.gmra.mrb[12].mxu1 %vm187_vm2, %v518_v2  ;;  %v176_v44 = vadd.f32 %v173_v10, %v6459_v46 }
 0x2ad   :  { %5553 = vmatpush3.bf16.xpose.msra.mxu1 %v654_v11  ;;  %5554 = vmatprep.mubr.msk.bf16.mxu1 %vm6310_vm1, %v6309_v15 }
 0x2ae   :  { %v6505_v13 = vpack.c.bf16 %v175_v12, %v175_v12  ;;  %5564 = vmatprep.subr.bf16.mxu1 %v6309_v15  ;;  %v646_v47 = vpack.c.bf16 %v176_v44, %v176_v44 }
 0x2b0   :  { %358 = vrot.lane.b32.xlu1 %v6505_v13, %s7520_s23  ;;  %246 = vrot.lane.b32.xlu0 %v6505_v13, %s7522_s22 }
 0x2b4   :  { %5555 = vmatmul.mubr.msk.bf16.vlgmr.msra.gmra.mrb[16].mxu1 %vm187_vm2, %v644_v55  ;;  %468 = vrot.lane.b32.xlu0 %v6505_v13, %s7518_s24 }
 0x2b5   :  { %5565 = vmatpush3.bf16.xpose.msra.mxu1 %v766_v14  ;;  %5566 = vmatprep.mubr.msk.bf16.mxu1 %vm6310_vm1, %v6309_v15 }
 0x2b6   :  { %5576 = vmatprep.subr.bf16.mxu1 %v6309_v15 }
 0x2bc   :  { %5567 = vmatmul.mubr.msk.bf16.vlgmr.msra.gmra.mrb[20].mxu1 %vm187_vm2, %v759_v16 }
 0x2bd   :  { %5577 = vmatpush3.bf16.xpose.msra.mxu1 %v876_v17  ;;  %5578 = vmatprep.mubr.msk.bf16.mxu1 %vm6310_vm1, %v6309_v15 }
 0x2be   :  { %5588 = vmatprep.subr.bf16.mxu1 %v6309_v15 }
 0x2c4   :  { %5579 = vmatmul.mubr.msk.bf16.vlgmr.msra.gmra.mrb[24].mxu1 %vm187_vm2, %v869_v21 }
 0x2c5   :  { %5589 = vmatpush3.bf16.xpose.msra.mxu1 %v986_v22  ;;  %5590 = vmatprep.mubr.msk.bf16.mxu1 %vm6310_vm1, %v6309_v15 }
 0x2c6   :  { %5600 = vmatprep.subr.bf16.mxu1 %v6309_v15 }
 0x2cc   :  { %5591 = vmatmul.mubr.msk.bf16.vlgmr.msra.gmra.mrb[28].mxu1 %vm187_vm2, %v979_v23 }
 0x2cd   :  { %5604 = vmatprep.mubr.msk.bf16.mxu1 %vm6310_vm1, %v6309_v15 }
 0x322   :  { %v247_v24 = vpop.permute.xlu0 %246 }
 0x323   :  { %v253_v25 = vsel %vm251_vm3, %v247_v24, 0 }
 0x324   :  { %5511 = vmatpush3.bf16.msra.mxu0 %v253_v25 }
 0x325   :  { %5522 = vmatprep.subr.bf16.mxu0 %v6309_v15 }
 0x326   :  { %v469_v9 = vpop.permute.xlu0 %468 }
 0x367   :  { %v228_v26 = vpop.f32.mrb[0].mxu1 }
 0x368   :  { %v5508_v27 = vpop.f32.mrb[1].mxu1  ;;  %v234_v29 = vsel %vm187_vm2, %v228_v26, -inf }
 0x369   :  { %v231_v30 = vpop.f32.mrb[2].mxu1  ;;  %235 = vmax.xlane.f32.xlu0 %v234_v29 }
 0x36a   :  { %v5509_v31 = vpop.f32.mrb[3].mxu1 }
 0x36f   :  { %v341_v33 = vpop.f32.mrb[4].mxu1 }
 0x370   :  { %v5520_v34 = vpop.f32.mrb[5].mxu1  ;;  %v347_v35 = vsel %vm187_vm2, %v341_v33, -inf }
 0x371   :  { %v344_v36 = vpop.f32.mrb[6].mxu1  ;;  %348 = vmax.xlane.f32.xlu1 %v347_v35  ;;  %v474_v34 = vsel %vm251_vm3, %v469_v9, 0 }
 0x372   :  { %v5521_v37 = vpop.f32.mrb[7].mxu1 }
 0x377   :  { %v451_v38 = vpop.f32.mrb[8].mxu1 }
 0x378   :  { %v5532_v39 = vpop.f32.mrb[9].mxu1  ;;  %v457_v40 = vsel %vm187_vm2, %v451_v38, -inf }
 0x379   :  { %v454_v41 = vpop.f32.mrb[10].mxu1  ;;  %458 = vmax.xlane.f32.xlu0 %v457_v40 }
 0x37a   :  { %v5533_v43 = vpop.f32.mrb[11].mxu1 }
 0x37f   :  { %v6538_v45 = vpop.f32.mrb[12].mxu1 }
 0x380   :  { %v5544_v48 = vpop.f32.mrb[13].mxu1  ;;  %v567_v49 = vsel %vm187_vm2, %v6538_v45, -inf }
 0x381   :  { %v564_v50 = vpop.f32.mrb[14].mxu1  ;;  %568 = vmax.xlane.f32.xlu0 %v567_v49 }
 0x382   :  { %v5545_v51 = vpop.f32.mrb[15].mxu1  ;;  %708 = vrot.lane.b32.xlu1 %v646_v47, %s7522_s22  ;;  %s7527_s22 = smov 40  }
 0x387   :  { %v6543_v52 = vpop.f32.mrb[16].mxu1 }
 0x388   :  { %v5556_v53 = vpop.f32.mrb[17].mxu1  ;;  %v696_v5 = vsel %vm187_vm2, %v6543_v52, -inf }
 0x389   :  { %v693_v54 = vpop.f32.mrb[18].mxu1 }
 0x38a   :  { %v5557_v55 = vpop.f32.mrb[19].mxu1 }
 0x38f   :  { %v6545_v56 = vpop.f32.mrb[20].mxu1 }
 0x390   :  { %v5568_v46 = vpop.f32.mrb[21].mxu1  ;;  %v808_v6 = vsel %vm187_vm2, %v6545_v56, -inf }
 0x391   :  { %v805_v57 = vpop.f32.mrb[22].mxu1 }
 0x392   :  { %v5569_v58 = vpop.f32.mrb[23].mxu1 }
 0x397   :  { %v6547_v59 = vpop.f32.mrb[24].mxu1  ;;  %578 = vrot.lane.b32.xlu0 %v6505_v13, %s7516_s0  ;;  %v359_v13 = vpop.permute.xlu1 %358 }
 0x398   :  { %v5580_v60 = vpop.f32.mrb[25].mxu1  ;;  %v918_v7 = vsel %vm187_vm2, %v6547_v59, -inf  ;;  %v364_v25 = vsel %vm251_vm3, %v359_v13, 0 }
 0x399   :  { %v915_v61 = vpop.f32.mrb[26].mxu1 }
 0x39a   :  { %v5581_v62 = vpop.f32.mrb[27].mxu1 }
 0x39f   :  { %v6551_v63 = vpop.f32.mrb[28].mxu1 }
 0x3a0   :  { %v5592_v2 = vpop.f32.mrb[29].mxu1  ;;  %v1028_v8 = vsel %vm187_vm2, %v6551_v63, -inf }
 0x3a1   :  { %v1025_v3 = vpop.f32.mrb[30].mxu1 }
 0x3a2   :  { %v5593_v4 = vpop.f32.mrb[31].mxu1 }
 0x3a6   :  { %697 = vmax.xlane.f32.xlu1 %v696_v5 }
 0x3aa   :  { %809 = vmax.xlane.f32.xlu1 %v808_v6 }
 0x3b6   :  { %919 = vmax.xlane.f32.xlu0 %v918_v7 }
 0x3bb   :  { %819 = vrot.lane.b32.xlu1 %v646_v47, %s7520_s23 }
 0x3cc   :  { %929 = vrot.lane.b32.xlu0 %v646_v47, %s7518_s24  ;;  %s7525_s24 = smov 56  }
 0x3df   :  { %1029 = vmax.xlane.f32.xlu1 %v1028_v8 }
 0x3f0   :  { %1039 = vrot.lane.b32.xlu1 %v646_v47, %s7516_s0  ;;  %s7526_s0 = smov 48  }
 0x3f6   :  { %v236_v10 = vpop.xlane.xlu0 %235 }
 0x3f7   :  { %v237_v11 = vsub.f32 %v228_v26, %v236_v10 }
 0x3f9   :  { %v238_v12 = vmul.f32 1.442695, %v237_v11 }
 0x3fb   :  { %6127 = vpow2.f32 %v238_v12 }
 0x3fe   :  { %v349_v14 = vpop.xlane.xlu1 %348 }
 0x3ff   :  { %v350_v16 = vsub.f32 %v341_v33, %v349_v14 }
 0x401   :  { %v351_v17 = vmul.f32 1.442695, %v350_v16 }
 0x402   :  { %v709_v43 = vpop.permute.xlu1 %708 }
 0x403   :  { %6129 = vpow2.f32 %v351_v17 }
 0x405   :  { %v6564_v21 = vpop.eup %6127 }
 0x406   :  { %v459_v22 = vpop.xlane.xlu0 %458  ;;  %v244_v23 = vpack.c.bf16 %v6564_v21, %v6564_v21  ;;  %v240_v7 = vsel %vm187_vm2, %v6564_v21, 0.0 }
 0x407   :  { %v460_v24 = vsub.f32 %v451_v38, %v459_v22 }
 0x408   :  { %5513 = vmatmul.mubr.msk.bf16.vlgmr.msra.gmra.mrb[4].mxu0 %vm187_vm2, %v244_v23 }
 0x409   :  { %v461_v27 = vmul.f32 1.442695, %v460_v24  ;;  %5523 = vmatpush3.bf16.msra.mxu0 %v364_v25  ;;  %5524 = vmatprep.mubr.msk.bf16.mxu0 %vm6310_vm1, %v6309_v15 }
 0x40a   :  { %5534 = vmatprep.subr.bf16.mxu0 %v6309_v15 }
 0x40b   :  { %6131 = vpow2.f32 %v461_v27 }
 0x40d   :  { %v6130_v26 = vpop.eup %6129 }
 0x40e   :  { %v569_v29 = vpop.xlane.xlu0 %568  ;;  %v353_v30 = vsel %vm187_vm2, %v6130_v26, 0.0  ;;  %v357_v31 = vpack.c.bf16 %v6130_v26, %v6130_v26 }
 0x40f   :  { %v570_v33 = vsub.f32 %v6538_v45, %v569_v29  ;;  %354 = vadd.xlane.f32.xlu0 %v353_v30  ;;  %v714_v45 = vsel %vm251_vm3, %v709_v43, 0 }
 0x410   :  { %5525 = vmatmul.mubr.msk.bf16.vlgmr.msra.gmra.mrb[8].mxu0 %vm187_vm2, %v357_v31 }
 0x411   :  { %v571_v35 = vmul.f32 1.442695, %v570_v33  ;;  %5535 = vmatpush3.bf16.msra.mxu0 %v474_v34  ;;  %5536 = vmatprep.mubr.msk.bf16.mxu0 %vm6310_vm1, %v6309_v15 }
 0x412   :  { %5546 = vmatprep.subr.bf16.mxu0 %v6309_v15  ;;  %v579_v37 = vpop.permute.xlu0 %578 }
 0x413   :  { %6133 = vpow2.f32 %v571_v35  ;;  %v584_v40 = vsel %vm251_vm3, %v579_v37, 0 }
 0x415   :  { %v6132_v36 = vpop.eup %6131 }
 0x416   :  { %v463_v38 = vsel %vm187_vm2, %v6132_v36, 0.0  ;;  %v467_v39 = vpack.c.bf16 %v6132_v36, %v6132_v36 }
 0x417   :  { %464 = vadd.xlane.f32.xlu0 %v463_v38 }
 0x418   :  { %5537 = vmatmul.mubr.msk.bf16.vlgmr.msra.gmra.mrb[12].mxu0 %vm187_vm2, %v467_v39 }
 0x419   :  { %5547 = vmatpush3.bf16.msra.mxu0 %v584_v40  ;;  %5548 = vmatprep.mubr.msk.bf16.mxu0 %vm6310_vm1, %v6309_v15 }
 0x41a   :  { %5558 = vmatprep.subr.bf16.mxu0 %v6309_v15 }
 0x41d   :  { %v6134_v41 = vpop.eup %6133 }
 0x41e   :  { %v577_v44 = vpack.c.bf16 %v6134_v41, %v6134_v41  ;;  %v573_v6 = vsel %vm187_vm2, %v6134_v41, 0.0 }
 0x420   :  { %5549 = vmatmul.mubr.msk.bf16.vlgmr.msra.gmra.mrb[16].mxu0 %vm187_vm2, %v577_v44 }
 0x421   :  { %5559 = vmatpush3.bf16.msra.mxu0 %v714_v45  ;;  %5560 = vmatprep.mubr.msk.bf16.mxu0 %vm6310_vm1, %v6309_v15 }
 0x422   :  { %5570 = vmatprep.subr.bf16.mxu0 %v6309_v15 }
 0x433   :  { %v698_v47 = vpop.xlane.xlu1 %697 }
 0x434   :  { %v699_v48 = vsub.f32 %v6543_v52, %v698_v47 }
 0x436   :  { %v700_v49 = vmul.f32 1.442695, %v699_v48 }
 0x437   :  { %v810_v50 = vpop.xlane.xlu1 %809 }
 0x438   :  { %6135 = vpow2.f32 %v700_v49  ;;  %v811_v51 = vsub.f32 %v6545_v56, %v810_v50 }
 0x43a   :  { %v812_v53 = vmul.f32 1.442695, %v811_v51 }
 0x43b   :  { %v820_v55 = vpop.permute.xlu1 %819 }
 0x43c   :  { %6137 = vpow2.f32 %v812_v53  ;;  %v825_v60 = vsel %vm251_vm3, %v820_v55, 0 }
 0x442   :  { %v6136_v54 = vpop.eup %6135 }
 0x443   :  { %v920_v46 = vpop.xlane.xlu0 %919  ;;  %v706_v57 = vpack.c.bf16 %v6136_v54, %v6136_v54 }
 0x444   :  { %v921_v58 = vsub.f32 %v6547_v59, %v920_v46  ;;  %v6089_v46 = vld [vmem:[%s7506_s3] sm:$0xff]  }
 0x445   :  { %5561 = vmatmul.mubr.msk.bf16.vlgmr.msra.gmra.mrb[20].mxu0 %vm187_vm2, %v706_v57  ;;  %5601 = vmatpush3.bf16.msra.mxu1 %v6089_v46 }
 0x446   :  { %v6138_v61 = vpop.eup %6137  ;;  %v922_v62 = vmul.f32 1.442695, %v921_v58  ;;  %5571 = vmatpush3.bf16.msra.mxu0 %v825_v60  ;;  %5572 = vmatprep.mubr.msk.bf16.mxu0 %vm6310_vm1, %v6309_v15 }
 0x447   :  { %v814_v52 = vsel %vm187_vm2, %v6138_v61, 0.0  ;;  %5582 = vmatprep.subr.bf16.mxu0 %v6309_v15  ;;  %v930_v56 = vpop.permute.xlu0 %929  ;;  %v818_v2 = vpack.c.bf16 %v6138_v61, %v6138_v61  ;;  %5602 = vmatprep.subr.bf16.mxu1 %v6309_v15 }
 0x448   :  { %6139 = vpow2.f32 %v922_v62  ;;  %815 = vadd.xlane.f32.xlu1 %v814_v52  ;;  %v935_v59 = vsel %vm251_vm3, %v930_v56, 0 }
 0x44d   :  { %5573 = vmatmul.mubr.msk.bf16.vlgmr.msra.gmra.mrb[24].mxu0 %vm187_vm2, %v818_v2 }
 0x44e   :  { %5583 = vmatpush3.bf16.msra.mxu0 %v935_v59  ;;  %5584 = vmatprep.mubr.msk.bf16.mxu0 %vm6310_vm1, %v6309_v15 }
 0x44f   :  { %5594 = vmatprep.subr.bf16.mxu0 %v6309_v15 }
 0x452   :  { %v6140_v3 = vpop.eup %6139 }
 0x453   :  { %v924_v4 = vsel %vm187_vm2, %v6140_v3, 0.0  ;;  %v928_v5 = vpack.c.bf16 %v6140_v3, %v6140_v3 }
 0x454   :  { %925 = vadd.xlane.f32.xlu0 %v924_v4 }
 0x455   :  { %5585 = vmatmul.mubr.msk.bf16.vlgmr.msra.gmra.mrb[28].mxu0 %vm187_vm2, %v928_v5 }
 0x456   :  { %5596 = vmatprep.mubr.msk.bf16.mxu0 %vm6310_vm1, %v6309_v15 }
 0x458   :  { %574 = vadd.xlane.f32.xlu0 %v573_v6 }
 0x45c   :  { %241 = vadd.xlane.f32.xlu0 %v240_v7  ;;  %v6090_v7 = vld [vmem:[%s7506_s3 + $0x8] sm:$0xff]  }
 0x45d   :  { %5603 = vmatpush3.bf16.msra.mxu1 %v6090_v7  ;;  %v6094_v7 = vld [vmem:[%s7504_s1 + $0x8] ss:$0 sps:$4 sm:$0xff]  }
 0x46c   :  { %v1030_v8 = vpop.xlane.xlu1 %1029 }
 0x46d   :  { %v1031_v9 = vsub.f32 %v6551_v63, %v1030_v8  ;;  %v702_v63 = vsel %vm187_vm2, %v6136_v54, 0.0 }
 0x46f   :  { %v1032_v10 = vmul.f32 1.442695, %v1031_v9 }
 0x470   :  { %v1040_v11 = vpop.permute.xlu1 %1039 }
 0x471   :  { %6141 = vpow2.f32 %v1032_v10  ;;  %v1045_v12 = vsel %vm251_vm3, %v1040_v11, 0 }
 0x472   :  { %5595 = vmatpush3.bf16.msra.mxu0 %v1045_v12 }
 0x473   :  { %5608 = vmatprep.subr.bf16.mxu0 %v6309_v15 }
 0x47b   :  { %v6142_v13 = vpop.eup %6141 }
 0x47c   :  { %v1034_v14 = vsel %vm187_vm2, %v6142_v13, 0.0  ;;  %v1038_v16 = vpack.c.bf16 %v6142_v13, %v6142_v13 }
 0x47d   :  { %1035 = vadd.xlane.f32.xlu1 %v1034_v14 }
 0x47e   :  { %5597 = vmatmul.mubr.msk.bf16.vlgmr.msra.gmra.mrb[32].mxu0 %vm187_vm2, %v1038_v16 }
 0x47f   :  { %5612 = vmatprep.mubr.msk.bf16.mxu0 %vm6310_vm1, %v6309_v15 }
 0x481   :  { %703 = vadd.xlane.f32.xlu1 %v702_v63 }
 0x49c   :  { %v355_v38 = vpop.xlane.xlu0 %354 }
 0x49d   :  { %6143 = vrcp.f32 %v355_v38 }
 0x4a4   :  { %v465_v40 = vpop.xlane.xlu0 %464 }
 0x4a7   :  { %v6144_v48 = vpop.eup %6143 }
 0x4d5   :  { %v816_v39 = vpop.xlane.xlu1 %815 }
 0x4d6   :  { %6145 = vrcp.f32 %v816_v39 }
 0x4d7   :  { %6147 = vrcp.f32 %v465_v40 }
 0x4db   :  { %v6620_v17 = vpop.f32.mrb[4].mxu0 }
 0x4dc   :  { %v5514_v21 = vpop.f32.mrb[5].mxu0 }
 0x4dd   :  { %v292_v22 = vpop.f32.mrb[6].mxu0 }
 0x4de   :  { %v5515_v23 = vpop.f32.mrb[7].mxu0 }
 0x4e0   :  { %v6146_v49 = vpop.eup %6145 }
 0x4e1   :  { %v926_v45 = vpop.xlane.xlu0 %925  ;;  %v6148_v60 = vpop.eup %6147 }
 0x4e2   :  { %6149 = vrcp.f32 %v926_v45 }
 0x4e3   :  { %v400_v24 = vpop.f32.mrb[8].mxu0 }
 0x4e4   :  { %v5526_v25 = vpop.f32.mrb[9].mxu0  ;;  %v406_v51 = vmul.f32 %v6144_v48, %v400_v24 }
 0x4e5   :  { %v403_v27 = vpop.f32.mrb[10].mxu0  ;;  %v575_v5 = vpop.xlane.xlu0 %574 }
 0x4e6   :  { %v5527_v26 = vpop.f32.mrb[11].mxu0  ;;  %6151 = vrcp.f32 %v575_v5  ;;  %v6092_v5 = vld [vmem:[%s7507_s4 + $0x8] sm:$0xff]  }
 0x4e9   :  { %v242_v21 = vpop.xlane.xlu0 %241 }
 0x4eb   :  { %v510_v29 = vpop.f32.mrb[12].mxu0 }
 0x4ec   :  { %v5538_v30 = vpop.f32.mrb[13].mxu0  ;;  %v6150_v61 = vpop.eup %6149  ;;  %v516_v52 = vmul.f32 %v6148_v60, %v510_v29 }
 0x4ed   :  { %v513_v31 = vpop.f32.mrb[14].mxu0 }
 0x4ee   :  { %v5539_v33 = vpop.f32.mrb[15].mxu0 }
 0x4f0   :  { %v6152_v8 = vpop.eup %6151 }
 0x4f3   :  { %v620_v34 = vpop.f32.mrb[16].mxu0 }
 0x4f4   :  { %v5550_v35 = vpop.f32.mrb[17].mxu0  ;;  %v626_v11 = vmul.f32 %v6152_v8, %v620_v34  ;;  %v6095_v8 = vld [vmem:[%s7506_s3 + $0x10] sm:$0xff]  }
 0x4f5   :  { %v623_v36 = vpop.f32.mrb[18].mxu0  ;;  %5609 = vmatpush3.bf16.msra.mxu0 %v6095_v8 }
 0x4f6   :  { %v5551_v37 = vpop.f32.mrb[19].mxu0  ;;  %5610 = vmatprep.subr.bf16.mxu0 %v6309_v15 }
 0x50a   :  { %v1036_v6 = vpop.xlane.xlu1 %1035 }
 0x50b   :  { %6153 = vrcp.f32 %v1036_v6  ;;  %v6093_v6 = vld [vmem:[%s7504_s1] sm:$0xff]  }
 0x50c   :  { %6155 = vrcp.f32 %v242_v21 }
 0x50e   :  { %v704_v22 = vpop.xlane.xlu1 %703 }
 0x50f   :  { %6157 = vrcp.f32 %v704_v22 }
 0x515   :  { %v6154_v9 = vpop.eup %6153 }
 0x516   :  { %v6156_v24 = vpop.eup %6155 }
 0x517   :  { %v295_v34 = vmul.f32 %v6156_v24, %v6620_v17  ;;  %v6641_v17 = vsub.s32 3, %v6425_v18 }
 0x518   :  { %v750_v41 = vpop.f32.mrb[20].mxu0 }
 0x519   :  { %v5562_v43 = vpop.f32.mrb[21].mxu0  ;;  %v6158_v27 = vpop.eup %6157  ;;  %v1195_v21 = vrot.slane %v6441_v28, %v6641_v17 }
 0x51a   :  { %v753_v44 = vpop.f32.mrb[22].mxu0  ;;  %v756_v33 = vmul.f32 %v6158_v27, %v750_v41 }
 0x51b   :  { %v5563_v47 = vpop.f32.mrb[23].mxu0 }
 0x51c   :  { %v1107_v47 = vrot.slane %v6433_v20, %v6641_v17 }
 0x520   :  { %v861_v50 = vpop.f32.mrb[24].mxu0 }
 0x521   :  { %v867_v53 = vmul.f32 %v6146_v49, %v861_v50  ;;  %v5574_v54 = vpop.f32.mrb[25].mxu0 }
 0x522   :  { %v864_v55 = vpop.f32.mrb[26].mxu0 }
 0x523   :  { %v6027_v57 = vpack.i.bf16 %v867_v53, %v406_v51  ;;  %v5575_v58 = vpop.f32.mrb[27].mxu0 }
 0x525   :  { %6028 = vrot.lane.b32.xlu0 %v6027_v57, %s6323_s27 }
 0x528   :  { %v971_v62 = vpop.f32.mrb[28].mxu0 }
 0x529   :  { %v977_v56 = vmul.f32 %v6150_v61, %v971_v62  ;;  %v5586_v2 = vpop.f32.mrb[29].mxu0 }
 0x52a   :  { %v974_v59 = vpop.f32.mrb[30].mxu0 }
 0x52b   :  { %v6032_v3 = vpack.i.bf16 %v977_v56, %v516_v52  ;;  %v5587_v4 = vpop.f32.mrb[31].mxu0 }
 0x52c   :  { %v6091_v4 = vld [vmem:[%s7507_s4] sm:$0xff]  }
 0x52d   :  { %6033 = vrot.lane.b32.xlu1 %v6032_v3, %s6324_s28  ;;  %5616 = vmatprep.subr.bf16.mxu1 %v6091_v4 }
 0x551   :  { %v1081_v10 = vpop.f32.mrb[32].mxu0 }
 0x552   :  { %v1087_v12 = vmul.f32 %v6154_v9, %v1081_v10  ;;  %v5598_v13 = vpop.f32.mrb[33].mxu0  ;;  %v6096_v9 = vld [vmem:[%s7506_s3 + $0x18] sm:$0xff]  }
 0x553   :  { %v1084_v14 = vpop.f32.mrb[34].mxu0  ;;  %5611 = vmatpush3.bf16.msra.mxu0 %v6096_v9 }
 0x554   :  { %v6037_v16 = vpack.i.bf16 %v1087_v12, %v626_v11  ;;  %v5599_v63 = vpop.f32.mrb[35].mxu0  ;;  %5624 = vmatprep.subr.bf16.mxu0 %v6309_v15 }
 0x556   :  { %6038 = vrot.lane.b32.xlu1 %v6037_v16, %s6325_s14 }
 0x597   :  { %v6029_v23 = vpop.permute.xlu0 %6028 }
 0x598   :  { %v6031_v26 = vunpack.i.h.bf16 %v6029_v23  ;;  %v6030_v29 = vunpack.i.l.bf16 %v6029_v23  ;;  %v6687_v23 = vsub.s32 4, %v6425_v18 }
 0x59a   :  { %v1100_v36 = vsel %vm187_vm2, %v756_v33, %v6031_v26  ;;  %v639_v37 = vsel %vm187_vm2, %v295_v34, %v6030_v29  ;;  %v1201_v26 = vrot.slane %v6441_v28, %v6687_v23  ;;  %v6695_v34 = vsub.s32 5, %v6425_v18 }
 0x59f   :  { %v6034_v25 = vpop.permute.xlu1 %6033 }
 0x5a0   :  { %v6036_v30 = vunpack.i.h.bf16 %v6034_v25  ;;  %v6035_v31 = vunpack.i.l.bf16 %v6034_v25 }
 0x5a2   :  { %v641_v40 = vsel %vm640_vm4, %v639_v37, %v6035_v31  ;;  %v1101_v43 = vsel %vm640_vm4, %v1100_v36, %v6036_v30 }
 0x5c8   :  { %v6039_v35 = vpop.permute.xlu1 %6038 }
 0x5c9   :  { %v6041_v38 = vunpack.i.h.bf16 %v6039_v35  ;;  %v6040_v39 = vunpack.i.l.bf16 %v6039_v35  ;;  %v1351_v35 = vrot.slane %v6433_v20, %v6695_v34 }
 0x5cb   :  { %v643_v44 = vsel %vm642_vm5, %v641_v40, %v6040_v39  ;;  %v1102_v45 = vsel %vm642_vm5, %v1101_v43, %v6041_v38 }
 0x5cc   :  { %v1103_v41 = vpack.c.bf16 %v1102_v45, %v643_v44 }
 0x5ce   :  { %5605 = vmatmul.mubr.msk.bf16.vlgmr.msra.gmra.mrb[32].mxu1 %vm50_vm0, %v1103_v41 }
 0x5cf   :  { %5617 = vmatpush3.bf16.msra.mxu1 %v6091_v4  ;;  %5620 = vmatprep.mubr.msk.bf16.mxu1 %vm50_vm0, %v6093_v6 }
 0x5d0   :  { %5618 = vmatprep.subr.bf16.mxu1 %v6092_v5 }
 0x5d3   :  { %5619 = vmatpush3.bf16.msra.mxu1 %v6092_v5 }
 0x5d4   :  { %5630 = vmatprep.subr.bf16.mxu1 %v6309_v15 }
 0x5d6   :  { %5621 = vmatmul.mubr.msk.bf16.vlgmr.msra.gmra.mrb[36].mxu1 %vm50_vm0, %v6094_v7 }
 0x5d7   :  { %5632 = vmatprep.mubr.msk.bf16.mxu1 %vm6310_vm1, %v6309_v15 }
 0x6a1   :  { %v1157_v48 = vpop.f32.mrb[32].mxu1 }
 0x6a2   :  { %v1158_v49 = vadd.f32 %v1157_v48, %v1107_v47  ;;  %v5606_v50 = vpop.f32.mrb[33].mxu1 }
 0x6a3   :  { %v1160_v51 = vpop.f32.mrb[34].mxu1 }
 0x6a4   :  { %v6646_v53 = vadd.f32 %v1158_v49, %v6396_v0  ;;  %v1161_v54 = vadd.f32 %v1160_v51, %v1107_v47  ;;  %v5607_v55 = vpop.f32.mrb[35].mxu1  ;;  %v1213_v47 = vrot.slane %v6433_v20, %v6687_v23 }
 0x6a6   :  { %v6649_v46 = vadd.f32 %v1161_v54, %v6401_v1  ;;  %v1166_v57 = vsel %vm50_vm0, %v6646_v53, 0.0 }
 0x6a7   :  { %1167 = vadd.xlane.f32.xlu1 %v1166_v57 }
 0x6a8   :  { %v1169_v58 = vsel %vm50_vm0, %v6649_v46, 0.0 }
 0x6a9   :  { %1170 = vadd.xlane.f32.xlu0 %v1169_v58  ;;  %v6699_v36 = vpop.f32.mrb[36].mxu1 }
 0x6aa   :  { %v1354_v37 = vadd.f32 %v6699_v36, %v1351_v35  ;;  %v6702_v28 = vpop.f32.mrb[37].mxu1 }
 0x6ab   :  { %v1352_v38 = vadd.f32 %v1351_v35, %v6702_v28  ;;  %v5623_v39 = vpop.f32.mrb[38].mxu1 }
 0x6ac   :  { %v6705_v40 = vpop.f32.mrb[39].mxu1 }
 0x6ad   :  { %v1353_v43 = vadd.f32 %v1351_v35, %v6705_v40 }
 0x6af   :  { %v1372_v44 = vpack.c.bf16 %v1353_v43, %v1352_v38  ;;  %v1831_v45 = vpack.c.bf16 %v1354_v37, %v1353_v43 }
 0x6b1   :  { %v1378_v41 = vsel %vm187_vm2, %v1372_v44, 0 }
 0x6b8   :  { %1487 = vrot.lane.b32.xlu1 %v1372_v44, %s6316_s19 }
 0x6bc   :  { %1597 = vrot.lane.b32.xlu1 %v1372_v44, %s6317_s20 }
 0x734   :  { %v1168_v60 = vpop.xlane.xlu1 %1167 }
 0x735   :  { %v1172_v61 = vmul.f32 0.03125, %v1168_v60 }
 0x736   :  { %v1171_v62 = vpop.xlane.xlu0 %1170 }
 0x737   :  { %v1174_v52 = vsub.f32 %v6646_v53, %v1172_v61  ;;  %v1173_v0 = vmul.f32 0.03125, %v1171_v62  ;;  %v1834_v61 = vrot.slane %v1831_v45, 2 }
 0x738   :  { %v1488_v57 = vpop.permute.xlu1 %1487 }
 0x739   :  { %v1175_v56 = vsub.f32 %v6649_v46, %v1173_v0  ;;  %v1176_v2 = vmul.f32 %v1174_v52, %v1174_v52  ;;  %v1493_v58 = vsel %vm187_vm2, %v1488_v57, 0  ;;  %v1839_v8 = vsel %vm187_vm2, %v1834_v61, 0 }
 0x73b   :  { %v1178_v1 = vsel %vm50_vm0, %v1176_v2, 0.0  ;;  %v1177_v59 = vmul.f32 %v1175_v56, %v1175_v56 }
 0x73c   :  { %1179 = vadd.xlane.f32.xlu0 %v1178_v1 }
 0x73d   :  { %v1181_v3 = vsel %vm50_vm0, %v1177_v59, 0.0 }
 0x740   :  { %1182 = vadd.xlane.f32.xlu0 %v1181_v3 }
 0x7c9   :  { %v1180_v10 = vpop.xlane.xlu0 %1179 }
 0x7ca   :  { %v1184_v11 = vmul.f32 0.03125, %v1180_v10 }
 0x7cc   :  { %v1186_v12 = vadd.f32 1e-05, %v1184_v11 }
 0x7cd   :  { %v1183_v13 = vpop.xlane.xlu0 %1182 }
 0x7ce   :  { %6159 = vrsqrt.f32 %v1186_v12  ;;  %v1185_v14 = vmul.f32 0.03125, %v1183_v13 }
 0x7d0   :  { %v1187_v16 = vadd.f32 1e-05, %v1185_v14 }
 0x7d2   :  { %6161 = vrsqrt.f32 %v1187_v16 }
 0x7d8   :  { %v6160_v63 = vpop.eup %6159 }
 0x7d9   :  { %v1190_v22 = vmul.f32 %v6160_v63, %v1174_v52  ;;  %v6728_v52 = vsub.s32 6, %v6425_v18 }
 0x7db   :  { %v1196_v25 = vmul.f32 %v1195_v21, %v1190_v22  ;;  %v1358_v0 = vrot.slane %v6433_v20, %v6728_v52 }
 0x7dc   :  { %v6162_v24 = vpop.eup %6161 }
 0x7dd   :  { %v1191_v27 = vmul.f32 %v6162_v24, %v1175_v56  ;;  %v1202_v30 = vadd.f32 %v1201_v26, %v1196_v25  ;;  %v1598_v56 = vpop.permute.xlu1 %1597 }
 0x7de   :  { %v1603_v59 = vsel %vm187_vm2, %v1598_v56, 0 }
 0x7df   :  { %v1197_v29 = vmul.f32 %v1195_v21, %v1191_v27 }
 0x7e1   :  { %v1203_v31 = vadd.f32 %v1201_v26, %v1197_v29 }
 0x7e3   :  { %v1204_v33 = vpack.c.bf16 %v1203_v31, %v1202_v30 }
 0x7e5   :  { %5613 = vmatmul.mubr.msk.bf16.vlgmr.msra.gmra.mrb[36].mxu0 %vm50_vm0, %v1204_v33 }
 0x7e6   :  { %5626 = vmatprep.mubr.msk.bf16.mxu0 %vm6310_vm1, %v6309_v15  ;;  %5625 = vmatpush3.bf16.xpose.msra.mxu0 %v1378_v41 }
 0x7e7   :  { %5636 = vmatprep.subr.bf16.mxu0 %v6309_v15 }
 0x8b8   :  { %v1263_v48 = vpop.f32.mrb[36].mxu0 }
 0x8b9   :  { %v1264_v49 = vadd.f32 %v1263_v48, %v1213_v47  ;;  %v5614_v50 = vpop.f32.mrb[37].mxu0 }
 0x8ba   :  { %v1266_v51 = vpop.f32.mrb[38].mxu0 }
 0x8bb   :  { %v1371_v54 = vpack.c.bf16 %v1264_v49, %v1264_v49  ;;  %v5615_v55 = vpop.f32.mrb[39].mxu0  ;;  %v1267_v60 = vadd.f32 %v1266_v51, %v1213_v47 }
 0x8bd   :  { %1484 = vrot.lane.b32.xlu0 %v1371_v54, %s6316_s19  ;;  %1595 = vrot.lane.b32.xlu1 %v1371_v54, %s6317_s20  ;;  %v1830_v62 = vpack.c.bf16 %v1267_v60, %v1267_v60 }
 0x8be   :  { %5627 = vmatmul.mubr.msk.bf16.vlgmr.msra.gmra.mrb[40].mxu0 %vm187_vm2, %v1371_v54 }
 0x8bf   :  { %5637 = vmatpush3.bf16.xpose.msra.mxu0 %v1493_v58  ;;  %5638 = vmatprep.mubr.msk.bf16.mxu0 %vm6310_vm1, %v6309_v15 }
 0x8c0   :  { %5648 = vmatprep.subr.bf16.mxu0 %v6309_v15 }
 0x8c1   :  { %1705 = vrot.lane.b32.xlu0 %v1371_v54, %s6318_s21  ;;  %1707 = vrot.lane.b32.xlu1 %v1372_v44, %s6318_s21 }
 0x8c5   :  { %1944 = vrot.lane.b32.xlu0 %v1830_v62, %s6316_s19  ;;  %1946 = vrot.lane.b32.xlu1 %v1834_v61, %s6316_s19 }
 0x8c9   :  { %2054 = vrot.lane.b32.xlu0 %v1830_v62, %s6317_s20  ;;  %2056 = vrot.lane.b32.xlu1 %v1834_v61, %s6317_s20 }
 0x8cd   :  { %2164 = vrot.lane.b32.xlu0 %v1830_v62, %s6318_s21  ;;  %2166 = vrot.lane.b32.xlu1 %v1834_v61, %s6318_s21 }
 0x8d1   :  { %1360 = vrot.lane.b32.xlu1 %v1358_v0, %s6311_s30 }
 0x92f   :  { %v1485_v2 = vpop.permute.xlu0 %1484  ;;  %v1596_v1 = vpop.permute.xlu1 %1595 }
 0x930   :  { %5639 = vmatmul.mubr.msk.bf16.vlgmr.msra.gmra.mrb[44].mxu0 %vm187_vm2, %v1485_v2 }
 0x931   :  { %5649 = vmatpush3.bf16.xpose.msra.mxu0 %v1603_v59  ;;  %5650 = vmatprep.mubr.msk.bf16.mxu0 %vm6310_vm1, %v6309_v15 }
 0x932   :  { %5660 = vmatprep.subr.bf16.mxu0 %v6309_v15 }
 0x933   :  { %v1708_v3 = vpop.permute.xlu1 %1707  ;;  %v1706_v6 = vpop.permute.xlu0 %1705 }
 0x934   :  { %v1713_v5 = vsel %vm187_vm2, %v1708_v3, 0 }
 0x937   :  { %v1947_v4 = vpop.permute.xlu1 %1946  ;;  %v1945_v63 = vpop.permute.xlu0 %1944 }
 0x938   :  { %5651 = vmatmul.mubr.msk.bf16.vlgmr.msra.gmra.mrb[48].mxu0 %vm187_vm2, %v1596_v1  ;;  %v1952_v16 = vsel %vm187_vm2, %v1947_v4, 0 }
 0x939   :  { %5661 = vmatpush3.bf16.xpose.msra.mxu0 %v1713_v5  ;;  %5662 = vmatprep.mubr.msk.bf16.mxu0 %vm6310_vm1, %v6309_v15 }
 0x93a   :  { %5672 = vmatprep.subr.bf16.mxu0 %v6309_v15 }
 0x93b   :  { %v2057_v20 = vpop.permute.xlu1 %2056  ;;  %v2055_v22 = vpop.permute.xlu0 %2054 }
 0x93c   :  { %v2062_v21 = vsel %vm187_vm2, %v2057_v20, 0 }
 0x93f   :  { %v2167_v7 = vpop.permute.xlu1 %2166  ;;  %v2165_v25 = vpop.permute.xlu0 %2164 }
 0x940   :  { %5663 = vmatmul.mubr.msk.bf16.vlgmr.msra.gmra.mrb[52].mxu0 %vm187_vm2, %v1706_v6  ;;  %v2172_v24 = vsel %vm187_vm2, %v2167_v7, 0 }
 0x941   :  { %5673 = vmatpush3.bf16.xpose.msra.mxu0 %v1839_v8  ;;  %5674 = vmatprep.mubr.msk.bf16.mxu0 %vm6310_vm1, %v6309_v15 }
 0x942   :  { %5684 = vmatprep.subr.bf16.mxu0 %v6309_v15 }
 0x943   :  { %v1361_v9 = vpop.permute.xlu1 %1360 }
 0x944   :  { %v1363_v10 = vadd.f32 %v1361_v9, %v6702_v28  ;;  %v1364_v11 = vadd.f32 %v1361_v9, %v6705_v40  ;;  %v1365_v12 = vadd.f32 %v6699_v36, %v1361_v9 }
 0x946   :  { %v1832_v13 = vpack.c.bf16 %v1365_v12, %v1364_v11  ;;  %v6753_v14 = vpack.c.bf16 %v1364_v11, %v1363_v10 }
 0x948   :  { %1546 = vrot.lane.b32.xlu1 %v6753_v14, %s6315_s18  ;;  %1433 = vrot.lane.b32.xlu0 %v6753_v14, %s6313_s16  ;;  %v1893_v50 = vrot.slane %v1832_v13, 2 }
 0x949   :  { %5675 = vmatmul.mubr.msk.bf16.vlgmr.msra.gmra.mrb[56].mxu0 %vm187_vm2, %v1830_v62 }
 0x94a   :  { %5685 = vmatpush3.bf16.xpose.msra.mxu0 %v1952_v16  ;;  %5686 = vmatprep.mubr.msk.bf16.mxu0 %vm6310_vm1, %v6309_v15 }
 0x94b   :  { %5696 = vmatprep.subr.bf16.mxu0 %v6309_v15 }
 0x94c   :  { %1656 = vrot.lane.b32.xlu0 %v6753_v14, %s6312_s15 }
 0x951   :  { %5687 = vmatmul.mubr.msk.bf16.vlgmr.msra.gmra.mrb[60].mxu0 %vm187_vm2, %v1945_v63 }
 0x952   :  { %5697 = vmatpush3.bf16.xpose.msra.mxu0 %v2062_v21  ;;  %5698 = vmatprep.mubr.msk.bf16.mxu0 %vm6310_vm1, %v6309_v15 }
 0x953   :  { %5708 = vmatprep.subr.bf16.mxu0 %v6309_v15 }
 0x959   :  { %5699 = vmatmul.mubr.msk.bf16.vlgmr.msra.gmra.mrb[64].mxu0 %vm187_vm2, %v2055_v22 }
 0x95a   :  { %5709 = vmatpush3.bf16.xpose.msra.mxu0 %v2172_v24  ;;  %5710 = vmatprep.mubr.msk.bf16.mxu0 %vm6310_vm1, %v6309_v15 }
 0x95b   :  { %5720 = vmatprep.subr.bf16.mxu0 %v6309_v15 }
 0x961   :  { %5711 = vmatmul.mubr.msk.bf16.vlgmr.msra.gmra.mrb[68].mxu0 %vm187_vm2, %v2165_v25 }
 0x962   :  { %5724 = vmatprep.mubr.msk.bf16.mxu0 %vm6310_vm1, %v6309_v15 }
 0x991   :  { %v1414_v27 = vpop.f32.mrb[40].mxu0 }
 0x992   :  { %v5628_v26 = vpop.f32.mrb[41].mxu0  ;;  %v1421_v29 = vsel %vm1420_vm6, %v1414_v27, -inf }
 0x993   :  { %1422 = vmax.xlane.f32.xlu0 %v1421_v29  ;;  %v1417_v30 = vpop.f32.mrb[42].mxu0 }
 0x994   :  { %v5629_v31 = vpop.f32.mrb[43].mxu0 }
 0x9ba   :  { %v1434_v33 = vpop.permute.xlu0 %1433  ;;  %v1547_v7 = vpop.permute.xlu1 %1546 }
 0x9bb   :  { %v1440_v35 = vsel %vm1438_vm7, %v1434_v33, 0  ;;  %v1552_v10 = vsel %vm1438_vm7, %v1547_v7, 0 }
 0x9bc   :  { %5631 = vmatpush3.bf16.msra.mxu1 %v1440_v35 }
 0x9bd   :  { %5642 = vmatprep.subr.bf16.mxu1 %v6309_v15 }
 0x9be   :  { %v1657_v55 = vpop.permute.xlu0 %1656 }
 0xa03   :  { %v6782_v36 = vpop.f32.mrb[44].mxu0 }
 0xa04   :  { %v5640_v37 = vpop.f32.mrb[45].mxu0  ;;  %v1535_v28 = vsel %vm1420_vm6, %v6782_v36, -inf }
 0xa05   :  { %1536 = vmax.xlane.f32.xlu1 %v1535_v28  ;;  %v1532_v38 = vpop.f32.mrb[46].mxu0 }
 0xa06   :  { %v5641_v39 = vpop.f32.mrb[47].mxu0  ;;  %v1662_v38 = vsel %vm1438_vm7, %v1657_v55, 0 }
 0xa0b   :  { %v1639_v40 = vpop.f32.mrb[48].mxu0 }
 0xa0c   :  { %v5652_v43 = vpop.f32.mrb[49].mxu0  ;;  %v1645_v44 = vsel %vm1420_vm6, %v1639_v40, -inf }
 0xa0d   :  { %1646 = vmax.xlane.f32.xlu0 %v1645_v44  ;;  %v1642_v45 = vpop.f32.mrb[50].mxu0 }
 0xa0e   :  { %v5653_v41 = vpop.f32.mrb[51].mxu0 }
 0xa13   :  { %v6787_v47 = vpop.f32.mrb[52].mxu0 }
 0xa14   :  { %v5664_v48 = vpop.f32.mrb[53].mxu0  ;;  %v1755_v49 = vsel %vm1420_vm6, %v6787_v47, -inf }
 0xa15   :  { %1756 = vmax.xlane.f32.xlu0 %v1755_v49  ;;  %v1752_v51 = vpop.f32.mrb[54].mxu0 }
 0xa16   :  { %1894 = vrot.lane.b32.xlu1 %v1893_v50, %s6313_s16  ;;  %v5665_v54 = vpop.f32.mrb[55].mxu0 }
 0xa1c   :  { %v6792_v57 = vpop.f32.mrb[56].mxu0 }
 0xa1d   :  { %v5676_v58 = vpop.f32.mrb[57].mxu0  ;;  %v1881_v16 = vsel %vm1420_vm6, %v6792_v57, -inf }
 0xa1e   :  { %v1878_v60 = vpop.f32.mrb[58].mxu0 }
 0xa1f   :  { %v5677_v61 = vpop.f32.mrb[59].mxu0 }
 0xa20   :  { %v1423_v62 = vpop.xlane.xlu0 %1422 }
 0xa21   :  { %v1424_v0 = vsub.f32 %v1414_v27, %v1423_v62 }
 0xa23   :  { %v1425_v56 = vmul.f32 1.442695, %v1424_v0 }
 0xa24   :  { %v6794_v2 = vpop.f32.mrb[60].mxu0 }
 0xa25   :  { %6163 = vpow2.f32 %v1425_v56  ;;  %v5688_v1 = vpop.f32.mrb[61].mxu0  ;;  %v1994_v63 = vsel %vm1420_vm6, %v6794_v2, -inf }
 0xa26   :  { %v1991_v59 = vpop.f32.mrb[62].mxu0 }
 0xa27   :  { %v5689_v3 = vpop.f32.mrb[63].mxu0 }
 0xa2b   :  { %1766 = vrot.lane.b32.xlu0 %v6753_v14, %s6314_s17 }
 0xa2c   :  { %v6798_v4 = vpop.f32.mrb[64].mxu0 }
 0xa2d   :  { %v5700_v5 = vpop.f32.mrb[65].mxu0  ;;  %v2104_v21 = vsel %vm1420_vm6, %v6798_v4, -inf }
 0xa2e   :  { %v2101_v20 = vpop.f32.mrb[66].mxu0 }
 0xa2f   :  { %v6800_v6 = vpop.eup %6163  ;;  %v5701_v8 = vpop.f32.mrb[67].mxu0 }
 0xa30   :  { %v1431_v9 = vpack.c.bf16 %v6800_v6, %v6800_v6 }
 0xa32   :  { %5633 = vmatmul.mubr.msk.bf16.vlgmr.msra.gmra.mrb[40].mxu1 %vm1420_vm6, %v1431_v9 }
 0xa33   :  { %5643 = vmatpush3.bf16.msra.mxu1 %v1552_v10  ;;  %5644 = vmatprep.mubr.msk.bf16.mxu1 %vm6310_vm1, %v6309_v15 }
 0xa34   :  { %v6808_v11 = vpop.f32.mrb[68].mxu0  ;;  %5654 = vmatprep.subr.bf16.mxu1 %v6309_v15 }
 0xa35   :  { %v5712_v12 = vpop.f32.mrb[69].mxu0  ;;  %v2214_v22 = vsel %vm1420_vm6, %v6808_v11, -inf }
 0xa36   :  { %v2211_v13 = vpop.f32.mrb[70].mxu0  ;;  %v1427_v12 = vsel %vm1420_vm6, %v6800_v6, 0.0 }
 0xa37   :  { %v5713_v14 = vpop.f32.mrb[71].mxu0 }
 0xa3a   :  { %1882 = vmax.xlane.f32.xlu1 %v1881_v16 }
 0xa3e   :  { %1995 = vmax.xlane.f32.xlu1 %v1994_v63 }
 0xa4a   :  { %2105 = vmax.xlane.f32.xlu0 %v2104_v21 }
 0xa4f   :  { %2005 = vrot.lane.b32.xlu1 %v1893_v50, %s6315_s18 }
 0xa60   :  { %2115 = vrot.lane.b32.xlu0 %v1893_v50, %s6312_s15 }
 0xa73   :  { %2215 = vmax.xlane.f32.xlu1 %v2214_v22 }
 0xa84   :  { %2225 = vrot.lane.b32.xlu1 %v1893_v50, %s6314_s17 }
 0xa92   :  { %v1537_v24 = vpop.xlane.xlu1 %1536 }
 0xa93   :  { %v1538_v25 = vsub.f32 %v6782_v36, %v1537_v24 }
 0xa95   :  { %v1539_v27 = vmul.f32 1.442695, %v1538_v25 }
 0xa97   :  { %6165 = vpow2.f32 %v1539_v27 }
 0xa9a   :  { %v1647_v26 = vpop.xlane.xlu0 %1646 }
 0xa9b   :  { %v1648_v29 = vsub.f32 %v1639_v40, %v1647_v26 }
 0xa9d   :  { %v1649_v30 = vmul.f32 1.442695, %v1648_v29 }
 0xa9f   :  { %6167 = vpow2.f32 %v1649_v30 }
 0xaa1   :  { %v6166_v31 = vpop.eup %6165 }
 0xaa2   :  { %v1757_v33 = vpop.xlane.xlu0 %1756  ;;  %v1541_v35 = vsel %vm1420_vm6, %v6166_v31, 0.0  ;;  %v1545_v37 = vpack.c.bf16 %v6166_v31, %v6166_v31 }
 0xaa3   :  { %v1758_v28 = vsub.f32 %v6787_v47, %v1757_v33  ;;  %1542 = vadd.xlane.f32.xlu0 %v1541_v35  ;;  %v1895_v47 = vpop.permute.xlu1 %1894 }
 0xaa4   :  { %5645 = vmatmul.mubr.msk.bf16.vlgmr.msra.gmra.mrb[44].mxu1 %vm1420_vm6, %v1545_v37  ;;  %v1900_v49 = vsel %vm1438_vm7, %v1895_v47, 0 }
 0xaa5   :  { %v1759_v39 = vmul.f32 1.442695, %v1758_v28  ;;  %5655 = vmatpush3.bf16.msra.mxu1 %v1662_v38  ;;  %5656 = vmatprep.mubr.msk.bf16.mxu1 %vm6310_vm1, %v6309_v15 }
 0xaa6   :  { %5666 = vmatprep.subr.bf16.mxu1 %v6309_v15  ;;  %v1767_v40 = vpop.permute.xlu0 %1766 }
 0xaa7   :  { %6169 = vpow2.f32 %v1759_v39  ;;  %v1772_v45 = vsel %vm1438_vm7, %v1767_v40, 0 }
 0xaa9   :  { %v6168_v36 = vpop.eup %6167 }
 0xaaa   :  { %v1651_v43 = vsel %vm1420_vm6, %v6168_v36, 0.0  ;;  %v1655_v44 = vpack.c.bf16 %v6168_v36, %v6168_v36 }
 0xaab   :  { %1652 = vadd.xlane.f32.xlu0 %v1651_v43 }
 0xaac   :  { %5657 = vmatmul.mubr.msk.bf16.vlgmr.msra.gmra.mrb[48].mxu1 %vm1420_vm6, %v1655_v44 }
 0xaad   :  { %5667 = vmatpush3.bf16.msra.mxu1 %v1772_v45  ;;  %5668 = vmatprep.mubr.msk.bf16.mxu1 %vm6310_vm1, %v6309_v15 }
 0xaae   :  { %5678 = vmatprep.subr.bf16.mxu1 %v6309_v15 }
 0xab1   :  { %v6170_v41 = vpop.eup %6169 }
 0xab2   :  { %v1765_v48 = vpack.c.bf16 %v6170_v41, %v6170_v41  ;;  %v1761_v10 = vsel %vm1420_vm6, %v6170_v41, 0.0 }
 0xab4   :  { %5669 = vmatmul.mubr.msk.bf16.vlgmr.msra.gmra.mrb[52].mxu1 %vm1420_vm6, %v1765_v48 }
 0xab5   :  { %5679 = vmatpush3.bf16.msra.mxu1 %v1900_v49  ;;  %5680 = vmatprep.mubr.msk.bf16.mxu1 %vm6310_vm1, %v6309_v15 }
 0xab6   :  { %5690 = vmatprep.subr.bf16.mxu1 %v6309_v15 }
 0xac7   :  { %v1883_v50 = vpop.xlane.xlu1 %1882 }
 0xac8   :  { %v1884_v51 = vsub.f32 %v6792_v57, %v1883_v50 }
 0xaca   :  { %v1885_v54 = vmul.f32 1.442695, %v1884_v51 }
 0xacb   :  { %v1996_v55 = vpop.xlane.xlu1 %1995 }
 0xacc   :  { %6171 = vpow2.f32 %v1885_v54  ;;  %v1997_v58 = vsub.f32 %v6794_v2, %v1996_v55 }
 0xace   :  { %v1998_v60 = vmul.f32 1.442695, %v1997_v58 }
 0xacf   :  { %v2006_v62 = vpop.permute.xlu1 %2005 }
 0xad0   :  { %6173 = vpow2.f32 %v1998_v60  ;;  %v2011_v59 = vsel %vm1438_vm7, %v2006_v62, 0 }
 0xad6   :  { %v6172_v61 = vpop.eup %6171 }
 0xad7   :  { %v2106_v0 = vpop.xlane.xlu0 %2105  ;;  %v1891_v56 = vpack.c.bf16 %v6172_v61, %v6172_v61 }
 0xad8   :  { %v2107_v1 = vsub.f32 %v6798_v4, %v2106_v0 }
 0xad9   :  { %5681 = vmatmul.mubr.msk.bf16.vlgmr.msra.gmra.mrb[56].mxu1 %vm1420_vm6, %v1891_v56 }
 0xada   :  { %v6174_v3 = vpop.eup %6173  ;;  %v2108_v5 = vmul.f32 1.442695, %v2107_v1  ;;  %5691 = vmatpush3.bf16.msra.mxu1 %v2011_v59  ;;  %5692 = vmatprep.mubr.msk.bf16.mxu1 %vm6310_vm1, %v6309_v15  ;;  %v6097_v1 = vld [vmem:[%s7506_s3 + $0x20] sm:$0xff]  }
 0xadb   :  { %v2000_v57 = vsel %vm1420_vm6, %v6174_v3, 0.0  ;;  %5702 = vmatprep.subr.bf16.mxu1 %v6309_v15  ;;  %v2116_v2 = vpop.permute.xlu0 %2115  ;;  %v2004_v20 = vpack.c.bf16 %v6174_v3, %v6174_v3  ;;  %5721 = vmatpush3.bf16.msra.mxu0 %v6097_v1 }
 0xadc   :  { %6175 = vpow2.f32 %v2108_v5  ;;  %2001 = vadd.xlane.f32.xlu1 %v2000_v57  ;;  %v2121_v4 = vsel %vm1438_vm7, %v2116_v2, 0  ;;  %5722 = vmatprep.subr.bf16.mxu0 %v6309_v15 }
 0xae1   :  { %5693 = vmatmul.mubr.msk.bf16.vlgmr.msra.gmra.mrb[60].mxu1 %vm1420_vm6, %v2004_v20 }
 0xae2   :  { %5703 = vmatpush3.bf16.msra.mxu1 %v2121_v4  ;;  %5704 = vmatprep.mubr.msk.bf16.mxu1 %vm6310_vm1, %v6309_v15 }
 0xae3   :  { %5714 = vmatprep.subr.bf16.mxu1 %v6309_v15 }
 0xae6   :  { %v6176_v7 = vpop.eup %6175 }
 0xae7   :  { %v2110_v8 = vsel %vm1420_vm6, %v6176_v7, 0.0  ;;  %v2114_v9 = vpack.c.bf16 %v6176_v7, %v6176_v7 }
 0xae8   :  { %2111 = vadd.xlane.f32.xlu0 %v2110_v8 }
 0xae9   :  { %5705 = vmatmul.mubr.msk.bf16.vlgmr.msra.gmra.mrb[64].mxu1 %vm1420_vm6, %v2114_v9 }
 0xaea   :  { %5716 = vmatprep.mubr.msk.bf16.mxu1 %vm6310_vm1, %v6309_v15 }
 0xaec   :  { %1762 = vadd.xlane.f32.xlu0 %v1761_v10 }
 0xaf0   :  { %1428 = vadd.xlane.f32.xlu0 %v1427_v12 }
 0xb00   :  { %v2216_v13 = vpop.xlane.xlu1 %2215 }
 0xb01   :  { %v2217_v14 = vsub.f32 %v6808_v11, %v2216_v13  ;;  %v1887_v11 = vsel %vm1420_vm6, %v6172_v61, 0.0 }
 0xb03   :  { %v2218_v16 = vmul.f32 1.442695, %v2217_v14  ;;  %v6098_v14 = vld [vmem:[%s7506_s3 + $0x28] sm:$0xff]  }
 0xb04   :  { %v2226_v63 = vpop.permute.xlu1 %2225  ;;  %5723 = vmatpush3.bf16.msra.mxu0 %v6098_v14  ;;  %v6099_v14 = vld [vmem:[%s7508_s5] sm:$0xff]  }
 0xb05   :  { %6177 = vpow2.f32 %v2218_v16  ;;  %v6863_v21 = vpop.f32.mrb[40].mxu1  ;;  %v2231_v22 = vsel %vm1438_vm7, %v2226_v63, 0  ;;  %5736 = vmatprep.subr.bf16.mxu0 %v6309_v15 }
 0xb06   :  { %v5634_v24 = vpop.f32.mrb[41].mxu1  ;;  %5715 = vmatpush3.bf16.msra.mxu1 %v2231_v22 }
 0xb07   :  { %v1479_v25 = vpop.f32.mrb[42].mxu1  ;;  %5728 = vmatprep.subr.bf16.mxu1 %v6309_v15 }
 0xb08   :  { %v5635_v27 = vpop.f32.mrb[43].mxu1 }
 0xb0f   :  { %v6178_v26 = vpop.eup %6177 }
 0xb10   :  { %v2220_v6 = vsel %vm1420_vm6, %v6178_v26, 0.0  ;;  %v2224_v29 = vpack.c.bf16 %v6178_v26, %v6178_v26 }
 0xb11   :  { %2221 = vadd.xlane.f32.xlu1 %v2220_v6 }
 0xb12   :  { %5717 = vmatmul.mubr.msk.bf16.vlgmr.msra.gmra.mrb[68].mxu1 %vm1420_vm6, %v2224_v29 }
 0xb13   :  { %5732 = vmatprep.mubr.msk.bf16.mxu1 %vm6310_vm1, %v6309_v15  ;;  %5729 = vmatpush3.bf16.msra.mxu1 %v6099_v14 }
 0xb14   :  { %5730 = vmatprep.subr.bf16.mxu1 %v6309_v15 }
 0xb15   :  { %1888 = vadd.xlane.f32.xlu1 %v1887_v11 }
 0xb30   :  { %v1543_v45 = vpop.xlane.xlu0 %1542 }
 0xb31   :  { %6179 = vrcp.f32 %v1543_v45 }
 0xb38   :  { %v1653_v47 = vpop.xlane.xlu0 %1652 }
 0xb3b   :  { %v6180_v55 = vpop.eup %6179 }
 0xb69   :  { %v2002_v41 = vpop.xlane.xlu1 %2001 }
 0xb6a   :  { %6181 = vrcp.f32 %v2002_v41 }
 0xb6b   :  { %6183 = vrcp.f32 %v1653_v47 }
 0xb74   :  { %v6182_v58 = vpop.eup %6181 }
 0xb75   :  { %v2112_v51 = vpop.xlane.xlu0 %2111  ;;  %v6184_v5 = vpop.eup %6183 }
 0xb76   :  { %6185 = vrcp.f32 %v2112_v51 }
 0xb77   :  { %v1588_v30 = vpop.f32.mrb[44].mxu1 }
 0xb78   :  { %v5646_v31 = vpop.f32.mrb[45].mxu1  ;;  %v1594_v61 = vmul.f32 %v6180_v55, %v1588_v30 }
 0xb79   :  { %v1591_v33 = vpop.f32.mrb[46].mxu1  ;;  %v1763_v12 = vpop.xlane.xlu0 %1762 }
 0xb7a   :  { %v5647_v35 = vpop.f32.mrb[47].mxu1  ;;  %6187 = vrcp.f32 %v1763_v12 }
 0xb7d   :  { %v1429_v11 = vpop.xlane.xlu0 %1428 }
 0xb7f   :  { %v1698_v37 = vpop.f32.mrb[48].mxu1 }
 0xb80   :  { %v5658_v28 = vpop.f32.mrb[49].mxu1  ;;  %v6186_v57 = vpop.eup %6185  ;;  %v1704_v20 = vmul.f32 %v6184_v5, %v1698_v37 }
 0xb81   :  { %v1701_v38 = vpop.f32.mrb[50].mxu1 }
 0xb82   :  { %v5659_v39 = vpop.f32.mrb[51].mxu1 }
 0xb84   :  { %v6188_v16 = vpop.eup %6187 }
 0xb87   :  { %v1808_v36 = vpop.f32.mrb[52].mxu1 }
 0xb88   :  { %v5670_v40 = vpop.f32.mrb[53].mxu1  ;;  %v1814_v24 = vmul.f32 %v6188_v16, %v1808_v36  ;;  %v6100_v16 = vld [vmem:[%s7508_s5 + $0x8] sm:$0xff]  }
 0xb89   :  { %v1811_v43 = vpop.f32.mrb[54].mxu1  ;;  %5731 = vmatpush3.bf16.msra.mxu1 %v6100_v16  ;;  %v6105_v16 = vld [vmem:[%s7505_s2 + $0x10] sm:$0xff]  }
 0xb8a   :  { %v5671_v44 = vpop.f32.mrb[55].mxu1  ;;  %5748 = vmatprep.subr.bf16.mxu1 %v6309_v15 }
 0xb9e   :  { %v2222_v13 = vpop.xlane.xlu1 %2221 }
 0xb9f   :  { %6189 = vrcp.f32 %v2222_v13 }
 0xba0   :  { %6191 = vrcp.f32 %v1429_v11 }
 0xba2   :  { %v1889_v30 = vpop.xlane.xlu1 %1888 }
 0xba3   :  { %6193 = vrcp.f32 %v1889_v30  ;;  %v6280_v30 = vld [vmem:[%s7511_s8 + $0x8] sm:$0x7f] }
 0xba9   :  { %v6190_v63 = vpop.eup %6189 }
 0xbaa   :  { %v6192_v33 = vpop.eup %6191 }
 0xbab   :  { %v1482_v43 = vmul.f32 %v6192_v33, %v6863_v21  ;;  %v2292_v21 = vsub.s32 7, %v6425_v18 }
 0xbac   :  { %v1936_v48 = vpop.f32.mrb[56].mxu1 }
 0xbad   :  { %v5682_v49 = vpop.f32.mrb[57].mxu1  ;;  %v6194_v37 = vpop.eup %6193 }
 0xbae   :  { %v1939_v50 = vpop.f32.mrb[58].mxu1  ;;  %v1942_v36 = vmul.f32 %v6194_v37, %v1936_v48  ;;  %v6279_v48 = vld [vmem:[%s7511_s8] sm:$0xff] }
 0xbaf   :  { %v5683_v54 = vpop.f32.mrb[59].mxu1 }
 0xbb4   :  { %v2047_v60 = vpop.f32.mrb[60].mxu1 }
 0xbb5   :  { %v2053_v62 = vmul.f32 %v6182_v58, %v2047_v60  ;;  %v5694_v0 = vpop.f32.mrb[61].mxu1  ;;  %v2293_v60 = vrot.slane %v6279_v48, %v2292_v21 }
 0xbb6   :  { %v2050_v56 = vpop.f32.mrb[62].mxu1 }
 0xbb7   :  { %v6042_v59 = vpack.i.bf16 %v2053_v62, %v1594_v61  ;;  %v5695_v3 = vpop.f32.mrb[63].mxu1 }
 0xbb9   :  { %6043 = vrot.lane.b32.xlu0 %v6042_v59, %s6323_s27 }
 0xbbc   :  { %v2157_v2 = vpop.f32.mrb[64].mxu1 }
 0xbbd   :  { %v2163_v4 = vmul.f32 %v6186_v57, %v2157_v2  ;;  %v5706_v7 = vpop.f32.mrb[65].mxu1 }
 0xbbe   :  { %v2160_v8 = vpop.f32.mrb[66].mxu1 }
 0xbbf   :  { %v6047_v9 = vpack.i.bf16 %v2163_v4, %v1704_v20  ;;  %v5707_v10 = vpop.f32.mrb[67].mxu1 }
 0xbc1   :  { %6048 = vrot.lane.b32.xlu1 %v6047_v9, %s6324_s28 }
 0xbe5   :  { %v2267_v22 = vpop.f32.mrb[68].mxu1 }
 0xbe6   :  { %v2273_v25 = vmul.f32 %v6190_v63, %v2267_v22  ;;  %v5718_v27 = vpop.f32.mrb[69].mxu1  ;;  %v6101_v63 = vld [vmem:[%s7509_s6] sm:$0xff]   ;;  %v6102_v22 = vld [vmem:[%s7509_s6 + $0x8] sm:$0xff]  }
 0xbe7   :  { %v2270_v26 = vpop.f32.mrb[70].mxu1 }
 0xbe8   :  { %v6052_v6 = vpack.i.bf16 %v2273_v25, %v1814_v24  ;;  %v5719_v29 = vpop.f32.mrb[71].mxu1 }
 0xbea   :  { %6053 = vrot.lane.b32.xlu1 %v6052_v6, %s6325_s14 }
 0xc2b   :  { %v6044_v31 = vpop.permute.xlu0 %6043 }
 0xc2c   :  { %v6046_v28 = vunpack.i.h.bf16 %v6044_v31  ;;  %v6045_v38 = vunpack.i.l.bf16 %v6044_v31  ;;  %v2381_v31 = vrot.slane %v6280_v30, %v6695_v34 }
 0xc2e   :  { %v1827_v45 = vsel %vm187_vm2, %v1482_v43, %v6045_v38  ;;  %v2286_v41 = vsel %vm187_vm2, %v1942_v36, %v6046_v28  ;;  %v2387_v38 = vrot.slane %v6280_v30, %v6728_v52 }
 0xc33   :  { %v6049_v35 = vpop.permute.xlu1 %6048 }
 0xc34   :  { %v6051_v39 = vunpack.i.h.bf16 %v6049_v35  ;;  %v6050_v40 = vunpack.i.l.bf16 %v6049_v35 }
 0xc36   :  { %v2287_v50 = vsel %vm640_vm4, %v2286_v41, %v6051_v39  ;;  %v1828_v51 = vsel %vm640_vm4, %v1827_v45, %v6050_v40  ;;  %v6104_v45 = vld [vmem:[%s7509_s6 + $0x18] sm:$0xff]   ;;  %v5212_v41 = vld [vmem:[%s7512_s9] ss:$0 sm:$0xff] }
 0xc5c   :  { %v6054_v44 = vpop.permute.xlu1 %6053 }
 0xc5d   :  { %v6056_v47 = vunpack.i.h.bf16 %v6054_v44  ;;  %v6055_v49 = vunpack.i.l.bf16 %v6054_v44  ;;  %v6103_v44 = vld [vmem:[%s7509_s6 + $0x10] sm:$0xff]  }
 0xc5f   :  { %v1829_v54 = vsel %vm642_vm5, %v1828_v51, %v6055_v49  ;;  %v2288_v55 = vsel %vm642_vm5, %v2287_v50, %v6056_v47 }
 0xc60   :  { %v2289_v58 = vpack.c.bf16 %v2288_v55, %v1829_v54 }
 0xc62   :  { %5725 = vmatmul.mubr.msk.bf16.vlgmr.msra.gmra.mrb[72].mxu0 %vm50_vm0, %v2289_v58 }
 0xc63   :  { %5744 = vmatprep.mubr.msk.bf16.mxu0 %vm6310_vm1, %v6309_v15  ;;  %5737 = vmatpush3.bf16.msra.mxu0 %v6101_v63  ;;  %v6106_v63 = vld [vmem:[%s7505_s2 + $0x18] sm:$0xff]  }
 0xc64   :  { %5738 = vmatprep.subr.bf16.mxu0 %v6309_v15 }
 0xc67   :  { %5739 = vmatpush3.bf16.msra.mxu0 %v6102_v22  ;;  %v6976_v22 = vld [vmem:[%s7511_s8 + $0x10] sm:$0xff] }
 0xc68   :  { %5740 = vmatprep.subr.bf16.mxu0 %v6309_v15 }
 0xc6b   :  { %5741 = vmatpush3.bf16.msra.mxu0 %v6103_v44 }
 0xc6c   :  { %5742 = vmatprep.subr.bf16.mxu0 %v6309_v15 }
 0xc6f   :  { %5743 = vmatpush3.bf16.msra.mxu0 %v6104_v45 }
 0xc70   :  { %5762 = vmatprep.subr.bf16.mxu0 %v6309_v15 }
 0xd35   :  { %v2343_v61 = vpop.f32.mrb[72].mxu0 }
 0xd36   :  { %v2344_v62 = vadd.f32 %v2343_v61, %v2293_v60  ;;  %v5726_v0 = vpop.f32.mrb[73].mxu0  ;;  %v2543_v61 = vrot.slane %v6280_v30, %v6454_v42  ;;  %v6985_v30 = vld [vmem:[%s7511_s8 + $0x18] sm:$0x7f] }
 0xd37   :  { %v2346_v56 = vpop.f32.mrb[74].mxu0 }
 0xd38   :  { %v6900_v1 = vadd.f32 %v2344_v62, %v6646_v53  ;;  %v2347_v59 = vadd.f32 %v2346_v56, %v2293_v60  ;;  %v5727_v3 = vpop.f32.mrb[75].mxu0 }
 0xd3a   :  { %v6903_v5 = vadd.f32 %v2347_v59, %v6649_v46  ;;  %v2352_v57 = vsel %vm50_vm0, %v6900_v1, 0.0 }
 0xd3b   :  { %2353 = vadd.xlane.f32.xlu1 %v2352_v57 }
 0xd3c   :  { %v2355_v2 = vsel %vm50_vm0, %v6903_v5, 0.0 }
 0xd3d   :  { %2356 = vadd.xlane.f32.xlu0 %v2355_v2 }
 0xdc8   :  { %v2354_v20 = vpop.xlane.xlu1 %2353 }
 0xdc9   :  { %v2358_v4 = vmul.f32 0.03125, %v2354_v20 }
 0xdca   :  { %v2357_v7 = vpop.xlane.xlu0 %2356 }
 0xdcb   :  { %v2360_v8 = vsub.f32 %v6900_v1, %v2358_v4  ;;  %v2359_v53 = vmul.f32 0.03125, %v2357_v7 }
 0xdcd   :  { %v2361_v9 = vsub.f32 %v6903_v5, %v2359_v53  ;;  %v2362_v10 = vmul.f32 %v2360_v8, %v2360_v8 }
 0xdcf   :  { %v2364_v46 = vsel %vm50_vm0, %v2362_v10, 0.0  ;;  %v2363_v12 = vmul.f32 %v2361_v9, %v2361_v9 }
 0xdd0   :  { %2365 = vadd.xlane.f32.xlu0 %v2364_v46 }
 0xdd1   :  { %v2367_v13 = vsel %vm50_vm0, %v2363_v12, 0.0 }
 0xdd4   :  { %2368 = vadd.xlane.f32.xlu0 %v2367_v13 }
 0xe5d   :  { %v2366_v24 = vpop.xlane.xlu0 %2365 }
 0xe5e   :  { %v2370_v25 = vmul.f32 0.03125, %v2366_v24  ;;  %v2658_v24 = vrot.slane %v6976_v22, %v6428_v19 }
 0xe60   :  { %v2372_v27 = vadd.f32 1e-05, %v2370_v25 }
 0xe61   :  { %v2369_v26 = vpop.xlane.xlu0 %2368 }
 0xe62   :  { %6195 = vrsqrt.f32 %v2372_v27  ;;  %v2371_v6 = vmul.f32 0.03125, %v2369_v26 }
 0xe64   :  { %v2373_v29 = vadd.f32 1e-05, %v2371_v6 }
 0xe66   :  { %6197 = vrsqrt.f32 %v2373_v29 }
 0xe6c   :  { %v6196_v11 = vpop.eup %6195 }
 0xe6d   :  { %v2376_v33 = vmul.f32 %v6196_v11, %v2360_v8 }
 0xe6f   :  { %v2382_v37 = vmul.f32 %v2381_v31, %v2376_v33 }
 0xe70   :  { %v6198_v35 = vpop.eup %6197 }
 0xe71   :  { %v2377_v28 = vmul.f32 %v6198_v35, %v2361_v9  ;;  %v2388_v40 = vadd.f32 %v2387_v38, %v2382_v37 }
 0xe73   :  { %v2383_v39 = vmul.f32 %v2381_v31, %v2377_v28  ;;  %v2578_v31 = vrot.slane %v6985_v30, %v6428_v19 }
 0xe75   :  { %v2389_v36 = vadd.f32 %v2387_v38, %v2383_v39  ;;  %v2584_v39 = vrot.slane %v6985_v30, %v6446_v32 }
 0xe77   :  { %v2390_v43 = vpack.c.bf16 %v2389_v36, %v2388_v40 }
 0xe79   :  { %5733 = vmatmul.mubr.msk.bf16.vlgmr.msra.gmra.mrb[72].mxu1 %vm50_vm0, %v2390_v43 }
 0xe7a   :  { %5752 = vmatprep.mubr.msk.bf16.mxu1 %vm6310_vm1, %v6309_v15  ;;  %5749 = vmatpush3.bf16.msra.mxu1 %v6105_v16 }
 0xe7b   :  { %5750 = vmatprep.subr.bf16.mxu1 %v6309_v15 }
 0xe7e   :  { %5751 = vmatpush3.bf16.msra.mxu1 %v6106_v63 }
 0xe7f   :  { %5756 = vmatprep.subr.bf16.mxu1 %v6309_v15 }
 0xf4c   :  { %v2451_v47 = vpop.f32.mrb[72].mxu1 }
 0xf4d   :  { %v2452_v49 = vadd.f32 %v5212_v41, %v2451_v47  ;;  %v5734_v50 = vpop.f32.mrb[73].mxu1 }
 0xf4e   :  { %v2454_v51 = vpop.f32.mrb[74].mxu1 }
 0xf4f   :  { %v2455_v54 = vadd.f32 %v5212_v41, %v2454_v51  ;;  %v5735_v55 = vpop.f32.mrb[75].mxu1  ;;  %v2458_v58 = vmax.f32 %v2452_v49, 0.0  ;;  %v2652_v41 = vrot.slane %v6976_v22, %v6454_v42 }
 0xf51   :  { %v2459_v48 = vmax.f32 %v2455_v54, 0.0 }
 0xf53   :  { %v2460_v60 = vpack.c.bf16 %v2459_v48, %v2458_v58 }
 0xf55   :  { %5745 = vmatmul.mubr.msk.bf16.vlgmr.msra.gmra.mrb[76].mxu0 %vm2493_vm8, %v2460_v60 }
 0xf56   :  { %5764 = vmatprep.mubr.msk.bf16.mxu0 %vm6310_vm1, %v6309_v15 }
0x1028   :  { %v2531_v62 = vpop.f32.mrb[76].mxu0 }
0x1029   :  { %v2538_v0 = vadd.f32 %v2531_v62, %v6900_v1  ;;  %v5746_v56 = vpop.f32.mrb[77].mxu0 }
0x102a   :  { %v2534_v59 = vpop.f32.mrb[78].mxu0  ;;  %v2668_v56 = vrot.slane %v6976_v22, %v6446_v32 }
0x102b   :  { %v6953_v3 = vadd.f32 %v2543_v61, %v2538_v0  ;;  %v2539_v57 = vadd.f32 %v2534_v59, %v6903_v5  ;;  %v5747_v2 = vpop.f32.mrb[79].mxu0 }
0x102d   :  { %v6956_v20 = vadd.f32 %v2543_v61, %v2539_v57  ;;  %v2549_v4 = vsel %vm50_vm0, %v6953_v3, 0.0 }
0x102e   :  { %2550 = vadd.xlane.f32.xlu1 %v2549_v4 }
0x102f   :  { %v2552_v7 = vsel %vm50_vm0, %v6956_v20, 0.0 }
0x1030   :  { %2553 = vadd.xlane.f32.xlu0 %v2552_v7 }
0x10bb   :  { %v2551_v8 = vpop.xlane.xlu1 %2550 }
0x10bc   :  { %v2555_v53 = vmul.f32 0.03125, %v2551_v8 }
0x10bd   :  { %v2554_v1 = vpop.xlane.xlu0 %2553 }
0x10be   :  { %v2557_v9 = vsub.f32 %v6953_v3, %v2555_v53  ;;  %v2556_v10 = vmul.f32 0.03125, %v2554_v1 }
0x10c0   :  { %v2558_v46 = vsub.f32 %v6956_v20, %v2556_v10  ;;  %v2559_v5 = vmul.f32 %v2557_v9, %v2557_v9 }
0x10c2   :  { %v2561_v12 = vsel %vm50_vm0, %v2559_v5, 0.0  ;;  %v2560_v13 = vmul.f32 %v2558_v46, %v2558_v46 }
0x10c3   :  { %2562 = vadd.xlane.f32.xlu1 %v2561_v12 }
0x10c4   :  { %v2564_v14 = vsel %vm50_vm0, %v2560_v13, 0.0 }
0x10c5   :  { %2565 = vadd.xlane.f32.xlu0 %v2564_v14 }
0x10d4   :  { %2660 = vrot.lane.b32.xlu1 %v2658_v24, %s6311_s30 }
0x1150   :  { %v2563_v25 = vpop.xlane.xlu1 %2562 }
0x1151   :  { %v2567_v27 = vmul.f32 0.03125, %v2563_v25 }
0x1152   :  { %v2566_v26 = vpop.xlane.xlu0 %2565 }
0x1153   :  { %v2569_v6 = vadd.f32 1e-05, %v2567_v27  ;;  %v2568_v29 = vmul.f32 0.03125, %v2566_v26 }
0x1154   :  { %v2661_v45 = vpop.permute.xlu1 %2660 }
0x1155   :  { %6199 = vrsqrt.f32 %v2569_v6  ;;  %v2570_v11 = vadd.f32 1e-05, %v2568_v29 }
0x1157   :  { %6201 = vrsqrt.f32 %v2570_v11 }
0x115f   :  { %v6200_v33 = vpop.eup %6199 }
0x1160   :  { %v2573_v35 = vmul.f32 %v6200_v33, %v2557_v9 }
0x1161   :  { %v6202_v37 = vpop.eup %6201 }
0x1162   :  { %v2579_v28 = vmul.f32 %v2578_v31, %v2573_v35  ;;  %v2574_v38 = vmul.f32 %v6202_v37, %v2558_v46 }
0x1164   :  { %v2580_v40 = vmul.f32 %v2578_v31, %v2574_v38  ;;  %v2585_v36 = vadd.f32 %v2584_v39, %v2579_v28 }
0x1166   :  { %v2586_v43 = vadd.f32 %v2584_v39, %v2580_v40 }
0x1168   :  { %v2587_v44 = vpack.c.bf16 %v2586_v43, %v2585_v36 }
0x116a   :  { %5753 = vmatmul.mubr.msk.bf16.vlgmr.msra.gmra.mrb[76].mxu1 %vm50_vm0, %v2587_v44 }
0x116b   :  { %5758 = vmatprep.mubr.msk.bf16.mxu1 %vm6310_vm1, %v6309_v15 }
0x123d   :  { %v2642_v47 = vpop.f32.mrb[76].mxu1 }
0x123e   :  { %v2663_v49 = vadd.f32 %v2661_v45, %v2642_v47  ;;  %v5754_v50 = vpop.f32.mrb[77].mxu1  ;;  %v2653_v54 = vadd.f32 %v2652_v41, %v2642_v47 }
0x123f   :  { %v6996_v51 = vpop.f32.mrb[78].mxu1 }
0x1240   :  { %v2681_v55 = vpack.c.bf16 %v2663_v49, %v2663_v49  ;;  %v5755_v58 = vpop.f32.mrb[79].mxu1  ;;  %v2680_v48 = vpack.c.bf16 %v2653_v54, %v2653_v54  ;;  %v2664_v60 = vadd.f32 %v2661_v45, %v6996_v51  ;;  %v2654_v62 = vadd.f32 %v2652_v41, %v6996_v51 }
0x1242   :  { %2796 = vrot.lane.b32.xlu1 %v2681_v55, %s6315_s18  ;;  %2684 = vrot.lane.b32.xlu0 %v2681_v55, %s6313_s16  ;;  %v3140_v61 = vpack.c.bf16 %v2664_v60, %v2664_v60  ;;  %v3139_v0 = vpack.c.bf16 %v2654_v62, %v2654_v62 }
0x1246   :  { %2904 = vrot.lane.b32.xlu0 %v2680_v48, %s6317_s20  ;;  %2794 = vrot.lane.b32.xlu1 %v2680_v48, %s6316_s19 }
0x124a   :  { %3014 = vrot.lane.b32.xlu0 %v2680_v48, %s6318_s21  ;;  %2906 = vrot.lane.b32.xlu1 %v2681_v55, %s6312_s15 }
0x124e   :  { %3016 = vrot.lane.b32.xlu1 %v2681_v55, %s6314_s17  ;;  %3255 = vrot.lane.b32.xlu0 %v3140_v61, %s6315_s18 }
0x1252   :  { %3365 = vrot.lane.b32.xlu0 %v3140_v61, %s6312_s15  ;;  %3143 = vrot.lane.b32.xlu1 %v3140_v61, %s6313_s16 }
0x1256   :  { %3475 = vrot.lane.b32.xlu0 %v3140_v61, %s6314_s17  ;;  %3253 = vrot.lane.b32.xlu1 %v3139_v0, %s6316_s19 }
0x125a   :  { %2670 = vrot.lane.b32.xlu0 %v2668_v56, %s7524_s26  ;;  %3363 = vrot.lane.b32.xlu1 %v3139_v0, %s6317_s20 }
0x125e   :  { %3473 = vrot.lane.b32.xlu1 %v3139_v0, %s6318_s21 }
0x12b4   :  { %v2685_v59 = vpop.permute.xlu0 %2684  ;;  %v2797_v2 = vpop.permute.xlu1 %2796 }
0x12b5   :  { %v2690_v57 = vsel %vm187_vm2, %v2685_v59, 0  ;;  %v2802_v53 = vsel %vm187_vm2, %v2797_v2, 0 }
0x12b6   :  { %5757 = vmatpush3.bf16.xpose.msra.mxu1 %v2690_v57 }
0x12b7   :  { %5768 = vmatprep.subr.bf16.mxu1 %v6309_v15 }
0x12b8   :  { %v2905_v4 = vpop.permute.xlu0 %2904  ;;  %v2795_v7 = vpop.permute.xlu1 %2794 }
0x12bc   :  { %v3015_v8 = vpop.permute.xlu0 %3014  ;;  %v2907_v1 = vpop.permute.xlu1 %2906 }
0x12bd   :  { %5759 = vmatmul.mubr.msk.bf16.vlgmr.msra.gmra.mrb[80].mxu1 %vm187_vm2, %v2680_v48  ;;  %v2912_v10 = vsel %vm187_vm2, %v2907_v1, 0 }
0x12be   :  { %5769 = vmatpush3.bf16.xpose.msra.mxu1 %v2802_v53  ;;  %5770 = vmatprep.mubr.msk.bf16.mxu1 %vm6310_vm1, %v6309_v15 }
0x12bf   :  { %5780 = vmatprep.subr.bf16.mxu1 %v6309_v15 }
0x12c0   :  { %v3256_v32 = vpop.permute.xlu0 %3255  ;;  %v3017_v5 = vpop.permute.xlu1 %3016 }
0x12c1   :  { %v3022_v13 = vsel %vm187_vm2, %v3017_v5, 0  ;;  %v3261_v25 = vsel %vm187_vm2, %v3256_v32, 0 }
0x12c4   :  { %v3366_v9 = vpop.permute.xlu0 %3365  ;;  %v3144_v63 = vpop.permute.xlu1 %3143 }
0x12c5   :  { %5771 = vmatmul.mubr.msk.bf16.vlgmr.msra.gmra.mrb[84].mxu1 %vm187_vm2, %v2795_v7  ;;  %v3149_v24 = vsel %vm187_vm2, %v3144_v63, 0  ;;  %v3371_v26 = vsel %vm187_vm2, %v3366_v9, 0 }
0x12c6   :  { %5781 = vmatpush3.bf16.xpose.msra.mxu1 %v2912_v10  ;;  %5782 = vmatprep.mubr.msk.bf16.mxu1 %vm6310_vm1, %v6309_v15 }
0x12c7   :  { %5792 = vmatprep.subr.bf16.mxu1 %v6309_v15 }
0x12c8   :  { %v3476_v46 = vpop.permute.xlu0 %3475  ;;  %v3254_v27 = vpop.permute.xlu1 %3253 }
0x12c9   :  { %v3481_v29 = vsel %vm187_vm2, %v3476_v46, 0 }
0x12cc   :  { %v7029_v12 = vpop.permute.xlu0 %2670  ;;  %v3364_v6 = vpop.permute.xlu1 %3363 }
0x12cd   :  { %v2673_v14 = vadd.f32 %v7029_v12, %v2642_v47  ;;  %5783 = vmatmul.mubr.msk.bf16.vlgmr.msra.gmra.mrb[88].mxu1 %vm187_vm2, %v2905_v4 }
0x12ce   :  { %5793 = vmatpush3.bf16.xpose.msra.mxu1 %v3022_v13  ;;  %5794 = vmatprep.mubr.msk.bf16.mxu1 %vm6310_vm1, %v6309_v15 }
0x12cf   :  { %v2682_v16 = vpack.c.bf16 %v2673_v14, %v2673_v14  ;;  %5804 = vmatprep.subr.bf16.mxu1 %v6309_v15 }
0x12d0   :  { %v3474_v11 = vpop.permute.xlu1 %3473 }
0x12d1   :  { %2855 = vrot.lane.b32.xlu0 %v2682_v16, %s7525_s24  ;;  %2744 = vrot.lane.b32.xlu1 %v2682_v16, %s7524_s26 }
0x12d5   :  { %5795 = vmatmul.mubr.msk.bf16.vlgmr.msra.gmra.mrb[92].mxu1 %vm187_vm2, %v3015_v8  ;;  %2965 = vrot.lane.b32.xlu0 %v2682_v16, %s7526_s0 }
0x12d6   :  { %5805 = vmatpush3.bf16.xpose.msra.mxu1 %v3149_v24  ;;  %5806 = vmatprep.mubr.msk.bf16.mxu1 %vm6310_vm1, %v6309_v15  ;;  %v2674_v24 = vadd.f32 %v7029_v12, %v6996_v51 }
0x12d7   :  { %5816 = vmatprep.subr.bf16.mxu1 %v6309_v15 }
0x12dd   :  { %5807 = vmatmul.mubr.msk.bf16.vlgmr.msra.gmra.mrb[96].mxu1 %vm187_vm2, %v3139_v0 }
0x12de   :  { %5817 = vmatpush3.bf16.xpose.msra.mxu1 %v3261_v25  ;;  %5818 = vmatprep.mubr.msk.bf16.mxu1 %vm6310_vm1, %v6309_v15  ;;  %v3141_v25 = vpack.c.bf16 %v2674_v24, %v2674_v24 }
0x12df   :  { %5828 = vmatprep.subr.bf16.mxu1 %v6309_v15 }
0x12e5   :  { %5819 = vmatmul.mubr.msk.bf16.vlgmr.msra.gmra.mrb[100].mxu1 %vm187_vm2, %v3254_v27 }
0x12e6   :  { %5829 = vmatpush3.bf16.xpose.msra.mxu1 %v3371_v26  ;;  %5830 = vmatprep.mubr.msk.bf16.mxu1 %vm6310_vm1, %v6309_v15 }
0x12e7   :  { %5840 = vmatprep.subr.bf16.mxu1 %v6309_v15 }
0x12ed   :  { %5831 = vmatmul.mubr.msk.bf16.vlgmr.msra.gmra.mrb[104].mxu1 %vm187_vm2, %v3364_v6 }
0x12ee   :  { %5841 = vmatpush3.bf16.xpose.msra.mxu1 %v3481_v29  ;;  %5842 = vmatprep.mubr.msk.bf16.mxu1 %vm6310_vm1, %v6309_v15 }
0x12ef   :  { %5852 = vmatprep.subr.bf16.mxu1 %v6309_v15 }
0x12f5   :  { %5843 = vmatmul.mubr.msk.bf16.vlgmr.msra.gmra.mrb[108].mxu1 %vm187_vm2, %v3474_v11 }
0x12f6   :  { %5856 = vmatprep.mubr.msk.bf16.mxu1 %vm6310_vm1, %v6309_v15 }
0x1343   :  { %v2745_v31 = vpop.permute.xlu1 %2744  ;;  %v2856_v27 = vpop.permute.xlu0 %2855 }
0x1344   :  { %v2750_v33 = vsel %vm251_vm3, %v2745_v31, 0 }
0x1345   :  { %5763 = vmatpush3.bf16.msra.mxu0 %v2750_v33 }
0x1346   :  { %5774 = vmatprep.subr.bf16.mxu0 %v6309_v15 }
0x1347   :  { %v2966_v11 = vpop.permute.xlu0 %2965 }
0x1390   :  { %v2726_v35 = vpop.f32.mrb[80].mxu1 }
0x1391   :  { %v5760_v37 = vpop.f32.mrb[81].mxu1  ;;  %v2732_v28 = vsel %vm187_vm2, %v2726_v35, -inf }
0x1392   :  { %2733 = vmax.xlane.f32.xlu1 %v2732_v28  ;;  %v2729_v38 = vpop.f32.mrb[82].mxu1 }
0x1393   :  { %v5761_v39 = vpop.f32.mrb[83].mxu1 }
0x1394   :  { %v2861_v39 = vsel %vm251_vm3, %v2856_v27, 0 }
0x1398   :  { %v2838_v40 = vpop.f32.mrb[84].mxu1 }
0x1399   :  { %v5772_v36 = vpop.f32.mrb[85].mxu1  ;;  %v2844_v43 = vsel %vm187_vm2, %v2838_v40, -inf }
0x139a   :  { %2845 = vmax.xlane.f32.xlu0 %v2844_v43  ;;  %v2841_v44 = vpop.f32.mrb[86].mxu1 }
0x139b   :  { %v5773_v45 = vpop.f32.mrb[87].mxu1 }
0x13a0   :  { %v2948_v41 = vpop.f32.mrb[88].mxu1 }
0x13a1   :  { %v5784_v47 = vpop.f32.mrb[89].mxu1  ;;  %v2954_v49 = vsel %vm187_vm2, %v2948_v41, -inf }
0x13a2   :  { %2955 = vmax.xlane.f32.xlu0 %v2954_v49  ;;  %v2951_v50 = vpop.f32.mrb[90].mxu1 }
0x13a3   :  { %3075 = vrot.lane.b32.xlu1 %v2682_v16, %s7527_s22  ;;  %v5785_v54 = vpop.f32.mrb[91].mxu1 }
0x13a8   :  { %v7069_v55 = vpop.f32.mrb[92].mxu1 }
0x13a9   :  { %v5796_v58 = vpop.f32.mrb[93].mxu1  ;;  %v3064_v48 = vsel %vm187_vm2, %v7069_v55, -inf }
0x13aa   :  { %3065 = vmax.xlane.f32.xlu0 %v3064_v48  ;;  %v3061_v60 = vpop.f32.mrb[94].mxu1 }
0x13ab   :  { %v5797_v61 = vpop.f32.mrb[95].mxu1 }
0x13b0   :  { %v7073_v62 = vpop.f32.mrb[96].mxu1 }
0x13b1   :  { %v5808_v0 = vpop.f32.mrb[97].mxu1  ;;  %v3191_v56 = vsel %vm187_vm2, %v7073_v62, -inf }
0x13b2   :  { %3192 = vmax.xlane.f32.xlu0 %v3191_v56  ;;  %v3188_v59 = vpop.f32.mrb[98].mxu1 }
0x13b3   :  { %v5809_v57 = vpop.f32.mrb[99].mxu1 }
0x13b8   :  { %v7077_v2 = vpop.f32.mrb[100].mxu1 }
0x13b9   :  { %v5820_v4 = vpop.f32.mrb[101].mxu1  ;;  %v3303_v46 = vsel %vm187_vm2, %v7077_v2, -inf }
0x13ba   :  { %v3300_v7 = vpop.f32.mrb[102].mxu1 }
0x13bb   :  { %v5821_v8 = vpop.f32.mrb[103].mxu1 }
0x13c0   :  { %v7079_v53 = vpop.f32.mrb[104].mxu1 }
0x13c1   :  { %v5832_v32 = vpop.f32.mrb[105].mxu1  ;;  %v3413_v1 = vsel %vm187_vm2, %v7079_v53, -inf }
0x13c2   :  { %3414 = vmax.xlane.f32.xlu0 %v3413_v1  ;;  %v3410_v9 = vpop.f32.mrb[106].mxu1 }
0x13c3   :  { %v5833_v10 = vpop.f32.mrb[107].mxu1 }
0x13c7   :  { %3304 = vmax.xlane.f32.xlu1 %v3303_v46 }
0x13c8   :  { %v7085_v5 = vpop.f32.mrb[108].mxu1 }
0x13c9   :  { %v5844_v13 = vpop.f32.mrb[109].mxu1  ;;  %v3523_v14 = vsel %vm187_vm2, %v7085_v5, -inf }
0x13ca   :  { %3524 = vmax.xlane.f32.xlu0 %v3523_v14  ;;  %v3520_v16 = vpop.f32.mrb[110].mxu1 }
0x13cb   :  { %v5845_v63 = vpop.f32.mrb[111].mxu1 }
0x13d8   :  { %3314 = vrot.lane.b32.xlu1 %v3141_v25, %s7525_s24 }
0x13dc   :  { %3424 = vrot.lane.b32.xlu1 %v3141_v25, %s7526_s0 }
0x13e0   :  { %3534 = vrot.lane.b32.xlu1 %v3141_v25, %s7527_s22  ;;  %3203 = vrot.lane.b32.xlu0 %v3141_v25, %s7524_s26 }
0x141f   :  { %v2734_v26 = vpop.xlane.xlu1 %2733 }
0x1420   :  { %v2735_v6 = vsub.f32 %v2726_v35, %v2734_v26 }
0x1422   :  { %v2736_v29 = vmul.f32 1.442695, %v2735_v6 }
0x1423   :  { %v3076_v50 = vpop.permute.xlu1 %3075 }
0x1424   :  { %6203 = vpow2.f32 %v2736_v29 }
0x1427   :  { %v2846_v31 = vpop.xlane.xlu0 %2845 }
0x1428   :  { %v2847_v33 = vsub.f32 %v2838_v40, %v2846_v31 }
0x142a   :  { %v2848_v37 = vmul.f32 1.442695, %v2847_v33 }
0x142c   :  { %6205 = vpow2.f32 %v2848_v37 }
0x142e   :  { %v6204_v51 = vpop.eup %6203 }
0x142f   :  { %v2956_v12 = vpop.xlane.xlu0 %2955  ;;  %v2742_v28 = vpack.c.bf16 %v6204_v51, %v6204_v51  ;;  %v2738_v59 = vsel %vm187_vm2, %v6204_v51, 0.0 }
0x1430   :  { %v2957_v38 = vsub.f32 %v2948_v41, %v2956_v12  ;;  %v2971_v41 = vsel %vm251_vm3, %v2966_v11, 0 }
0x1431   :  { %5765 = vmatmul.mubr.msk.bf16.vlgmr.msra.gmra.mrb[80].mxu0 %vm187_vm2, %v2742_v28 }
0x1432   :  { %v2958_v36 = vmul.f32 1.442695, %v2957_v38  ;;  %5775 = vmatpush3.bf16.msra.mxu0 %v2861_v39  ;;  %5776 = vmatprep.mubr.msk.bf16.mxu0 %vm6310_vm1, %v6309_v15 }
0x1433   :  { %5786 = vmatprep.subr.bf16.mxu0 %v6309_v15 }
0x1434   :  { %6207 = vpow2.f32 %v2958_v36 }
0x1436   :  { %v6206_v35 = vpop.eup %6205 }
0x1437   :  { %v3066_v40 = vpop.xlane.xlu0 %3065  ;;  %v2850_v43 = vsel %vm187_vm2, %v6206_v35, 0.0  ;;  %v2854_v44 = vpack.c.bf16 %v6206_v35, %v6206_v35 }
0x1438   :  { %v3067_v45 = vsub.f32 %v7069_v55, %v3066_v40  ;;  %2851 = vadd.xlane.f32.xlu1 %v2850_v43  ;;  %v3081_v55 = vsel %vm251_vm3, %v3076_v50, 0 }
0x1439   :  { %5777 = vmatmul.mubr.msk.bf16.vlgmr.msra.gmra.mrb[84].mxu0 %vm187_vm2, %v2854_v44 }
0x143a   :  { %v3068_v47 = vmul.f32 1.442695, %v3067_v45  ;;  %5787 = vmatpush3.bf16.msra.mxu0 %v2971_v41  ;;  %5788 = vmatprep.mubr.msk.bf16.mxu0 %vm6310_vm1, %v6309_v15 }
0x143b   :  { %5798 = vmatprep.subr.bf16.mxu0 %v6309_v15 }
0x143c   :  { %6209 = vpow2.f32 %v3068_v47 }
0x143e   :  { %v6208_v49 = vpop.eup %6207 }
0x143f   :  { %v2960_v54 = vsel %vm187_vm2, %v6208_v49, 0.0  ;;  %v2964_v58 = vpack.c.bf16 %v6208_v49, %v6208_v49  ;;  %v3193_v60 = vpop.xlane.xlu0 %3192 }
0x1440   :  { %2961 = vadd.xlane.f32.xlu1 %v2960_v54  ;;  %v3194_v56 = vsub.f32 %v7073_v62, %v3193_v60 }
0x1441   :  { %5789 = vmatmul.mubr.msk.bf16.vlgmr.msra.gmra.mrb[88].mxu0 %vm187_vm2, %v2964_v58 }
0x1442   :  { %5799 = vmatpush3.bf16.msra.mxu0 %v3081_v55  ;;  %5800 = vmatprep.mubr.msk.bf16.mxu0 %vm6310_vm1, %v6309_v15  ;;  %v3195_v57 = vmul.f32 1.442695, %v3194_v56 }
0x1443   :  { %5810 = vmatprep.subr.bf16.mxu0 %v6309_v15 }
0x1444   :  { %6211 = vpow2.f32 %v3195_v57 }
0x1446   :  { %v6210_v48 = vpop.eup %6209 }
0x1447   :  { %v3070_v61 = vsel %vm187_vm2, %v6210_v48, 0.0  ;;  %v3074_v0 = vpack.c.bf16 %v6210_v48, %v6210_v48 }
0x1448   :  { %3071 = vadd.xlane.f32.xlu1 %v3070_v61 }
0x1449   :  { %5801 = vmatmul.mubr.msk.bf16.vlgmr.msra.gmra.mrb[92].mxu0 %vm187_vm2, %v3074_v0 }
0x144a   :  { %5812 = vmatprep.mubr.msk.bf16.mxu0 %vm6310_vm1, %v6309_v15 }
0x144c   :  { %2739 = vadd.xlane.f32.xlu1 %v2738_v59 }
0x144e   :  { %v6212_v46 = vpop.eup %6211 }
0x144f   :  { %v3415_v4 = vpop.xlane.xlu0 %3414  ;;  %v3201_v24 = vpack.c.bf16 %v6212_v46, %v6212_v46  ;;  %v3197_v12 = vsel %vm187_vm2, %v6212_v46, 0.0 }
0x1450   :  { %v3416_v7 = vsub.f32 %v7079_v53, %v3415_v4 }
0x1452   :  { %v3417_v1 = vmul.f32 1.442695, %v3416_v7 }
0x1454   :  { %v3305_v8 = vpop.xlane.xlu1 %3304 }
0x1455   :  { %v3306_v32 = vsub.f32 %v7077_v2, %v3305_v8 }
0x1457   :  { %v3307_v9 = vmul.f32 1.442695, %v3306_v32  ;;  %v3525_v10 = vpop.xlane.xlu0 %3524 }
0x1458   :  { %v3526_v62 = vsub.f32 %v7085_v5, %v3525_v10  ;;  %v3315_v63 = vpop.permute.xlu1 %3314 }
0x1459   :  { %6213 = vpow2.f32 %v3307_v9  ;;  %v3320_v2 = vsel %vm251_vm3, %v3315_v63, 0 }
0x145a   :  { %6215 = vpow2.f32 %v3417_v1  ;;  %v3527_v13 = vmul.f32 1.442695, %v3526_v62 }
0x145b   :  { %v3204_v14 = vpop.permute.xlu0 %3203 }
0x145c   :  { %v3209_v16 = vsel %vm251_vm3, %v3204_v14, 0  ;;  %6217 = vpow2.f32 %v3527_v13  ;;  %v3425_v27 = vpop.permute.xlu1 %3424  ;;  %v6107_v14 = vld [vmem:[%s7506_s3 + $0x30] sm:$0xff]  }
0x145d   :  { %5811 = vmatpush3.bf16.msra.mxu0 %v3209_v16  ;;  %v3430_v6 = vsel %vm251_vm3, %v3425_v27, 0  ;;  %5853 = vmatpush3.bf16.msra.mxu1 %v6107_v14 }
0x145e   :  { %5822 = vmatprep.subr.bf16.mxu0 %v6309_v15  ;;  %5854 = vmatprep.subr.bf16.mxu1 %v6309_v15 }
0x1460   :  { %5813 = vmatmul.mubr.msk.bf16.vlgmr.msra.gmra.mrb[96].mxu0 %vm187_vm2, %v3201_v24  ;;  %v3535_v33 = vpop.permute.xlu1 %3534 }
0x1461   :  { %5823 = vmatpush3.bf16.msra.mxu0 %v3320_v2  ;;  %5824 = vmatprep.mubr.msk.bf16.mxu0 %vm6310_vm1, %v6309_v15  ;;  %v3540_v51 = vsel %vm251_vm3, %v3535_v33, 0 }
0x1462   :  { %5834 = vmatprep.subr.bf16.mxu0 %v6309_v15 }
0x1463   :  { %v6214_v53 = vpop.eup %6213 }
0x1464   :  { %v3309_v5 = vsel %vm187_vm2, %v6214_v53, 0.0  ;;  %v6216_v25 = vpop.eup %6215  ;;  %v3313_v26 = vpack.c.bf16 %v6214_v53, %v6214_v53 }
0x1465   :  { %3310 = vadd.xlane.f32.xlu0 %v3309_v5  ;;  %v3419_v29 = vsel %vm187_vm2, %v6216_v25, 0.0  ;;  %v3423_v37 = vpack.c.bf16 %v6216_v25, %v6216_v25 }
0x1466   :  { %v6218_v11 = vpop.eup %6217 }
0x1467   :  { %v3529_v31 = vsel %vm187_vm2, %v6218_v11, 0.0  ;;  %v3533_v28 = vpack.c.bf16 %v6218_v11, %v6218_v11 }
0x1468   :  { %5825 = vmatmul.mubr.msk.bf16.vlgmr.msra.gmra.mrb[100].mxu0 %vm187_vm2, %v3313_v26 }
0x1469   :  { %5835 = vmatpush3.bf16.msra.mxu0 %v3430_v6  ;;  %3420 = vadd.xlane.f32.xlu0 %v3419_v29  ;;  %v6108_v29 = vld [vmem:[%s7506_s3 + $0x38] sm:$0xff]  }
0x146a   :  { %5836 = vmatprep.mubr.msk.bf16.mxu0 %vm6310_vm1, %v6309_v15  ;;  %5846 = vmatprep.subr.bf16.mxu0 %v6309_v15 }
0x146b   :  { %5855 = vmatpush3.bf16.msra.mxu1 %v6108_v29 }
0x146d   :  { %3530 = vadd.xlane.f32.xlu0 %v3529_v31 }
0x1470   :  { %5837 = vmatmul.mubr.msk.bf16.vlgmr.msra.gmra.mrb[104].mxu0 %vm187_vm2, %v3423_v37 }
0x1471   :  { %5847 = vmatpush3.bf16.msra.mxu0 %v3540_v51  ;;  %3198 = vadd.xlane.f32.xlu0 %v3197_v12 }
0x1472   :  { %5848 = vmatprep.mubr.msk.bf16.mxu0 %vm6310_vm1, %v6309_v15  ;;  %5860 = vmatprep.subr.bf16.mxu0 %v6309_v15 }
0x1478   :  { %5849 = vmatmul.mubr.msk.bf16.vlgmr.msra.gmra.mrb[108].mxu0 %vm187_vm2, %v3533_v28 }
0x1479   :  { %5864 = vmatprep.mubr.msk.bf16.mxu0 %vm6310_vm1, %v6309_v15 }
0x14c5   :  { %v2852_v60 = vpop.xlane.xlu1 %2851 }
0x14c6   :  { %6219 = vrcp.f32 %v2852_v60 }
0x14cd   :  { %v2962_v59 = vpop.xlane.xlu1 %2961 }
0x14d0   :  { %v6220_v8 = vpop.eup %6219 }
0x14d5   :  { %v3072_v46 = vpop.xlane.xlu1 %3071 }
0x14f2   :  { %v3311_v61 = vpop.xlane.xlu0 %3310 }
0x14f3   :  { %6221 = vrcp.f32 %v3311_v61 }
0x14f4   :  { %6223 = vrcp.f32 %v2962_v59 }
0x14f6   :  { %v3421_v4 = vpop.xlane.xlu0 %3420 }
0x14f7   :  { %6225 = vrcp.f32 %v3421_v4 }
0x14f8   :  { %6227 = vrcp.f32 %v3072_v46 }
0x14fa   :  { %v3531_v16 = vpop.xlane.xlu0 %3530 }
0x14fb   :  { %6229 = vrcp.f32 %v3531_v16 }
0x14fd   :  { %v6222_v32 = vpop.eup %6221 }
0x14fe   :  { %v6224_v2 = vpop.eup %6223 }
0x1501   :  { %v6226_v53 = vpop.eup %6225 }
0x1502   :  { %v6228_v33 = vpop.eup %6227 }
0x1504   :  { %v7146_v38 = vpop.f32.mrb[80].mxu0 }
0x1505   :  { %v5766_v39 = vpop.f32.mrb[81].mxu0  ;;  %v6230_v37 = vpop.eup %6229 }
0x1506   :  { %v2789_v36 = vpop.f32.mrb[82].mxu0 }
0x1507   :  { %v5767_v35 = vpop.f32.mrb[83].mxu0 }
0x150c   :  { %v2897_v40 = vpop.f32.mrb[84].mxu0 }
0x150d   :  { %v5778_v43 = vpop.f32.mrb[85].mxu0  ;;  %v2903_v9 = vmul.f32 %v6220_v8, %v2897_v40 }
0x150e   :  { %v2900_v44 = vpop.f32.mrb[86].mxu0  ;;  %v2740_v43 = vpop.xlane.xlu1 %2739 }
0x150f   :  { %v5779_v45 = vpop.f32.mrb[87].mxu0  ;;  %v3199_v44 = vpop.xlane.xlu0 %3198  ;;  %6231 = vrcp.f32 %v2740_v43 }
0x1510   :  { %6233 = vrcp.f32 %v3199_v44 }
0x1514   :  { %v3007_v41 = vpop.f32.mrb[88].mxu0 }
0x1515   :  { %v5790_v47 = vpop.f32.mrb[89].mxu0  ;;  %v3013_v25 = vmul.f32 %v6224_v2, %v3007_v41 }
0x1516   :  { %v3010_v49 = vpop.f32.mrb[90].mxu0 }
0x1517   :  { %v5791_v50 = vpop.f32.mrb[91].mxu0 }
0x1519   :  { %v6232_v47 = vpop.eup %6231 }
0x151c   :  { %v3117_v54 = vpop.f32.mrb[92].mxu0 }
0x151d   :  { %v5802_v58 = vpop.f32.mrb[93].mxu0  ;;  %v3123_v12 = vmul.f32 %v6228_v33, %v3117_v54  ;;  %v2792_v54 = vmul.f32 %v6232_v47, %v7146_v38  ;;  %v6281_v38 = vld [vmem:[%s7504_s1] sm:$0xff]  }
0x151e   :  { %v3120_v55 = vpop.f32.mrb[94].mxu0  ;;  %v6234_v58 = vpop.eup %6233 }
0x151f   :  { %v5803_v48 = vpop.f32.mrb[95].mxu0 }
0x1533   :  { %v3245_v0 = vpop.f32.mrb[96].mxu0 }
0x1534   :  { %v5814_v56 = vpop.f32.mrb[97].mxu0  ;;  %v3251_v60 = vmul.f32 %v6234_v58, %v3245_v0  ;;  %v3602_v0 = vrot.slane %v6976_v22, %v6641_v17  ;;  %v3840_v58 = vrot.slane %v6976_v22, %v6728_v52 }
0x1535   :  { %v3248_v57 = vpop.f32.mrb[98].mxu0 }
0x1536   :  { %v5815_v7 = vpop.f32.mrb[99].mxu0 }
0x153b   :  { %v3356_v1 = vpop.f32.mrb[100].mxu0 }
0x153c   :  { %v3362_v10 = vmul.f32 %v6222_v32, %v3356_v1  ;;  %v5826_v62 = vpop.f32.mrb[101].mxu0 }
0x153d   :  { %v3359_v13 = vpop.f32.mrb[102].mxu0 }
0x153e   :  { %v6057_v63 = vpack.i.bf16 %v3362_v10, %v2903_v9  ;;  %v5827_v24 = vpop.f32.mrb[103].mxu0 }
0x1540   :  { %6058 = vrot.lane.b32.xlu1 %v6057_v63, %s6323_s27 }
0x1543   :  { %v3466_v5 = vpop.f32.mrb[104].mxu0 }
0x1544   :  { %v3472_v27 = vmul.f32 %v6226_v53, %v3466_v5  ;;  %v5838_v26 = vpop.f32.mrb[105].mxu0  ;;  %v6109_v5 = vld [vmem:[%s7507_s4 + $0x10] sm:$0xff]  }
0x1545   :  { %v3469_v6 = vpop.f32.mrb[106].mxu0  ;;  %5868 = vmatprep.subr.bf16.mxu1 %v6109_v5 }
0x1546   :  { %v6062_v11 = vpack.i.bf16 %v3472_v27, %v3013_v25  ;;  %v5839_v31 = vpop.f32.mrb[107].mxu0 }
0x1548   :  { %6063 = vrot.lane.b32.xlu0 %v6062_v11, %s6324_s28 }
0x154b   :  { %v3576_v51 = vpop.f32.mrb[108].mxu0 }
0x154c   :  { %v3582_v28 = vmul.f32 %v6230_v37, %v3576_v51  ;;  %v5850_v39 = vpop.f32.mrb[109].mxu0 }
0x154d   :  { %v3579_v36 = vpop.f32.mrb[110].mxu0  ;;  %v3833_v39 = vrot.slane %v6976_v22, %v6695_v34 }
0x154e   :  { %v6067_v35 = vpack.i.bf16 %v3582_v28, %v3123_v12  ;;  %v5851_v40 = vpop.f32.mrb[111].mxu0  ;;  %v6111_v12 = vld [vmem:[%s7506_s3 + $0x40] sm:$0xff]   ;;  %v6112_v28 = vld [vmem:[%s7506_s3 + $0x48] sm:$0xff]  }
0x154f   :  { %5861 = vmatpush3.bf16.msra.mxu0 %v6111_v12 }
0x1550   :  { %6068 = vrot.lane.b32.xlu1 %v6067_v35, %s6325_s14  ;;  %5862 = vmatprep.subr.bf16.mxu0 %v6309_v15 }
0x1553   :  { %5863 = vmatpush3.bf16.msra.mxu0 %v6112_v28 }
0x1554   :  { %5876 = vmatprep.subr.bf16.mxu0 %v6309_v15 }
0x15b2   :  { %v6059_v45 = vpop.permute.xlu1 %6058 }
0x15b3   :  { %v6061_v49 = vunpack.i.h.bf16 %v6059_v45  ;;  %v6060_v50 = vunpack.i.l.bf16 %v6059_v45 }
0x15b5   :  { %v3595_v56 = vsel %vm187_vm2, %v3251_v60, %v6061_v49  ;;  %v3136_v59 = vsel %vm187_vm2, %v2792_v54, %v6060_v50 }
0x15ba   :  { %v6064_v41 = vpop.permute.xlu0 %6063 }
0x15bb   :  { %v6066_v55 = vunpack.i.h.bf16 %v6064_v41  ;;  %v6065_v48 = vunpack.i.l.bf16 %v6064_v41 }
0x15bd   :  { %v3596_v7 = vsel %vm640_vm4, %v3595_v56, %v6066_v55  ;;  %v3137_v8 = vsel %vm640_vm4, %v3136_v59, %v6065_v48  ;;  %v3690_v59 = vrot.slane %v6985_v30, %v6641_v17 }
0x15c2   :  { %v6069_v61 = vpop.permute.xlu1 %6068 }
0x15c3   :  { %v6071_v57 = vunpack.i.h.bf16 %v6069_v61  ;;  %v6070_v4 = vunpack.i.l.bf16 %v6069_v61 }
0x15c5   :  { %v3597_v32 = vsel %vm642_vm5, %v3596_v7, %v6071_v57  ;;  %v3138_v1 = vsel %vm642_vm5, %v3137_v8, %v6070_v4 }
0x15c6   :  { %v3598_v9 = vpack.c.bf16 %v3597_v32, %v3138_v1  ;;  %v3696_v1 = vrot.slane %v6985_v30, %v6687_v23 }
0x15c8   :  { %5857 = vmatmul.mubr.msk.bf16.vlgmr.msra.gmra.mrb[112].mxu1 %vm50_vm0, %v3598_v9 }
0x15c9   :  { %5872 = vmatprep.mubr.msk.bf16.mxu1 %vm50_vm0, %v6281_v38  ;;  %5869 = vmatpush3.bf16.msra.mxu1 %v6109_v5 }
0x169b   :  { %v3652_v10 = vpop.f32.mrb[112].mxu1 }
0x169c   :  { %v3653_v62 = vadd.f32 %v3652_v10, %v3602_v0  ;;  %v5858_v46 = vpop.f32.mrb[113].mxu1 }
0x169d   :  { %v3655_v13 = vpop.f32.mrb[114].mxu1 }
0x169e   :  { %v7173_v14 = vadd.f32 %v3653_v62, %v6953_v3  ;;  %v3656_v16 = vadd.f32 %v3655_v13, %v3602_v0  ;;  %v5859_v63 = vpop.f32.mrb[115].mxu1  ;;  %v6110_v3 = vld [vmem:[%s7507_s4 + $0x18] sm:$0xff]  }
0x169f   :  { %5870 = vmatprep.subr.bf16.mxu1 %v6110_v3 }
0x16a0   :  { %v7176_v24 = vadd.f32 %v3656_v16, %v6956_v20  ;;  %v3661_v2 = vsel %vm50_vm0, %v7173_v14, 0.0  ;;  %5871 = vmatpush3.bf16.msra.mxu1 %v6110_v3  ;;  %v6282_v20 = vld [vmem:[%s7504_s1 + $0x8] ss:$0 sps:$4 sm:$0xff]  }
0x16a1   :  { %3662 = vadd.xlane.f32.xlu1 %v3661_v2  ;;  %5882 = vmatprep.subr.bf16.mxu1 %v6309_v15 }
0x16a2   :  { %v3664_v53 = vsel %vm50_vm0, %v7176_v24, 0.0 }
0x16a3   :  { %3665 = vadd.xlane.f32.xlu0 %v3664_v53  ;;  %5873 = vmatmul.mubr.msk.bf16.vlgmr.msra.gmra.mrb[116].mxu1 %vm50_vm0, %v6282_v20 }
0x16a4   :  { %5884 = vmatprep.mubr.msk.bf16.mxu1 %vm6310_vm1, %v6309_v15 }
0x172e   :  { %v3663_v25 = vpop.xlane.xlu1 %3662 }
0x172f   :  { %v3667_v27 = vmul.f32 0.03125, %v3663_v25  ;;  %v3708_v25 = vrot.slane %v6976_v22, %v6687_v23 }
0x1730   :  { %v3666_v26 = vpop.xlane.xlu0 %3665 }
0x1731   :  { %v3669_v6 = vsub.f32 %v7173_v14, %v3667_v27  ;;  %v3668_v29 = vmul.f32 0.03125, %v3666_v26 }
0x1733   :  { %v3670_v11 = vsub.f32 %v7176_v24, %v3668_v29  ;;  %v3671_v31 = vmul.f32 %v3669_v6, %v3669_v6 }
0x1735   :  { %v3673_v33 = vsel %vm50_vm0, %v3671_v31, 0.0  ;;  %v3672_v37 = vmul.f32 %v3670_v11, %v3670_v11 }
0x1736   :  { %3674 = vadd.xlane.f32.xlu0 %v3673_v33 }
0x1737   :  { %v3676_v51 = vsel %vm50_vm0, %v3672_v37, 0.0 }
0x1738   :  { %3677 = vadd.xlane.f32.xlu1 %v3676_v51 }
0x1776   :  { %v5874_v36 = vpop.f32.mrb[116].mxu1 }
0x1777   :  { %v3816_v35 = vpop.f32.mrb[117].mxu1  ;;  %v3836_v40 = vadd.f32 %v5874_v36, %v3833_v39 }
0x1778   :  { %v3834_v43 = vadd.f32 %v3833_v39, %v3816_v35  ;;  %v5875_v44 = vpop.f32.mrb[118].mxu1 }
0x1779   :  { %v3819_v45 = vpop.f32.mrb[119].mxu1 }
0x177a   :  { %v3835_v41 = vadd.f32 %v3833_v39, %v3819_v45 }
0x177c   :  { %v3854_v47 = vpack.c.bf16 %v3835_v41, %v3834_v43  ;;  %v4311_v49 = vpack.c.bf16 %v3836_v40, %v3835_v41 }
0x177e   :  { %3967 = vrot.lane.b32.xlu0 %v3854_v47, %s6316_s19  ;;  %v7210_v50 = vrot.slane %v4311_v49, 2  ;;  %v3860_v62 = vsel %vm187_vm2, %v3854_v47, 0 }
0x1780   :  { %v4319_v43 = vsel %vm187_vm2, %v7210_v50, 0 }
0x1782   :  { %4187 = vrot.lane.b32.xlu0 %v3854_v47, %s6318_s21 }
0x1786   :  { %4426 = vrot.lane.b32.xlu0 %v7210_v50, %s6316_s19 }
0x178a   :  { %4536 = vrot.lane.b32.xlu0 %v7210_v50, %s6317_s20 }
0x178e   :  { %4646 = vrot.lane.b32.xlu0 %v7210_v50, %s6318_s21 }
0x1792   :  { %3842 = vrot.lane.b32.xlu0 %v3840_v58, %s6311_s30 }
0x17c3   :  { %v3675_v55 = vpop.xlane.xlu0 %3674 }
0x17c4   :  { %v3679_v48 = vmul.f32 0.03125, %v3675_v55 }
0x17c5   :  { %v3678_v54 = vpop.xlane.xlu1 %3677 }
0x17c6   :  { %v3681_v60 = vadd.f32 1e-05, %v3679_v48  ;;  %v3680_v61 = vmul.f32 0.03125, %v3678_v54 }
0x17c8   :  { %6235 = vrsqrt.f32 %v3681_v60  ;;  %v3682_v56 = vadd.f32 1e-05, %v3680_v61 }
0x17ca   :  { %6237 = vrsqrt.f32 %v3682_v56 }
0x17d2   :  { %v6236_v57 = vpop.eup %6235 }
0x17d3   :  { %v3685_v4 = vmul.f32 %v6236_v57, %v3669_v6 }
0x17d4   :  { %v6238_v7 = vpop.eup %6237 }
0x17d5   :  { %v3691_v8 = vmul.f32 %v3690_v59, %v3685_v4  ;;  %v3686_v32 = vmul.f32 %v6238_v7, %v3670_v11 }
0x17d7   :  { %v3692_v9 = vmul.f32 %v3690_v59, %v3686_v32  ;;  %v3697_v38 = vadd.f32 %v3696_v1, %v3691_v8 }
0x17d9   :  { %v3698_v0 = vadd.f32 %v3696_v1, %v3692_v9 }
0x17db   :  { %v3699_v10 = vpack.c.bf16 %v3698_v0, %v3697_v38 }
0x17dd   :  { %5865 = vmatmul.mubr.msk.bf16.vlgmr.msra.gmra.mrb[112].mxu0 %vm50_vm0, %v3699_v10 }
0x17de   :  { %5877 = vmatpush3.bf16.xpose.msra.mxu0 %v3860_v62  ;;  %5878 = vmatprep.mubr.msk.bf16.mxu0 %vm6310_vm1, %v6309_v15 }
0x17df   :  { %5888 = vmatprep.subr.bf16.mxu0 %v6309_v15 }
0x17f0   :  { %v3968_v17 = vpop.permute.xlu0 %3967 }
0x17f1   :  { %v3973_v11 = vsel %vm187_vm2, %v3968_v17, 0 }
0x17f4   :  { %v4188_v46 = vpop.permute.xlu0 %4187 }
0x17f8   :  { %v4427_v13 = vpop.permute.xlu0 %4426 }
0x17f9   :  { %v4432_v41 = vsel %vm187_vm2, %v4427_v13, 0 }
0x17fc   :  { %v7231_v16 = vpop.permute.xlu0 %4536 }
0x17fd   :  { %v4542_v49 = vsel %vm187_vm2, %v7231_v16, 0 }
0x1800   :  { %v7233_v30 = vpop.permute.xlu0 %4646 }
0x1801   :  { %v4652_v50 = vsel %vm187_vm2, %v7233_v30, 0 }
0x1804   :  { %v3843_v63 = vpop.permute.xlu0 %3842 }
0x1805   :  { %v3845_v2 = vadd.f32 %v3843_v63, %v3816_v35  ;;  %v7235_v53 = vadd.f32 %v3843_v63, %v3819_v45  ;;  %v7237_v5 = vadd.f32 %v5874_v36, %v3843_v63  ;;  %v4193_v36 = vsel %vm187_vm2, %v4188_v46, 0 }
0x1807   :  { %v7240_v3 = vpack.c.bf16 %v7235_v53, %v3845_v2  ;;  %v4312_v20 = vpack.c.bf16 %v7237_v5, %v7235_v53 }
0x1809   :  { %4026 = vrot.lane.b32.xlu0 %v7240_v3, %s6315_s18 }
0x180d   :  { %4136 = vrot.lane.b32.xlu0 %v7240_v3, %s6312_s15 }
0x18b0   :  { %v3758_v27 = vpop.f32.mrb[112].mxu0 }
0x18b1   :  { %v3759_v26 = vadd.f32 %v3758_v27, %v3708_v25  ;;  %v5866_v6 = vpop.f32.mrb[113].mxu0 }
0x18b2   :  { %v3761_v29 = vpop.f32.mrb[114].mxu0 }
0x18b3   :  { %v3853_v31 = vpack.c.bf16 %v3759_v26, %v3759_v26  ;;  %v5867_v33 = vpop.f32.mrb[115].mxu0  ;;  %v3762_v23 = vadd.f32 %v3761_v29, %v3708_v25 }
0x18b5   :  { %3964 = vrot.lane.b32.xlu1 %v3853_v31, %s6316_s19  ;;  %5879 = vmatmul.mubr.msk.bf16.vlgmr.msra.gmra.mrb[116].mxu0 %vm187_vm2, %v3853_v31  ;;  %v4310_v22 = vpack.c.bf16 %v3762_v23, %v3762_v23 }
0x18b6   :  { %5889 = vmatpush3.bf16.xpose.msra.mxu0 %v3973_v11  ;;  %5890 = vmatprep.mubr.msk.bf16.mxu0 %vm6310_vm1, %v6309_v15 }
0x18b7   :  { %5900 = vmatprep.subr.bf16.mxu0 %v6309_v15 }
0x18b9   :  { %4077 = vrot.lane.b32.xlu1 %v3854_v47, %s6317_s20 }
0x18bd   :  { %4075 = vrot.lane.b32.xlu1 %v3853_v31, %s6317_s20 }
0x18c1   :  { %4185 = vrot.lane.b32.xlu1 %v3853_v31, %s6318_s21 }
0x18c5   :  { %4424 = vrot.lane.b32.xlu1 %v4310_v22, %s6316_s19 }
0x18c9   :  { %4534 = vrot.lane.b32.xlu1 %v4310_v22, %s6317_s20 }
0x18cd   :  { %4644 = vrot.lane.b32.xlu1 %v4310_v22, %s6318_s21 }
0x18d1   :  { %3914 = vrot.lane.b32.xlu1 %v7240_v3, %s6313_s16 }
0x1927   :  { %v3965_v37 = vpop.permute.xlu1 %3964 }
0x1928   :  { %5891 = vmatmul.mubr.msk.bf16.vlgmr.msra.gmra.mrb[120].mxu0 %vm187_vm2, %v3965_v37 }
0x1929   :  { %5902 = vmatprep.mubr.msk.bf16.mxu0 %vm6310_vm1, %v6309_v15 }
0x192b   :  { %v4078_v51 = vpop.permute.xlu1 %4077 }
0x192c   :  { %v4083_v12 = vsel %vm187_vm2, %v4078_v51, 0 }
0x192d   :  { %5901 = vmatpush3.bf16.xpose.msra.mxu0 %v4083_v12 }
0x192e   :  { %5912 = vmatprep.subr.bf16.mxu0 %v6309_v15 }
0x192f   :  { %v4076_v28 = vpop.permute.xlu1 %4075 }
0x1933   :  { %v4186_v39 = vpop.permute.xlu1 %4185 }
0x1934   :  { %5903 = vmatmul.mubr.msk.bf16.vlgmr.msra.gmra.mrb[124].mxu0 %vm187_vm2, %v4076_v28 }
0x1935   :  { %5913 = vmatpush3.bf16.xpose.msra.mxu0 %v4193_v36  ;;  %5914 = vmatprep.mubr.msk.bf16.mxu0 %vm6310_vm1, %v6309_v15 }
0x1936   :  { %5924 = vmatprep.subr.bf16.mxu0 %v6309_v15 }
0x1937   :  { %v4425_v35 = vpop.permute.xlu1 %4424 }
0x193b   :  { %v4535_v40 = vpop.permute.xlu1 %4534 }
0x193c   :  { %5915 = vmatmul.mubr.msk.bf16.vlgmr.msra.gmra.mrb[128].mxu0 %vm187_vm2, %v4186_v39 }
0x193d   :  { %5925 = vmatpush3.bf16.xpose.msra.mxu0 %v4319_v43  ;;  %5926 = vmatprep.mubr.msk.bf16.mxu0 %vm6310_vm1, %v6309_v15 }
0x193e   :  { %5936 = vmatprep.subr.bf16.mxu0 %v6309_v15 }
0x193f   :  { %v4645_v44 = vpop.permute.xlu1 %4644 }
0x1943   :  { %v3915_v45 = vpop.permute.xlu1 %3914 }
0x1944   :  { %v3920_v47 = vsel %vm1438_vm7, %v3915_v45, 0  ;;  %5927 = vmatmul.mubr.msk.bf16.vlgmr.msra.gmra.mrb[132].mxu0 %vm187_vm2, %v4310_v22  ;;  %v4027_v22 = vpop.permute.xlu0 %4026 }
0x1945   :  { %5883 = vmatpush3.bf16.msra.mxu1 %v3920_v47  ;;  %5937 = vmatpush3.bf16.xpose.msra.mxu0 %v4432_v41  ;;  %v4032_v12 = vsel %vm1438_vm7, %v4027_v22, 0 }
0x1946   :  { %5938 = vmatprep.mubr.msk.bf16.mxu0 %vm6310_vm1, %v6309_v15  ;;  %5948 = vmatprep.subr.bf16.mxu0 %v6309_v15 }
0x1947   :  { %5894 = vmatprep.subr.bf16.mxu1 %v6309_v15 }
0x1948   :  { %v4137_v41 = vpop.permute.xlu0 %4136 }
0x194c   :  { %5939 = vmatmul.mubr.msk.bf16.vlgmr.msra.gmra.mrb[136].mxu0 %vm187_vm2, %v4425_v35  ;;  %v4373_v35 = vrot.slane %v4312_v20, 2 }
0x194d   :  { %5949 = vmatpush3.bf16.xpose.msra.mxu0 %v4542_v49  ;;  %5950 = vmatprep.mubr.msk.bf16.mxu0 %vm6310_vm1, %v6309_v15 }
0x194e   :  { %5960 = vmatprep.subr.bf16.mxu0 %v6309_v15 }
0x1954   :  { %5951 = vmatmul.mubr.msk.bf16.vlgmr.msra.gmra.mrb[140].mxu0 %vm187_vm2, %v4535_v40 }
0x1955   :  { %5961 = vmatpush3.bf16.xpose.msra.mxu0 %v4652_v50  ;;  %5962 = vmatprep.mubr.msk.bf16.mxu0 %vm6310_vm1, %v6309_v15 }
0x1956   :  { %5972 = vmatprep.subr.bf16.mxu0 %v6309_v15 }
0x195c   :  { %5963 = vmatmul.mubr.msk.bf16.vlgmr.msra.gmra.mrb[144].mxu0 %vm187_vm2, %v4645_v44 }
0x195d   :  { %5976 = vmatprep.mubr.msk.bf16.mxu0 %vm6310_vm1, %v6309_v15 }
0x1988   :  { %v3896_v58 = vpop.f32.mrb[116].mxu0 }
0x1989   :  { %v5880_v55 = vpop.f32.mrb[117].mxu0  ;;  %v3902_v48 = vsel %vm1420_vm6, %v3896_v58, -inf }
0x198a   :  { %3903 = vmax.xlane.f32.xlu1 %v3902_v48  ;;  %v3899_v54 = vpop.f32.mrb[118].mxu0 }
0x198b   :  { %v5881_v60 = vpop.f32.mrb[119].mxu0  ;;  %v4142_v54 = vsel %vm1438_vm7, %v4137_v41, 0 }
0x199b   :  { %4246 = vrot.lane.b32.xlu1 %v7240_v3, %s6314_s17 }
0x19fb   :  { %v4009_v61 = vpop.f32.mrb[120].mxu0 }
0x19fc   :  { %v5892_v56 = vpop.f32.mrb[121].mxu0  ;;  %v4015_v59 = vsel %vm1420_vm6, %v4009_v61, -inf }
0x19fd   :  { %4016 = vmax.xlane.f32.xlu0 %v4015_v59  ;;  %v4012_v57 = vpop.f32.mrb[122].mxu0 }
0x19fe   :  { %v5893_v4 = vpop.f32.mrb[123].mxu0 }
0x1a07   :  { %v4119_v7 = vpop.f32.mrb[124].mxu0 }
0x1a08   :  { %v5904_v8 = vpop.f32.mrb[125].mxu0  ;;  %v4125_v32 = vsel %vm1420_vm6, %v4119_v7, -inf }
0x1a09   :  { %4126 = vmax.xlane.f32.xlu0 %v4125_v32  ;;  %v4122_v1 = vpop.f32.mrb[126].mxu0 }
0x1a0a   :  { %v5905_v9 = vpop.f32.mrb[127].mxu0 }
0x1a0f   :  { %v7307_v38 = vpop.f32.mrb[128].mxu0 }
0x1a10   :  { %v5916_v0 = vpop.f32.mrb[129].mxu0  ;;  %v4235_v10 = vsel %vm1420_vm6, %v7307_v38, -inf }
0x1a11   :  { %4236 = vmax.xlane.f32.xlu0 %v4235_v10  ;;  %v4232_v62 = vpop.f32.mrb[130].mxu0 }
0x1a12   :  { %v5917_v17 = vpop.f32.mrb[131].mxu0 }
0x1a17   :  { %v3904_v46 = vpop.xlane.xlu1 %3903  ;;  %v7311_v13 = vpop.f32.mrb[132].mxu0 }
0x1a18   :  { %v3905_v16 = vsub.f32 %v3896_v58, %v3904_v46  ;;  %v5928_v30 = vpop.f32.mrb[133].mxu0  ;;  %v4361_v63 = vsel %vm1420_vm6, %v7311_v13, -inf }
0x1a19   :  { %4362 = vmax.xlane.f32.xlu0 %v4361_v63  ;;  %v4358_v2 = vpop.f32.mrb[134].mxu0 }
0x1a1a   :  { %v3906_v3 = vmul.f32 1.442695, %v3905_v16  ;;  %v5929_v25 = vpop.f32.mrb[135].mxu0 }
0x1a1b   :  { %v4247_v57 = vpop.permute.xlu1 %4246 }
0x1a1c   :  { %6239 = vpow2.f32 %v3906_v3  ;;  %v4252_v8 = vsel %vm1438_vm7, %v4247_v57, 0 }
0x1a1f   :  { %v7315_v27 = vpop.f32.mrb[136].mxu0 }
0x1a20   :  { %v5940_v26 = vpop.f32.mrb[137].mxu0  ;;  %v4474_v6 = vsel %vm1420_vm6, %v7315_v27, -inf }
0x1a21   :  { %4475 = vmax.xlane.f32.xlu1 %v4474_v6  ;;  %v4471_v29 = vpop.f32.mrb[138].mxu0 }
0x1a22   :  { %v5941_v11 = vpop.f32.mrb[139].mxu0 }
0x1a26   :  { %v7319_v31 = vpop.eup %6239 }
0x1a27   :  { %v7321_v33 = vpop.f32.mrb[140].mxu0  ;;  %v3912_v23 = vpack.c.bf16 %v7319_v31, %v7319_v31  ;;  %v3908_v46 = vsel %vm1420_vm6, %v7319_v31, 0.0 }
0x1a28   :  { %v5952_v37 = vpop.f32.mrb[141].mxu0  ;;  %v4584_v51 = vsel %vm1420_vm6, %v7321_v33, -inf }
0x1a29   :  { %5885 = vmatmul.mubr.msk.bf16.vlgmr.msra.gmra.mrb[120].mxu1 %vm1420_vm6, %v3912_v23  ;;  %4585 = vmax.xlane.f32.xlu0 %v4584_v51  ;;  %v4581_v28 = vpop.f32.mrb[142].mxu0 }
0x1a2a   :  { %5895 = vmatpush3.bf16.msra.mxu1 %v4032_v12  ;;  %v5953_v39 = vpop.f32.mrb[143].mxu0  ;;  %5896 = vmatprep.mubr.msk.bf16.mxu1 %vm6310_vm1, %v6309_v15 }
0x1a2b   :  { %5906 = vmatprep.subr.bf16.mxu1 %v6309_v15 }
0x1a2f   :  { %v7332_v36 = vpop.f32.mrb[144].mxu0 }
0x1a30   :  { %v5964_v40 = vpop.f32.mrb[145].mxu0  ;;  %v4694_v43 = vsel %vm1420_vm6, %v7332_v36, -inf }
0x1a31   :  { %4695 = vmax.xlane.f32.xlu0 %v4694_v43  ;;  %v4691_v44 = vpop.f32.mrb[146].mxu0 }
0x1a32   :  { %4485 = vrot.lane.b32.xlu1 %v4373_v35, %s6315_s18  ;;  %v5965_v45 = vpop.f32.mrb[147].mxu0 }
0x1a36   :  { %4595 = vrot.lane.b32.xlu1 %v4373_v35, %s6312_s15 }
0x1a3a   :  { %4705 = vrot.lane.b32.xlu1 %v4373_v35, %s6314_s17 }
0x1a47   :  { %4374 = vrot.lane.b32.xlu0 %v4373_v35, %s6313_s16 }
0x1a8a   :  { %v4017_v47 = vpop.xlane.xlu0 %4016 }
0x1a8b   :  { %v4018_v49 = vsub.f32 %v4009_v61, %v4017_v47 }
0x1a8d   :  { %v4019_v53 = vmul.f32 1.442695, %v4018_v49 }
0x1a8f   :  { %6241 = vpow2.f32 %v4019_v53 }
0x1a96   :  { %v4127_v5 = vpop.xlane.xlu0 %4126 }
0x1a97   :  { %v4128_v20 = vsub.f32 %v4119_v7, %v4127_v5 }
0x1a99   :  { %v6242_v50 = vpop.eup %6241  ;;  %v4129_v58 = vmul.f32 1.442695, %v4128_v20 }
0x1a9a   :  { %v4021_v55 = vsel %vm1420_vm6, %v6242_v50, 0.0  ;;  %v4025_v48 = vpack.c.bf16 %v6242_v50, %v6242_v50 }
0x1a9b   :  { %6243 = vpow2.f32 %v4129_v58  ;;  %4022 = vadd.xlane.f32.xlu1 %v4021_v55 }
0x1a9c   :  { %5897 = vmatmul.mubr.msk.bf16.vlgmr.msra.gmra.mrb[124].mxu1 %vm1420_vm6, %v4025_v48 }
0x1a9d   :  { %5907 = vmatpush3.bf16.msra.mxu1 %v4142_v54  ;;  %5908 = vmatprep.mubr.msk.bf16.mxu1 %vm6310_vm1, %v6309_v15 }
0x1a9e   :  { %v4237_v60 = vpop.xlane.xlu0 %4236  ;;  %5918 = vmatprep.subr.bf16.mxu1 %v6309_v15 }
0x1a9f   :  { %v4238_v61 = vsub.f32 %v7307_v38, %v4237_v60 }
0x1aa1   :  { %v4239_v56 = vmul.f32 1.442695, %v4238_v61 }
0x1aa3   :  { %6245 = vpow2.f32 %v4239_v56 }
0x1aa5   :  { %v6244_v59 = vpop.eup %6243 }
0x1aa6   :  { %v4131_v4 = vsel %vm1420_vm6, %v6244_v59, 0.0  ;;  %v4135_v7 = vpack.c.bf16 %v6244_v59, %v6244_v59  ;;  %v4363_v1 = vpop.xlane.xlu0 %4362 }
0x1aa7   :  { %4132 = vadd.xlane.f32.xlu1 %v4131_v4  ;;  %v4364_v62 = vsub.f32 %v7311_v13, %v4363_v1 }
0x1aa8   :  { %5909 = vmatmul.mubr.msk.bf16.vlgmr.msra.gmra.mrb[128].mxu1 %vm1420_vm6, %v4135_v7 }
0x1aa9   :  { %5919 = vmatpush3.bf16.msra.mxu1 %v4252_v8  ;;  %5920 = vmatprep.mubr.msk.bf16.mxu1 %vm6310_vm1, %v6309_v15  ;;  %v4365_v16 = vmul.f32 1.442695, %v4364_v62 }
0x1aaa   :  { %5930 = vmatprep.subr.bf16.mxu1 %v6309_v15 }
0x1aad   :  { %v6246_v32 = vpop.eup %6245 }
0x1aae   :  { %v4476_v9 = vpop.xlane.xlu1 %4475  ;;  %v4241_v38 = vsel %vm1420_vm6, %v6246_v32, 0.0  ;;  %v4245_v0 = vpack.c.bf16 %v6246_v32, %v6246_v32 }
0x1aaf   :  { %v4477_v10 = vsub.f32 %v7315_v27, %v4476_v9  ;;  %4242 = vadd.xlane.f32.xlu1 %v4241_v38 }
0x1ab0   :  { %5921 = vmatmul.mubr.msk.bf16.vlgmr.msra.gmra.mrb[132].mxu1 %vm1420_vm6, %v4245_v0 }
0x1ab1   :  { %v4478_v17 = vmul.f32 1.442695, %v4477_v10  ;;  %5932 = vmatprep.mubr.msk.bf16.mxu1 %vm6310_vm1, %v6309_v15 }
0x1ab2   :  { %v4486_v31 = vpop.permute.xlu1 %4485 }
0x1ab3   :  { %6247 = vpow2.f32 %v4478_v17  ;;  %3909 = vadd.xlane.f32.xlu1 %v3908_v46  ;;  %v4491_v37 = vsel %vm1438_vm7, %v4486_v31, 0 }
0x1ab4   :  { %6249 = vpow2.f32 %v4365_v16 }
0x1ab6   :  { %v4586_v30 = vpop.xlane.xlu0 %4585  ;;  %v4596_v51 = vpop.permute.xlu1 %4595 }
0x1ab7   :  { %v4587_v63 = vsub.f32 %v7321_v33, %v4586_v30 }
0x1ab9   :  { %v4588_v2 = vmul.f32 1.442695, %v4587_v63 }
0x1aba   :  { %v4706_v40 = vpop.permute.xlu1 %4705 }
0x1abb   :  { %6251 = vpow2.f32 %v4588_v2  ;;  %v4711_v44 = vsel %vm1438_vm7, %v4706_v40, 0 }
0x1abd   :  { %v6248_v3 = vpop.eup %6247 }
0x1abe   :  { %v4696_v13 = vpop.xlane.xlu0 %4695  ;;  %v4480_v25 = vsel %vm1420_vm6, %v6248_v3, 0.0  ;;  %v6250_v6 = vpop.eup %6249  ;;  %v4484_v28 = vpack.c.bf16 %v6248_v3, %v6248_v3  ;;  %v6113_v3 = vld [vmem:[%s7506_s3 + $0x50] sm:$0xff]  }
0x1abf   :  { %v4697_v27 = vsub.f32 %v7332_v36, %v4696_v13  ;;  %4481 = vadd.xlane.f32.xlu0 %v4480_v25  ;;  %v4371_v33 = vpack.c.bf16 %v6250_v6, %v6250_v6  ;;  %v4601_v36 = vsel %vm1438_vm7, %v4596_v51, 0  ;;  %v4367_v35 = vsel %vm1420_vm6, %v6250_v6, 0.0  ;;  %5973 = vmatpush3.bf16.msra.mxu0 %v6113_v3 }
0x1ac0   :  { %5974 = vmatprep.subr.bf16.mxu0 %v6309_v15 }
0x1ac1   :  { %v4698_v26 = vmul.f32 1.442695, %v4697_v27 }
0x1ac2   :  { %v4375_v29 = vpop.permute.xlu0 %4374 }
0x1ac3   :  { %6253 = vpow2.f32 %v4698_v26  ;;  %v4380_v11 = vsel %vm1438_vm7, %v4375_v29, 0 }
0x1ac4   :  { %5931 = vmatpush3.bf16.msra.mxu1 %v4380_v11 }
0x1ac5   :  { %v6252_v23 = vpop.eup %6251  ;;  %5942 = vmatprep.subr.bf16.mxu1 %v6309_v15 }
0x1ac6   :  { %v4590_v22 = vsel %vm1420_vm6, %v6252_v23, 0.0  ;;  %v4594_v43 = vpack.c.bf16 %v6252_v23, %v6252_v23 }
0x1ac7   :  { %4591 = vadd.xlane.f32.xlu0 %v4590_v22  ;;  %5933 = vmatmul.mubr.msk.bf16.vlgmr.msra.gmra.mrb[136].mxu1 %vm1420_vm6, %v4371_v33  ;;  %v6114_v22 = vld [vmem:[%s7506_s3 + $0x58] sm:$0xff]  }
0x1ac8   :  { %5943 = vmatpush3.bf16.msra.mxu1 %v4491_v37  ;;  %5944 = vmatprep.mubr.msk.bf16.mxu1 %vm6310_vm1, %v6309_v15 }
0x1ac9   :  { %5954 = vmatprep.subr.bf16.mxu1 %v6309_v15  ;;  %5975 = vmatpush3.bf16.msra.mxu0 %v6114_v22  ;;  %v6118_v22 = vld [vmem:[%s7509_s6 + $0x28] sm:$0xff]  }
0x1aca   :  { %5988 = vmatprep.subr.bf16.mxu0 %v6309_v15 }
0x1acd   :  { %v6254_v12 = vpop.eup %6253 }
0x1ace   :  { %v4700_v39 = vsel %vm1420_vm6, %v6254_v12, 0.0  ;;  %v4704_v45 = vpack.c.bf16 %v6254_v12, %v6254_v12 }
0x1acf   :  { %4701 = vadd.xlane.f32.xlu0 %v4700_v39  ;;  %5945 = vmatmul.mubr.msk.bf16.vlgmr.msra.gmra.mrb[140].mxu1 %vm1420_vm6, %v4484_v28 }
0x1ad0   :  { %5955 = vmatpush3.bf16.msra.mxu1 %v4601_v36  ;;  %5956 = vmatprep.mubr.msk.bf16.mxu1 %vm6310_vm1, %v6309_v15 }
0x1ad1   :  { %5966 = vmatprep.subr.bf16.mxu1 %v6309_v15 }
0x1ad3   :  { %4368 = vadd.xlane.f32.xlu0 %v4367_v35 }
0x1ad7   :  { %5957 = vmatmul.mubr.msk.bf16.vlgmr.msra.gmra.mrb[144].mxu1 %vm1420_vm6, %v4594_v43 }
0x1ad8   :  { %5967 = vmatpush3.bf16.msra.mxu1 %v4711_v44  ;;  %5968 = vmatprep.mubr.msk.bf16.mxu1 %vm6310_vm1, %v6309_v15 }
0x1ad9   :  { %5980 = vmatprep.subr.bf16.mxu1 %v6309_v15 }
0x1adf   :  { %5969 = vmatmul.mubr.msk.bf16.vlgmr.msra.gmra.mrb[148].mxu1 %vm1420_vm6, %v4704_v45 }
0x1ae0   :  { %5984 = vmatprep.mubr.msk.bf16.mxu1 %vm6310_vm1, %v6309_v15 }
0x1afc   :  { %v7390_v41 = vpop.f32.mrb[120].mxu1 }
0x1afd   :  { %v5886_v47 = vpop.f32.mrb[121].mxu1 }
0x1afe   :  { %v3959_v49 = vpop.f32.mrb[122].mxu1 }
0x1aff   :  { %v5887_v53 = vpop.f32.mrb[123].mxu1 }
0x1b28   :  { %v4023_v4 = vpop.xlane.xlu1 %4022 }
0x1b29   :  { %6255 = vrcp.f32 %v4023_v4 }
0x1b33   :  { %v6256_v10 = vpop.eup %6255 }
0x1b34   :  { %v4133_v1 = vpop.xlane.xlu1 %4132 }
0x1b3c   :  { %v4243_v63 = vpop.xlane.xlu1 %4242 }
0x1b40   :  { %v3910_v47 = vpop.xlane.xlu1 %3909 }
0x1b4c   :  { %v4482_v7 = vpop.xlane.xlu0 %4481 }
0x1b4d   :  { %6257 = vrcp.f32 %v4482_v7 }
0x1b4e   :  { %6259 = vrcp.f32 %v4133_v1 }
0x1b54   :  { %v4592_v38 = vpop.xlane.xlu0 %4591 }
0x1b55   :  { %6261 = vrcp.f32 %v4592_v38 }
0x1b56   :  { %6263 = vrcp.f32 %v4243_v63 }
0x1b57   :  { %v6258_v62 = vpop.eup %6257 }
0x1b58   :  { %v6260_v26 = vpop.eup %6259 }
0x1b5c   :  { %v4702_v13 = vpop.xlane.xlu0 %4701 }
0x1b5d   :  { %6265 = vrcp.f32 %v4702_v13 }
0x1b5e   :  { %6267 = vrcp.f32 %v3910_v47 }
0x1b5f   :  { %v6262_v6 = vpop.eup %6261 }
0x1b60   :  { %v6264_v12 = vpop.eup %6263  ;;  %v4369_v49 = vpop.xlane.xlu0 %4368 }
0x1b61   :  { %6269 = vrcp.f32 %v4369_v49 }
0x1b67   :  { %v6266_v28 = vpop.eup %6265 }
0x1b6f   :  { %v4068_v5 = vpop.f32.mrb[124].mxu1 }
0x1b70   :  { %v5898_v20 = vpop.f32.mrb[125].mxu1  ;;  %v4074_v46 = vmul.f32 %v6256_v10, %v4068_v5 }
0x1b71   :  { %v4071_v50 = vpop.f32.mrb[126].mxu1  ;;  %v6268_v20 = vpop.eup %6267 }
0x1b72   :  { %v5899_v58 = vpop.f32.mrb[127].mxu1 }
0x1b7b   :  { %v4178_v55 = vpop.f32.mrb[128].mxu1 }
0x1b7c   :  { %v5910_v48 = vpop.f32.mrb[129].mxu1  ;;  %v4184_v11 = vmul.f32 %v6260_v26, %v4178_v55  ;;  %v6270_v55 = vpop.eup %6269 }
0x1b7d   :  { %v4181_v54 = vpop.f32.mrb[130].mxu1 }
0x1b7e   :  { %v5911_v60 = vpop.f32.mrb[131].mxu1 }
0x1b83   :  { %v4288_v61 = vpop.f32.mrb[132].mxu1 }
0x1b84   :  { %v5922_v56 = vpop.f32.mrb[133].mxu1  ;;  %v4294_v36 = vmul.f32 %v6264_v12, %v4288_v61  ;;  %v3962_v61 = vmul.f32 %v6268_v20, %v7390_v41  ;;  %v6283_v41 = vld [vmem:[%s7511_s8 + $0x10] sm:$0xff] }
0x1b85   :  { %v4291_v59 = vpop.f32.mrb[134].mxu1 }
0x1b86   :  { %v5923_v57 = vpop.f32.mrb[135].mxu1 }
0x1b9a   :  { %v4416_v8 = vpop.f32.mrb[136].mxu1 }
0x1b9b   :  { %v5934_v32 = vpop.f32.mrb[137].mxu1  ;;  %v4422_v60 = vmul.f32 %v6270_v55, %v4416_v8  ;;  %v4773_v8 = vrot.slane %v6283_v41, %v2292_v21  ;;  %v5296_v55 = vld [vmem:[%s7512_s9 + $0x1] ss:$0 sm:$0xff] }
0x1b9c   :  { %v4419_v9 = vpop.f32.mrb[138].mxu1 }
0x1b9d   :  { %v5935_v0 = vpop.f32.mrb[139].mxu1 }
0x1ba2   :  { %v4527_v17 = vpop.f32.mrb[140].mxu1 }
0x1ba3   :  { %v4533_v16 = vmul.f32 %v6258_v62, %v4527_v17  ;;  %v5946_v30 = vpop.f32.mrb[141].mxu1 }
0x1ba4   :  { %v4530_v2 = vpop.f32.mrb[142].mxu1 }
0x1ba5   :  { %v6072_v25 = vpack.i.bf16 %v4533_v16, %v4074_v46  ;;  %v5947_v27 = vpop.f32.mrb[143].mxu1 }
0x1ba7   :  { %6073 = vrot.lane.b32.xlu1 %v6072_v25, %s6323_s27 }
0x1baa   :  { %v4637_v29 = vpop.f32.mrb[144].mxu1 }
0x1bab   :  { %v4643_v31 = vmul.f32 %v6262_v6, %v4637_v29  ;;  %v5958_v23 = vpop.f32.mrb[145].mxu1 }
0x1bac   :  { %v4640_v33 = vpop.f32.mrb[146].mxu1  ;;  %v6116_v23 = vld [vmem:[%s7508_s5 + $0x18] sm:$0xff]  }
0x1bad   :  { %v6077_v37 = vpack.i.bf16 %v4643_v31, %v4184_v11  ;;  %v5959_v51 = vpop.f32.mrb[147].mxu1  ;;  %v6115_v31 = vld [vmem:[%s7508_s5 + $0x10] sm:$0xff]   ;;  %v6117_v33 = vld [vmem:[%s7509_s6 + $0x20] sm:$0xff]  }
0x1bae   :  { %5981 = vmatpush3.bf16.msra.mxu1 %v6115_v31 }
0x1baf   :  { %6078 = vrot.lane.b32.xlu0 %v6077_v37, %s6324_s28  ;;  %5982 = vmatprep.subr.bf16.mxu1 %v6309_v15 }
0x1bb2   :  { %v4747_v39 = vpop.f32.mrb[148].mxu1  ;;  %5983 = vmatpush3.bf16.msra.mxu1 %v6116_v23 }
0x1bb3   :  { %v4753_v35 = vmul.f32 %v6266_v28, %v4747_v39  ;;  %v5970_v40 = vpop.f32.mrb[149].mxu1  ;;  %6000 = vmatprep.subr.bf16.mxu1 %v6309_v15 }
0x1bb4   :  { %v4750_v43 = vpop.f32.mrb[150].mxu1 }
0x1bb5   :  { %v6082_v44 = vpack.i.bf16 %v4753_v35, %v4294_v36  ;;  %v5971_v45 = vpop.f32.mrb[151].mxu1  ;;  %v6284_v35 = vld [vmem:[%s7511_s8 + $0x18] sm:$0x7f] }
0x1bb6   :  { %v4861_v40 = vrot.slane %v6284_v35, %v6695_v34  ;;  %v6119_v34 = vld [vmem:[%s7509_s6 + $0x30] sm:$0xff]  }
0x1bb7   :  { %6083 = vrot.lane.b32.xlu1 %v6082_v44, %s6325_s14 }
0x1c19   :  { %v6074_v53 = vpop.permute.xlu1 %6073 }
0x1c1a   :  { %v6076_v50 = vunpack.i.h.bf16 %v6074_v53  ;;  %v6075_v58 = vunpack.i.l.bf16 %v6074_v53  ;;  %v4867_v53 = vrot.slane %v6284_v35, %v6728_v52  ;;  %v6120_v52 = vld [vmem:[%s7509_s6 + $0x38] sm:$0xff]  }
0x1c1c   :  { %v4307_v59 = vsel %vm187_vm2, %v3962_v61, %v6075_v58  ;;  %v4766_v57 = vsel %vm187_vm2, %v4422_v60, %v6076_v50 }
0x1c21   :  { %v6079_v5 = vpop.permute.xlu0 %6078 }
0x1c22   :  { %v6081_v48 = vunpack.i.h.bf16 %v6079_v5  ;;  %v6080_v54 = vunpack.i.l.bf16 %v6079_v5 }
0x1c24   :  { %v4767_v32 = vsel %vm640_vm4, %v4766_v57, %v6081_v48  ;;  %v4308_v1 = vsel %vm640_vm4, %v4307_v59, %v6080_v54 }
0x1c29   :  { %v6084_v56 = vpop.permute.xlu1 %6083 }
0x1c2a   :  { %v6086_v4 = vunpack.i.h.bf16 %v6084_v56  ;;  %v6085_v7 = vunpack.i.l.bf16 %v6084_v56 }
0x1c2c   :  { %v4309_v9 = vsel %vm642_vm5, %v4308_v1, %v6085_v7  ;;  %v4768_v38 = vsel %vm642_vm5, %v4767_v32, %v6086_v4  ;;  %v5025_v32 = vrot.slane %v6284_v35, %v6454_v42 }
0x1c2d   :  { %v4769_v0 = vpack.c.bf16 %v4768_v38, %v4309_v9 }
0x1c2f   :  { %5977 = vmatmul.mubr.msk.bf16.vlgmr.msra.gmra.mrb[148].mxu0 %vm50_vm0, %v4769_v0 }
0x1c30   :  { %5996 = vmatprep.mubr.msk.bf16.mxu0 %vm6310_vm1, %v6309_v15  ;;  %5989 = vmatpush3.bf16.msra.mxu0 %v6117_v33  ;;  %v5028_v33 = vld [vmem:[%s7513_s10] sm:$0x3]  ;;  %s6326_s10 = smov [#allocation2]  }
0x1c31   :  { %5990 = vmatprep.subr.bf16.mxu0 %v6309_v15  ;;  %s5143_s17 = sshll.u32 %s6326_s10, 4  ;;  %s5144_s17 = int_to_ptr.vmem [resolvable:$true] %s5143_s17 }
0x1c32   :  { %s6285_s3 = scalar_lea.vmem %s5144_s17, 256  ;;  %p6290_p1 = scmp.lt.s32.totalorder %s5144_s17, %s5144_s17 }
0x1c33   :  { %p6286_p0 = scmp.ne.s32.totalorder %s5144_s17, %s6285_s3  ;;  %p6291_p2 = scmp.lt.s32.totalorder %s6285_s3, %s6285_s3 }
0x1c34   :  { %5991 = vmatpush3.bf16.msra.mxu0 %v6118_v22  ;;  %v5058_v22 = vrot.slane %v5028_v33, %v6454_v42 }
0x1c35   :  { %5992 = vmatprep.subr.bf16.mxu0 %v6309_v15  ;;  %p6292_p3 = por %p6291_p2, %p6290_p1 }
0x1c37   :  { %p6293_p4 = pnand %p6292_p3, %p6286_p0 }
0x1c38   :  { %5993 = vmatpush3.bf16.msra.mxu0 %v6119_v34 }
0x1c39   :  { %5994 = vmatprep.subr.bf16.mxu0 %v6309_v15 }
0x1c3c   :  { %5995 = vmatpush3.bf16.msra.mxu0 %v6120_v52 }
0x1d02   :  { %v4823_v10 = vpop.f32.mrb[148].mxu0 }
0x1d03   :  { %v4824_v62 = vadd.f32 %v4823_v10, %v4773_v8  ;;  %v5978_v17 = vpop.f32.mrb[149].mxu0 }
0x1d04   :  { %v4826_v46 = vpop.f32.mrb[150].mxu0 }
0x1d05   :  { %v7419_v16 = vadd.f32 %v4824_v62, %v7173_v14  ;;  %v4827_v30 = vadd.f32 %v4826_v46, %v4773_v8  ;;  %v5979_v63 = vpop.f32.mrb[151].mxu0 }
0x1d07   :  { %v7422_v2 = vadd.f32 %v4827_v30, %v7176_v24  ;;  %v4832_v3 = vsel %vm50_vm0, %v7419_v16, 0.0 }
0x1d08   :  { %4833 = vadd.xlane.f32.xlu1 %v4832_v3 }
0x1d09   :  { %v4835_v18 = vsel %vm50_vm0, %v7422_v2, 0.0 }
0x1d0a   :  { %4836 = vadd.xlane.f32.xlu0 %v4835_v18 }
0x1d95   :  { %v4834_v21 = vpop.xlane.xlu1 %4833 }
0x1d96   :  { %v4838_v13 = vmul.f32 0.03125, %v4834_v21 }
0x1d97   :  { %v4837_v25 = vpop.xlane.xlu0 %4836 }
0x1d98   :  { %v4840_v27 = vsub.f32 %v7419_v16, %v4838_v13  ;;  %v4839_v14 = vmul.f32 0.03125, %v4837_v25 }
0x1d9a   :  { %v4841_v26 = vsub.f32 %v7422_v2, %v4839_v14  ;;  %v4842_v6 = vmul.f32 %v4840_v27, %v4840_v27  ;;  %v6121_v14 = vld [vmem:[%s7510_s7] sm:$0xff]  }
0x1d9c   :  { %v4844_v24 = vsel %vm50_vm0, %v4842_v6, 0.0  ;;  %v4843_v29 = vmul.f32 %v4841_v26, %v4841_v26 }
0x1d9d   :  { %4845 = vadd.xlane.f32.xlu0 %v4844_v24 }
0x1d9e   :  { %v4847_v11 = vsel %vm50_vm0, %v4843_v29, 0.0 }
0x1d9f   :  { %4848 = vadd.xlane.f32.xlu1 %v4847_v11 }
0x1e2a   :  { %v4846_v37 = vpop.xlane.xlu0 %4845 }
0x1e2b   :  { %v4850_v51 = vmul.f32 0.03125, %v4846_v37 }
0x1e2c   :  { %v4849_v12 = vpop.xlane.xlu1 %4848 }
0x1e2d   :  { %v4852_v28 = vadd.f32 1e-05, %v4850_v51  ;;  %v4851_v39 = vmul.f32 0.03125, %v4849_v12 }
0x1e2f   :  { %6271 = vrsqrt.f32 %v4852_v28  ;;  %v4853_v36 = vadd.f32 1e-05, %v4851_v39  ;;  %v5064_v39 = vrot.slane %v5028_v33, %v6428_v19 }
0x1e31   :  { %6273 = vrsqrt.f32 %v4853_v36 }
0x1e39   :  { %v6272_v43 = vpop.eup %6271 }
0x1e3a   :  { %v4856_v44 = vmul.f32 %v6272_v43, %v4840_v27 }
0x1e3b   :  { %v6274_v45 = vpop.eup %6273 }
0x1e3c   :  { %v4862_v47 = vmul.f32 %v4861_v40, %v4856_v44  ;;  %v4857_v49 = vmul.f32 %v6274_v45, %v4841_v26  ;;  %v6122_v26 = vld [vmem:[%s7510_s7 + $0x8] sm:$0xff]   ;;  %v5313_v44 = vld [vmem:[%s7514_s11] ss:$0 sm:$0xff] }
0x1e3e   :  { %v4863_v5 = vmul.f32 %v4861_v40, %v4857_v49  ;;  %v4868_v20 = vadd.f32 %v4867_v53, %v4862_v47 }
0x1e40   :  { %v4869_v50 = vadd.f32 %v4867_v53, %v4863_v5 }
0x1e42   :  { %v4870_v58 = vpack.c.bf16 %v4869_v50, %v4868_v20 }
0x1e44   :  { %5985 = vmatmul.mubr.msk.bf16.vlgmr.msra.gmra.mrb[152].mxu1 %vm50_vm0, %v4870_v58 }
0x1e45   :  { %6004 = vmatprep.mubr.msk.bf16.mxu1 %vm6310_vm1, %v6309_v15  ;;  %6001 = vmatpush3.bf16.msra.mxu1 %v6121_v14 }
0x1e46   :  { %6002 = vmatprep.subr.bf16.mxu1 %v6309_v15 }
0x1e49   :  { %6003 = vmatpush3.bf16.msra.mxu1 %v6122_v26 }
0x1f17   :  { %v4933_v48 = vpop.f32.mrb[152].mxu1 }
0x1f18   :  { %v4934_v54 = vadd.f32 %v5296_v55, %v4933_v48  ;;  %v5986_v60 = vpop.f32.mrb[153].mxu1 }
0x1f19   :  { %v4936_v61 = vpop.f32.mrb[154].mxu1 }
0x1f1a   :  { %v4937_v56 = vadd.f32 %v5296_v55, %v4936_v61  ;;  %v5987_v59 = vpop.f32.mrb[155].mxu1  ;;  %v4940_v57 = vmax.f32 %v4934_v54, 0.0 }
0x1f1c   :  { %v4941_v4 = vmax.f32 %v4937_v56, 0.0 }
0x1f1e   :  { %v4942_v7 = vpack.c.bf16 %v4941_v4, %v4940_v57 }
0x1f20   :  { %5997 = vmatmul.mubr.msk.bf16.vlgmr.msra.gmra.mrb[152].mxu0 %vm2493_vm8, %v4942_v7 }
0x1ff3   :  { %v5013_v1 = vpop.f32.mrb[152].mxu0 }
0x1ff4   :  { %v5020_v9 = vadd.f32 %v5013_v1, %v7419_v16  ;;  %v5998_v38 = vpop.f32.mrb[153].mxu0 }
0x1ff5   :  { %v5016_v0 = vpop.f32.mrb[154].mxu0 }
0x1ff6   :  { %v5026_v41 = vadd.f32 %v5025_v32, %v5020_v9  ;;  %v5021_v8 = vadd.f32 %v5016_v0, %v7422_v2  ;;  %v5999_v10 = vpop.f32.mrb[155].mxu0 }
0x1ff8   :  { %v5027_v62 = vadd.f32 %v5025_v32, %v5021_v8  ;;  %v5029_v17 = vsel %vm50_vm0, %v5026_v41, 0.0 }
0x1ff9   :  { %5030 = vadd.xlane.f32.xlu0 %v5029_v17 }
0x1ffa   :  { %v5032_v46 = vsel %vm50_vm0, %v5027_v62, 0.0 }
0x1ffb   :  { %5033 = vadd.xlane.f32.xlu1 %v5032_v46 }
0x2086   :  { %v5031_v30 = vpop.xlane.xlu0 %5030 }
0x2087   :  { %v5035_v63 = vmul.f32 0.03125, %v5031_v30 }
0x2088   :  { %v5034_v3 = vpop.xlane.xlu1 %5033 }
0x2089   :  { %v5037_v18 = vsub.f32 %v5026_v41, %v5035_v63  ;;  %v5036_v21 = vmul.f32 0.03125, %v5034_v3 }
0x208b   :  { %v5038_v13 = vsub.f32 %v5027_v62, %v5036_v21  ;;  %v5039_v16 = vmul.f32 %v5037_v18, %v5037_v18 }
0x208d   :  { %v5041_v25 = vsel %vm50_vm0, %v5039_v16, 0.0  ;;  %v5040_v27 = vmul.f32 %v5038_v13, %v5038_v13 }
0x208e   :  { %5042 = vadd.xlane.f32.xlu0 %v5041_v25 }
0x208f   :  { %v5044_v2 = vsel %vm50_vm0, %v5040_v27, 0.0 }
0x2090   :  { %5045 = vadd.xlane.f32.xlu1 %v5044_v2 }
0x211b   :  { %v5043_v6 = vpop.xlane.xlu0 %5042 }
0x211c   :  { %v5047_v24 = vmul.f32 0.03125, %v5043_v6 }
0x211d   :  { %v5046_v29 = vpop.xlane.xlu1 %5045 }
0x211e   :  { %v5049_v11 = vadd.f32 1e-05, %v5047_v24  ;;  %v5048_v31 = vmul.f32 0.03125, %v5046_v29 }
0x2120   :  { %6275 = vrsqrt.f32 %v5049_v11  ;;  %v5050_v23 = vadd.f32 1e-05, %v5048_v31 }
0x2122   :  { %6277 = vrsqrt.f32 %v5050_v23 }
0x212a   :  { %v6276_v37 = vpop.eup %6275 }
0x212b   :  { %v5053_v51 = vmul.f32 %v6276_v37, %v5037_v18 }
0x212c   :  { %v6278_v12 = vpop.eup %6277 }
0x212d   :  { %v5059_v28 = vmul.f32 %v5058_v22, %v5053_v51  ;;  %v5054_v15 = vmul.f32 %v6278_v12, %v5038_v13 }
0x212f   :  { %v5060_v36 = vmul.f32 %v5058_v22, %v5054_v15  ;;  %v5065_v35 = vadd.f32 %v5064_v39, %v5059_v28 }
0x2131   :  { %v5066_v40 = vadd.f32 %v5064_v39, %v5060_v36 }
0x2133   :  { %v5067_v43 = vpack.c.bf16 %v5066_v40, %v5065_v35 }
0x2135   :  { %6005 = vmatmul.mubr.msk.bf16.vlgmr.msra.gmra.mrb[156].mxu1 %vm50_vm0, %v5067_v43 }
0x2208   :  { %v5128_v45 = vpop.f32.mrb[156].mxu1 }
0x2209   :  { %v5129_v42 = vadd.f32 %v5313_v44, %v5128_v45  ;;  %v6006_v47 = vpop.f32.mrb[157].mxu1 }
0x220a   :  { %v5131_v49 = vpop.f32.mrb[158].mxu1 }
0x220b   :  { %5136 = vst.msk [vmem:[#allocation2] sm:$0xff] %vm5135_vm9, %v5129_v42  ;;  %v5132_v53 = vadd.f32 %v5313_v44, %v5131_v49  ;;  %v6007_v19 = vpop.f32.mrb[159].mxu1 }
0x220d   :  { %5137 = vst.msk [vmem:[#allocation2 + $0x8] sm:$0xff] %vm5135_vm9, %v5132_v53 }
0x220e   :  { %6296 = shalt.err (!%p6293_p4)
}
0x220f   :  { %s6297_s19 = scalar_lea.hbm %s7515_s12, 256 }
0x2210   :  { %p6298_p5 = scmp.ne.s32.totalorder %s7515_s12, %s6297_s19  ;;  %p6301_p6 = scmp.lt.u32.totalorder %s6297_s19, %s7515_s12 }
0x2212   :  { %p6303_p7 = pnand %p6301_p6, %p6298_p5 }
0x2214   :  { %6306 = shalt.err (!%p6303_p7)
}
0x2215   :  { %s6327_s26 = smov 128  }
0x2216   :  { %5149 = dma.vmem_to_hbm [thread:$0]  %s5144_s17, 256, %s7515_s12, [#allocation3], %s6327_s26, %s6327_s26, %s6323_s27  }
0x2217   :  { %6307 = dma.done.wait [#allocation3], 256  }
0x2218   :  { %6308 = vsyncadd [#allocation3], 4294967040 }
0x2219   :  { %5153 = vsyncpa [#allocation3], 1 }

</bundles_post_ra>
